<compile_context>
chip_gen: v7x
topology: tpu7x:2x2x1
jax: 0.10.0
libtpu: 0.0.40
codegen_flags: <defaults>
</compile_context>

<pallas_src>
import math

import jax
import jax.numpy as jnp
from jax.experimental import pallas as pl
from jax.experimental.pallas import tpu as pltpu


# ---------------------------------------------------------------------------
# Fused Pallas kernel
# ---------------------------------------------------------------------------
def _lstm_cell(gates, c, H):
    """gates: (B, 4H) pre-activation in PyTorch i,f,g,o order."""
    i = jax.nn.sigmoid(gates[:, 0 * H:1 * H])
    f = jax.nn.sigmoid(gates[:, 1 * H:2 * H])
    g = jnp.tanh(gates[:, 2 * H:3 * H])
    o = jax.nn.sigmoid(gates[:, 3 * H:4 * H])
    c_new = f * c + i * g
    h_new = o * jnp.tanh(c_new)
    return h_new, c_new


def _make_birnn_kernel(T, B, H, num_layers, t_mid):
    """Builds a kernel: (x_flat, [wih,whh,b]*L, fc_w, fc_b) -> (B, C) logits.

    x_flat:  (T*B, D_in)   time-major input, flattened over (T, B)
    wih_l:   (D_in_l, 8H)  [fwd | bwd] transposed weight_ih
    whh_l:   (H,      8H)  [fwd | bwd] transposed weight_hh
    b_l:     (1,      8H)  [fwd | bwd] (b_ih + b_hh)
    fc_w:    (2H, C), fc_b: (1, C)
    scratch: two (T*B, 2H) VMEM buffers for inter-layer activations.
    """
    G = 4 * H

    def kernel(*refs):
        x_ref = refs[0]
        w_refs = refs[1:1 + 3 * num_layers]
        fcw_ref = refs[1 + 3 * num_layers]
        fcb_ref = refs[2 + 3 * num_layers]
        out_ref = refs[3 + 3 * num_layers]
        buf_refs = refs[4 + 3 * num_layers:]

        def bidir_layer(x_flat, wih, whh, bias, out_buf_ref, capture_mid):
            # Hoisted input projection: all timesteps, both directions, one matmul.
            gx = jnp.dot(x_flat, wih,
                         preferred_element_type=jnp.float32) + bias  # (T*B, 8H)
            whh_f = whh[:, 0:G]
            whh_b = whh[:, G:2 * G]

            h_f = jnp.zeros((B, H), jnp.float32)
            c_f = jnp.zeros((B, H), jnp.float32)
            h_b = jnp.zeros((B, H), jnp.float32)
            c_b = jnp.zeros((B, H), jnp.float32)
            h_f_mid = None
            h_b_mid = None

            for t in range(T):              # static unroll; T is small & static
                tb = T - 1 - t              # timestep consumed by reverse dir
                g_f = gx[t * B:(t + 1) * B, 0:G] + jnp.dot(
                    h_f, whh_f, preferred_element_type=jnp.float32)
                g_b = gx[tb * B:(tb + 1) * B, G:2 * G] + jnp.dot(
                    h_b, whh_b, preferred_element_type=jnp.float32)
                h_f, c_f = _lstm_cell(g_f, c_f, H)
                h_b, c_b = _lstm_cell(g_b, c_b, H)
                if out_buf_ref is not None:
                    out_buf_ref[t * B:(t + 1) * B, 0:H] = h_f
                    out_buf_ref[tb * B:(tb + 1) * B, H:2 * H] = h_b
                if capture_mid:
                    if t == t_mid:
                        h_f_mid = h_f
                    if tb == t_mid:
                        h_b_mid = h_b
            return h_f_mid, h_b_mid

        layer_in = x_ref[...]
        h_f_mid = None
        h_b_mid = None
        for l in range(num_layers):
            wih = w_refs[3 * l][...]
            whh = w_refs[3 * l + 1][...]
            bias = w_refs[3 * l + 2][...]
            if l == num_layers - 1:
                # Last layer: only the mid-timestep hidden states are needed.
                h_f_mid, h_b_mid = bidir_layer(layer_in, wih, whh, bias,
                                               None, capture_mid=True)
            else:
                buf = buf_refs[l % 2]      # ping-pong inter-layer VMEM buffer
                bidir_layer(layer_in, wih, whh, bias, buf, capture_mid=False)
                layer_in = buf[...]

        # FC head on concat([h_fwd(t_mid), h_bwd(t_mid)]) without the concat:
        fcw = fcw_ref[...]                 # (2H, C): rows [0:H] fwd, [H:2H] bwd
        out_ref[...] = (
            jnp.dot(h_f_mid, fcw[0:H, :], preferred_element_type=jnp.float32)
            + jnp.dot(h_b_mid, fcw[H:2 * H, :],
                      preferred_element_type=jnp.float32)
            + fcb_ref[...]
        )

    return kernel


# ---------------------------------------------------------------------------
# Wrapper
# ---------------------------------------------------------------------------
_VMEM = pl.BlockSpec(memory_space=pltpu.MemorySpace.VMEM)


def birnn_test_forward(x, params):
    """Reproduces biRNN_test.forward.  x: (B, T, input_size) float32."""
    B, T, D_in = x.shape
    H = params["hidden_size"]
    L = params["num_layers"]
    C = params["fc_b"].shape[-1]
    t_mid = int(T / 2) + 1                  # rnn_out[:, int(T/2) + 1, :]

    # Single layout fix outside the kernel: batch-first -> time-major, flattened
    # over (T, B) so the in-kernel input projection is one dense matmul.
    x_flat = jnp.transpose(x, (1, 0, 2)).reshape(T * B, D_in)

    kernel = _make_birnn_kernel(T, B, H, L, t_mid)

    args = [x_flat]
    for l in range(L):
        args += [params[f"w_ih_l{l}"], params[f"w_hh_l{l}"], params[f"b_l{l}"]]
    args += [params["fc_w"], params["fc_b"]]

    # TODO(synk): at production sizes (large T/B/H), stream x / inter-layer
    # activations from HBM with emit_pipeline instead of whole-array VMEM specs.
    out = pl.pallas_call(
        kernel,
        out_shape=jax.ShapeDtypeStruct((B, C), jnp.float32),
        in_specs=[_VMEM] * len(args),
        out_specs=_VMEM,
        scratch_shapes=[
            pltpu.VMEM((T * B, 2 * H), jnp.float32),
            pltpu.VMEM((T * B, 2 * H), jnp.float32),
        ],
    )(*args)
    return out


# ---------------------------------------------------------------------------
# Deterministic parameter init (PyTorch-style uniform(-1/sqrt(H), 1/sqrt(H))),
# already pre-transposed / pre-combined into the kernel's layout.
# ---------------------------------------------------------------------------
def init_params(key, input_size, hidden_size, num_layers, num_classes):
    H = hidden_size
    params = {"num_layers": num_layers, "hidden_size": H}
    k = 1.0 / math.sqrt(H)

    def u(key, shape):
        return jax.random.uniform(key, shape, jnp.float32, minval=-k, maxval=k)

    for l in range(num_layers):
        d_in = input_size if l == 0 else 2 * H
        wih_parts, whh_parts, b_parts = [], [], []
        for _ in range(2):                  # fwd then bwd direction
            key, k1, k2, k3, k4 = jax.random.split(key, 5)
            w_ih = u(k1, (4 * H, d_in))     # PyTorch layout (4H, D_in)
            w_hh = u(k2, (4 * H, H))
            b_ih = u(k3, (4 * H,))
            b_hh = u(k4, (4 * H,))
            wih_parts.append(jnp.transpose(w_ih))      # (D_in, 4H)
            whh_parts.append(jnp.transpose(w_hh))      # (H, 4H)
            b_parts.append(b_ih + b_hh)
        params[f"w_ih_l{l}"] = jnp.concatenate(wih_parts, axis=1)   # (D_in, 8H)
        params[f"w_hh_l{l}"] = jnp.concatenate(whh_parts, axis=1)   # (H, 8H)
        params[f"b_l{l}"] = jnp.concatenate(b_parts)[None, :]       # (1, 8H)

    kf = 1.0 / math.sqrt(2 * H)
    key, k1, k2 = jax.random.split(key, 3)
    fc_w = jax.random.uniform(k1, (num_classes, 2 * H), jnp.float32,
                              minval=-kf, maxval=kf)
    fc_b = jax.random.uniform(k2, (num_classes,), jnp.float32,
                              minval=-kf, maxval=kf)
    params["fc_w"] = jnp.transpose(fc_w)    # (2H, C)
    params["fc_b"] = fc_b[None, :]          # (1, C)
    return params


# ---------------------------------------------------------------------------
if __name__ == "__main__":
    # Small shapes consistent with the module's forward (batch_first input).
    B, T = 2, 8
    INPUT_SIZE, HIDDEN_SIZE, NUM_LAYERS, NUM_CLASSES = 7, 32, 3, 2

    key = jax.random.PRNGKey(0)
    key, pkey, xkey = jax.random.split(key, 3)

    params = init_params(pkey, INPUT_SIZE, HIDDEN_SIZE, NUM_LAYERS, NUM_CLASSES)
    x = jax.random.normal(xkey, (B, T, INPUT_SIZE), dtype=jnp.float32)

    out = birnn_test_forward(x, params)
    out = jax.block_until_ready(out)
    assert out.shape == (B, NUM_CLASSES), out.shape
    print("KERNEL_OK")
</pallas_src>

<mosaic_0001>
module attributes {stable_mosaic.version = 11 : i64} {
  func.func @kernel(%arg0: memref<16x7xf32, #tpu.memory_space<vmem>>, %arg1: memref<7x256xf32, #tpu.memory_space<vmem>>, %arg2: memref<32x256xf32, #tpu.memory_space<vmem>>, %arg3: memref<1x256xf32, #tpu.memory_space<vmem>>, %arg4: memref<64x256xf32, #tpu.memory_space<vmem>>, %arg5: memref<32x256xf32, #tpu.memory_space<vmem>>, %arg6: memref<1x256xf32, #tpu.memory_space<vmem>>, %arg7: memref<64x256xf32, #tpu.memory_space<vmem>>, %arg8: memref<32x256xf32, #tpu.memory_space<vmem>>, %arg9: memref<1x256xf32, #tpu.memory_space<vmem>>, %arg10: memref<64x2xf32, #tpu.memory_space<vmem>>, %arg11: memref<1x2xf32, #tpu.memory_space<vmem>>, %arg12: memref<2x2xf32, #tpu.memory_space<vmem>>, %arg13: memref<16x64xf32, #tpu.memory_space<vmem>>, %arg14: memref<16x64xf32, #tpu.memory_space<vmem>>) attributes {dimension_semantics = [], scalar_prefetch = 0 : i64, scratch_operands = 2 : i64, tpu.core_type = #tpu.core_type<tc>} {
    %c0 = arith.constant 0 : index
    %c0_0 = arith.constant 0 : index
    %0 = vector.load %arg0[%c0, %c0_0] : memref<16x7xf32, #tpu.memory_space<vmem>>, vector<16x7xf32>
    %c0_1 = arith.constant 0 : index
    %c0_2 = arith.constant 0 : index
    %1 = vector.load %arg1[%c0_1, %c0_2] : memref<7x256xf32, #tpu.memory_space<vmem>>, vector<7x256xf32>
    %c0_3 = arith.constant 0 : index
    %c0_4 = arith.constant 0 : index
    %2 = vector.load %arg2[%c0_3, %c0_4] : memref<32x256xf32, #tpu.memory_space<vmem>>, vector<32x256xf32>
    %c0_5 = arith.constant 0 : index
    %c0_6 = arith.constant 0 : index
    %3 = vector.load %arg3[%c0_5, %c0_6] : memref<1x256xf32, #tpu.memory_space<vmem>>, vector<1x256xf32>
    %cst = arith.constant dense<0.000000e+00> : vector<16x256xf32>
    %4 = tpu.matmul %0, %1, %cst {dimension_numbers = #tpu.dot_dimension_numbers<[1], [0], [0], [1], [0, 0, 1, 1], [], []>} : vector<16x7xf32>, vector<7x256xf32>, vector<16x256xf32> -> vector<16x256xf32>
    %5 = vector.broadcast %3 : vector<1x256xf32> to vector<16x256xf32>
    %6 = arith.addf %4, %5 : vector<16x256xf32>
    %7 = vector.extract_strided_slice %2 {offsets = [0, 0], sizes = [32, 128], strides = [1, 1]} : vector<32x256xf32> to vector<32x128xf32>
    %8 = vector.extract_strided_slice %2 {offsets = [0, 128], sizes = [32, 128], strides = [1, 1]} : vector<32x256xf32> to vector<32x128xf32>
    %cst_7 = arith.constant 0.000000e+00 : f32
    %9 = vector.broadcast %cst_7 : f32 to vector<2x32xf32>
    %cst_8 = arith.constant 0.000000e+00 : f32
    %10 = vector.broadcast %cst_8 : f32 to vector<2x32xf32>
    %cst_9 = arith.constant 0.000000e+00 : f32
    %11 = vector.broadcast %cst_9 : f32 to vector<2x32xf32>
    %cst_10 = arith.constant 0.000000e+00 : f32
    %12 = vector.broadcast %cst_10 : f32 to vector<2x32xf32>
    %13 = vector.extract_strided_slice %6 {offsets = [0, 0], sizes = [2, 128], strides = [1, 1]} : vector<16x256xf32> to vector<2x128xf32>
    %cst_11 = arith.constant dense<0.000000e+00> : vector<2x128xf32>
    %14 = tpu.matmul %9, %7, %cst_11 {dimension_numbers = #tpu.dot_dimension_numbers<[1], [0], [0], [1], [0, 0, 1, 1], [], []>} : vector<2x32xf32>, vector<32x128xf32>, vector<2x128xf32> -> vector<2x128xf32>
    %15 = arith.addf %13, %14 : vector<2x128xf32>
    %16 = vector.extract_strided_slice %6 {offsets = [14, 128], sizes = [2, 128], strides = [1, 1]} : vector<16x256xf32> to vector<2x128xf32>
    %cst_12 = arith.constant dense<0.000000e+00> : vector<2x128xf32>
    %17 = tpu.matmul %11, %8, %cst_12 {dimension_numbers = #tpu.dot_dimension_numbers<[1], [0], [0], [1], [0, 0, 1, 1], [], []>} : vector<2x32xf32>, vector<32x128xf32>, vector<2x128xf32> -> vector<2x128xf32>
    %18 = arith.addf %16, %17 : vector<2x128xf32>
    %19 = vector.extract_strided_slice %15 {offsets = [0, 0], sizes = [2, 32], strides = [1, 1]} : vector<2x128xf32> to vector<2x32xf32>
    %20 = arith.negf %19 : vector<2x32xf32>
    %21 = math.exp %20 : vector<2x32xf32>
    %cst_13 = arith.constant 1.000000e+00 : f32
    %22 = vector.broadcast %cst_13 : f32 to vector<2x32xf32>
    %23 = arith.addf %22, %21 : vector<2x32xf32>
    %24 = arith.divf %22, %23 : vector<2x32xf32>
    %25 = vector.extract_strided_slice %15 {offsets = [0, 32], sizes = [2, 32], strides = [1, 1]} : vector<2x128xf32> to vector<2x32xf32>
    %26 = arith.negf %25 : vector<2x32xf32>
    %27 = math.exp %26 : vector<2x32xf32>
    %cst_14 = arith.constant 1.000000e+00 : f32
    %28 = vector.broadcast %cst_14 : f32 to vector<2x32xf32>
    %29 = arith.addf %28, %27 : vector<2x32xf32>
    %30 = arith.divf %28, %29 : vector<2x32xf32>
    %31 = vector.extract_strided_slice %15 {offsets = [0, 64], sizes = [2, 32], strides = [1, 1]} : vector<2x128xf32> to vector<2x32xf32>
    %32 = math.tanh %31 : vector<2x32xf32>
    %33 = vector.extract_strided_slice %15 {offsets = [0, 96], sizes = [2, 32], strides = [1, 1]} : vector<2x128xf32> to vector<2x32xf32>
    %34 = arith.negf %33 : vector<2x32xf32>
    %35 = math.exp %34 : vector<2x32xf32>
    %cst_15 = arith.constant 1.000000e+00 : f32
    %36 = vector.broadcast %cst_15 : f32 to vector<2x32xf32>
    %37 = arith.addf %36, %35 : vector<2x32xf32>
    %38 = arith.divf %36, %37 : vector<2x32xf32>
    %39 = arith.mulf %30, %10 : vector<2x32xf32>
    %40 = arith.mulf %24, %32 : vector<2x32xf32>
    %41 = arith.addf %39, %40 : vector<2x32xf32>
    %42 = math.tanh %41 : vector<2x32xf32>
    %43 = arith.mulf %38, %42 : vector<2x32xf32>
    %44 = vector.extract_strided_slice %18 {offsets = [0, 0], sizes = [2, 32], strides = [1, 1]} : vector<2x128xf32> to vector<2x32xf32>
    %45 = arith.negf %44 : vector<2x32xf32>
    %46 = math.exp %45 : vector<2x32xf32>
    %cst_16 = arith.constant 1.000000e+00 : f32
    %47 = vector.broadcast %cst_16 : f32 to vector<2x32xf32>
    %48 = arith.addf %47, %46 : vector<2x32xf32>
    %49 = arith.divf %47, %48 : vector<2x32xf32>
    %50 = vector.extract_strided_slice %18 {offsets = [0, 32], sizes = [2, 32], strides = [1, 1]} : vector<2x128xf32> to vector<2x32xf32>
    %51 = arith.negf %50 : vector<2x32xf32>
    %52 = math.exp %51 : vector<2x32xf32>
    %cst_17 = arith.constant 1.000000e+00 : f32
    %53 = vector.broadcast %cst_17 : f32 to vector<2x32xf32>
    %54 = arith.addf %53, %52 : vector<2x32xf32>
    %55 = arith.divf %53, %54 : vector<2x32xf32>
    %56 = vector.extract_strided_slice %18 {offsets = [0, 64], sizes = [2, 32], strides = [1, 1]} : vector<2x128xf32> to vector<2x32xf32>
    %57 = math.tanh %56 : vector<2x32xf32>
    %58 = vector.extract_strided_slice %18 {offsets = [0, 96], sizes = [2, 32], strides = [1, 1]} : vector<2x128xf32> to vector<2x32xf32>
    %59 = arith.negf %58 : vector<2x32xf32>
    %60 = math.exp %59 : vector<2x32xf32>
    %cst_18 = arith.constant 1.000000e+00 : f32
    %61 = vector.broadcast %cst_18 : f32 to vector<2x32xf32>
    %62 = arith.addf %61, %60 : vector<2x32xf32>
    %63 = arith.divf %61, %62 : vector<2x32xf32>
    %64 = arith.mulf %55, %12 : vector<2x32xf32>
    %65 = arith.mulf %49, %57 : vector<2x32xf32>
    %66 = arith.addf %64, %65 : vector<2x32xf32>
    %67 = math.tanh %66 : vector<2x32xf32>
    %68 = arith.mulf %63, %67 : vector<2x32xf32>
    %c0_19 = arith.constant 0 : index
    %c0_20 = arith.constant 0 : index
    %69 = vector.load %arg13[%c0_19, %c0_20] : memref<16x64xf32, #tpu.memory_space<vmem>>, vector<2x32xf32>
    tpu.vector_store %arg13[%c0_19, %c0_20], %43 {strides = array<i32>} : memref<16x64xf32, #tpu.memory_space<vmem>>, vector<2x32xf32>,
    %c14 = arith.constant 14 : index
    %c32 = arith.constant 32 : index
    %70 = vector.load %arg13[%c14, %c32] : memref<16x64xf32, #tpu.memory_space<vmem>>, vector<2x32xf32>
    tpu.vector_store %arg13[%c14, %c32], %68 {strides = array<i32>} : memref<16x64xf32, #tpu.memory_space<vmem>>, vector<2x32xf32>,
    %71 = vector.extract_strided_slice %6 {offsets = [2, 0], sizes = [2, 128], strides = [1, 1]} : vector<16x256xf32> to vector<2x128xf32>
    %cst_21 = arith.constant dense<0.000000e+00> : vector<2x128xf32>
    %72 = tpu.matmul %43, %7, %cst_21 {dimension_numbers = #tpu.dot_dimension_numbers<[1], [0], [0], [1], [0, 0, 1, 1], [], []>} : vector<2x32xf32>, vector<32x128xf32>, vector<2x128xf32> -> vector<2x128xf32>
    %73 = arith.addf %71, %72 : vector<2x128xf32>
    %74 = vector.extract_strided_slice %6 {offsets = [12, 128], sizes = [2, 128], strides = [1, 1]} : vector<16x256xf32> to vector<2x128xf32>
    %cst_22 = arith.constant dense<0.000000e+00> : vector<2x128xf32>
    %75 = tpu.matmul %68, %8, %cst_22 {dimension_numbers = #tpu.dot_dimension_numbers<[1], [0], [0], [1], [0, 0, 1, 1], [], []>} : vector<2x32xf32>, vector<32x128xf32>, vector<2x128xf32> -> vector<2x128xf32>
    %76 = arith.addf %74, %75 : vector<2x128xf32>
    %77 = vector.extract_strided_slice %73 {offsets = [0, 0], sizes = [2, 32], strides = [1, 1]} : vector<2x128xf32> to vector<2x32xf32>
    %78 = arith.negf %77 : vector<2x32xf32>
    %79 = math.exp %78 : vector<2x32xf32>
    %cst_23 = arith.constant 1.000000e+00 : f32
    %80 = vector.broadcast %cst_23 : f32 to vector<2x32xf32>
    %81 = arith.addf %80, %79 : vector<2x32xf32>
    %82 = arith.divf %80, %81 : vector<2x32xf32>
    %83 = vector.extract_strided_slice %73 {offsets = [0, 32], sizes = [2, 32], strides = [1, 1]} : vector<2x128xf32> to vector<2x32xf32>
    %84 = arith.negf %83 : vector<2x32xf32>
    %85 = math.exp %84 : vector<2x32xf32>
    %cst_24 = arith.constant 1.000000e+00 : f32
    %86 = vector.broadcast %cst_24 : f32 to vector<2x32xf32>
    %87 = arith.addf %86, %85 : vector<2x32xf32>
    %88 = arith.divf %86, %87 : vector<2x32xf32>
    %89 = vector.extract_strided_slice %73 {offsets = [0, 64], sizes = [2, 32], strides = [1, 1]} : vector<2x128xf32> to vector<2x32xf32>
    %90 = math.tanh %89 : vector<2x32xf32>
    %91 = vector.extract_strided_slice %73 {offsets = [0, 96], sizes = [2, 32], strides = [1, 1]} : vector<2x128xf32> to vector<2x32xf32>
    %92 = arith.negf %91 : vector<2x32xf32>
    %93 = math.exp %92 : vector<2x32xf32>
    %cst_25 = arith.constant 1.000000e+00 : f32
    %94 = vector.broadcast %cst_25 : f32 to vector<2x32xf32>
    %95 = arith.addf %94, %93 : vector<2x32xf32>
    %96 = arith.divf %94, %95 : vector<2x32xf32>
    %97 = arith.mulf %88, %41 : vector<2x32xf32>
    %98 = arith.mulf %82, %90 : vector<2x32xf32>
    %99 = arith.addf %97, %98 : vector<2x32xf32>
    %100 = math.tanh %99 : vector<2x32xf32>
    %101 = arith.mulf %96, %100 : vector<2x32xf32>
    %102 = vector.extract_strided_slice %76 {offsets = [0, 0], sizes = [2, 32], strides = [1, 1]} : vector<2x128xf32> to vector<2x32xf32>
    %103 = arith.negf %102 : vector<2x32xf32>
    %104 = math.exp %103 : vector<2x32xf32>
    %cst_26 = arith.constant 1.000000e+00 : f32
    %105 = vector.broadcast %cst_26 : f32 to vector<2x32xf32>
    %106 = arith.addf %105, %104 : vector<2x32xf32>
    %107 = arith.divf %105, %106 : vector<2x32xf32>
    %108 = vector.extract_strided_slice %76 {offsets = [0, 32], sizes = [2, 32], strides = [1, 1]} : vector<2x128xf32> to vector<2x32xf32>
    %109 = arith.negf %108 : vector<2x32xf32>
    %110 = math.exp %109 : vector<2x32xf32>
    %cst_27 = arith.constant 1.000000e+00 : f32
    %111 = vector.broadcast %cst_27 : f32 to vector<2x32xf32>
    %112 = arith.addf %111, %110 : vector<2x32xf32>
    %113 = arith.divf %111, %112 : vector<2x32xf32>
    %114 = vector.extract_strided_slice %76 {offsets = [0, 64], sizes = [2, 32], strides = [1, 1]} : vector<2x128xf32> to vector<2x32xf32>
    %115 = math.tanh %114 : vector<2x32xf32>
    %116 = vector.extract_strided_slice %76 {offsets = [0, 96], sizes = [2, 32], strides = [1, 1]} : vector<2x128xf32> to vector<2x32xf32>
    %117 = arith.negf %116 : vector<2x32xf32>
    %118 = math.exp %117 : vector<2x32xf32>
    %cst_28 = arith.constant 1.000000e+00 : f32
    %119 = vector.broadcast %cst_28 : f32 to vector<2x32xf32>
    %120 = arith.addf %119, %118 : vector<2x32xf32>
    %121 = arith.divf %119, %120 : vector<2x32xf32>
    %122 = arith.mulf %113, %66 : vector<2x32xf32>
    %123 = arith.mulf %107, %115 : vector<2x32xf32>
    %124 = arith.addf %122, %123 : vector<2x32xf32>
    %125 = math.tanh %124 : vector<2x32xf32>
    %126 = arith.mulf %121, %125 : vector<2x32xf32>
    %c2 = arith.constant 2 : index
    %c0_29 = arith.constant 0 : index
    %127 = vector.load %arg13[%c2, %c0_29] : memref<16x64xf32, #tpu.memory_space<vmem>>, vector<2x32xf32>
    tpu.vector_store %arg13[%c2, %c0_29], %101 {strides = array<i32>} : memref<16x64xf32, #tpu.memory_space<vmem>>, vector<2x32xf32>,
    %c12 = arith.constant 12 : index
    %c32_30 = arith.constant 32 : index
    %128 = vector.load %arg13[%c12, %c32_30] : memref<16x64xf32, #tpu.memory_space<vmem>>, vector<2x32xf32>
    tpu.vector_store %arg13[%c12, %c32_30], %126 {strides = array<i32>} : memref<16x64xf32, #tpu.memory_space<vmem>>, vector<2x32xf32>,
    %129 = vector.extract_strided_slice %6 {offsets = [4, 0], sizes = [2, 128], strides = [1, 1]} : vector<16x256xf32> to vector<2x128xf32>
    %cst_31 = arith.constant dense<0.000000e+00> : vector<2x128xf32>
    %130 = tpu.matmul %101, %7, %cst_31 {dimension_numbers = #tpu.dot_dimension_numbers<[1], [0], [0], [1], [0, 0, 1, 1], [], []>} : vector<2x32xf32>, vector<32x128xf32>, vector<2x128xf32> -> vector<2x128xf32>
    %131 = arith.addf %129, %130 : vector<2x128xf32>
    %132 = vector.extract_strided_slice %6 {offsets = [10, 128], sizes = [2, 128], strides = [1, 1]} : vector<16x256xf32> to vector<2x128xf32>
    %cst_32 = arith.constant dense<0.000000e+00> : vector<2x128xf32>
    %133 = tpu.matmul %126, %8, %cst_32 {dimension_numbers = #tpu.dot_dimension_numbers<[1], [0], [0], [1], [0, 0, 1, 1], [], []>} : vector<2x32xf32>, vector<32x128xf32>, vector<2x128xf32> -> vector<2x128xf32>
    %134 = arith.addf %132, %133 : vector<2x128xf32>
    %135 = vector.extract_strided_slice %131 {offsets = [0, 0], sizes = [2, 32], strides = [1, 1]} : vector<2x128xf32> to vector<2x32xf32>
    %136 = arith.negf %135 : vector<2x32xf32>
    %137 = math.exp %136 : vector<2x32xf32>
    %cst_33 = arith.constant 1.000000e+00 : f32
    %138 = vector.broadcast %cst_33 : f32 to vector<2x32xf32>
    %139 = arith.addf %138, %137 : vector<2x32xf32>
    %140 = arith.divf %138, %139 : vector<2x32xf32>
    %141 = vector.extract_strided_slice %131 {offsets = [0, 32], sizes = [2, 32], strides = [1, 1]} : vector<2x128xf32> to vector<2x32xf32>
    %142 = arith.negf %141 : vector<2x32xf32>
    %143 = math.exp %142 : vector<2x32xf32>
    %cst_34 = arith.constant 1.000000e+00 : f32
    %144 = vector.broadcast %cst_34 : f32 to vector<2x32xf32>
    %145 = arith.addf %144, %143 : vector<2x32xf32>
    %146 = arith.divf %144, %145 : vector<2x32xf32>
    %147 = vector.extract_strided_slice %131 {offsets = [0, 64], sizes = [2, 32], strides = [1, 1]} : vector<2x128xf32> to vector<2x32xf32>
    %148 = math.tanh %147 : vector<2x32xf32>
    %149 = vector.extract_strided_slice %131 {offsets = [0, 96], sizes = [2, 32], strides = [1, 1]} : vector<2x128xf32> to vector<2x32xf32>
    %150 = arith.negf %149 : vector<2x32xf32>
    %151 = math.exp %150 : vector<2x32xf32>
    %cst_35 = arith.constant 1.000000e+00 : f32
    %152 = vector.broadcast %cst_35 : f32 to vector<2x32xf32>
    %153 = arith.addf %152, %151 : vector<2x32xf32>
    %154 = arith.divf %152, %153 : vector<2x32xf32>
    %155 = arith.mulf %146, %99 : vector<2x32xf32>
    %156 = arith.mulf %140, %148 : vector<2x32xf32>
    %157 = arith.addf %155, %156 : vector<2x32xf32>
    %158 = math.tanh %157 : vector<2x32xf32>
    %159 = arith.mulf %154, %158 : vector<2x32xf32>
    %160 = vector.extract_strided_slice %134 {offsets = [0, 0], sizes = [2, 32], strides = [1, 1]} : vector<2x128xf32> to vector<2x32xf32>
    %161 = arith.negf %160 : vector<2x32xf32>
    %162 = math.exp %161 : vector<2x32xf32>
    %cst_36 = arith.constant 1.000000e+00 : f32
    %163 = vector.broadcast %cst_36 : f32 to vector<2x32xf32>
    %164 = arith.addf %163, %162 : vector<2x32xf32>
    %165 = arith.divf %163, %164 : vector<2x32xf32>
    %166 = vector.extract_strided_slice %134 {offsets = [0, 32], sizes = [2, 32], strides = [1, 1]} : vector<2x128xf32> to vector<2x32xf32>
    %167 = arith.negf %166 : vector<2x32xf32>
    %168 = math.exp %167 : vector<2x32xf32>
    %cst_37 = arith.constant 1.000000e+00 : f32
    %169 = vector.broadcast %cst_37 : f32 to vector<2x32xf32>
    %170 = arith.addf %169, %168 : vector<2x32xf32>
    %171 = arith.divf %169, %170 : vector<2x32xf32>
    %172 = vector.extract_strided_slice %134 {offsets = [0, 64], sizes = [2, 32], strides = [1, 1]} : vector<2x128xf32> to vector<2x32xf32>
    %173 = math.tanh %172 : vector<2x32xf32>
    %174 = vector.extract_strided_slice %134 {offsets = [0, 96], sizes = [2, 32], strides = [1, 1]} : vector<2x128xf32> to vector<2x32xf32>
    %175 = arith.negf %174 : vector<2x32xf32>
    %176 = math.exp %175 : vector<2x32xf32>
    %cst_38 = arith.constant 1.000000e+00 : f32
    %177 = vector.broadcast %cst_38 : f32 to vector<2x32xf32>
    %178 = arith.addf %177, %176 : vector<2x32xf32>
    %179 = arith.divf %177, %178 : vector<2x32xf32>
    %180 = arith.mulf %171, %124 : vector<2x32xf32>
    %181 = arith.mulf %165, %173 : vector<2x32xf32>
    %182 = arith.addf %180, %181 : vector<2x32xf32>
    %183 = math.tanh %182 : vector<2x32xf32>
    %184 = arith.mulf %179, %183 : vector<2x32xf32>
    %c4 = arith.constant 4 : index
    %c0_39 = arith.constant 0 : index
    %185 = vector.load %arg13[%c4, %c0_39] : memref<16x64xf32, #tpu.memory_space<vmem>>, vector<2x32xf32>
    tpu.vector_store %arg13[%c4, %c0_39], %159 {strides = array<i32>} : memref<16x64xf32, #tpu.memory_space<vmem>>, vector<2x32xf32>,
    %c10 = arith.constant 10 : index
    %c32_40 = arith.constant 32 : index
    %186 = vector.load %arg13[%c10, %c32_40] : memref<16x64xf32, #tpu.memory_space<vmem>>, vector<2x32xf32>
    tpu.vector_store %arg13[%c10, %c32_40], %184 {strides = array<i32>} : memref<16x64xf32, #tpu.memory_space<vmem>>, vector<2x32xf32>,
    %187 = vector.extract_strided_slice %6 {offsets = [6, 0], sizes = [2, 128], strides = [1, 1]} : vector<16x256xf32> to vector<2x128xf32>
    %cst_41 = arith.constant dense<0.000000e+00> : vector<2x128xf32>
    %188 = tpu.matmul %159, %7, %cst_41 {dimension_numbers = #tpu.dot_dimension_numbers<[1], [0], [0], [1], [0, 0, 1, 1], [], []>} : vector<2x32xf32>, vector<32x128xf32>, vector<2x128xf32> -> vector<2x128xf32>
    %189 = arith.addf %187, %188 : vector<2x128xf32>
    %190 = vector.extract_strided_slice %6 {offsets = [8, 128], sizes = [2, 128], strides = [1, 1]} : vector<16x256xf32> to vector<2x128xf32>
    %cst_42 = arith.constant dense<0.000000e+00> : vector<2x128xf32>
    %191 = tpu.matmul %184, %8, %cst_42 {dimension_numbers = #tpu.dot_dimension_numbers<[1], [0], [0], [1], [0, 0, 1, 1], [], []>} : vector<2x32xf32>, vector<32x128xf32>, vector<2x128xf32> -> vector<2x128xf32>
    %192 = arith.addf %190, %191 : vector<2x128xf32>
    %193 = vector.extract_strided_slice %189 {offsets = [0, 0], sizes = [2, 32], strides = [1, 1]} : vector<2x128xf32> to vector<2x32xf32>
    %194 = arith.negf %193 : vector<2x32xf32>
    %195 = math.exp %194 : vector<2x32xf32>
    %cst_43 = arith.constant 1.000000e+00 : f32
    %196 = vector.broadcast %cst_43 : f32 to vector<2x32xf32>
    %197 = arith.addf %196, %195 : vector<2x32xf32>
    %198 = arith.divf %196, %197 : vector<2x32xf32>
    %199 = vector.extract_strided_slice %189 {offsets = [0, 32], sizes = [2, 32], strides = [1, 1]} : vector<2x128xf32> to vector<2x32xf32>
    %200 = arith.negf %199 : vector<2x32xf32>
    %201 = math.exp %200 : vector<2x32xf32>
    %cst_44 = arith.constant 1.000000e+00 : f32
    %202 = vector.broadcast %cst_44 : f32 to vector<2x32xf32>
    %203 = arith.addf %202, %201 : vector<2x32xf32>
    %204 = arith.divf %202, %203 : vector<2x32xf32>
    %205 = vector.extract_strided_slice %189 {offsets = [0, 64], sizes = [2, 32], strides = [1, 1]} : vector<2x128xf32> to vector<2x32xf32>
    %206 = math.tanh %205 : vector<2x32xf32>
    %207 = vector.extract_strided_slice %189 {offsets = [0, 96], sizes = [2, 32], strides = [1, 1]} : vector<2x128xf32> to vector<2x32xf32>
    %208 = arith.negf %207 : vector<2x32xf32>
    %209 = math.exp %208 : vector<2x32xf32>
    %cst_45 = arith.constant 1.000000e+00 : f32
    %210 = vector.broadcast %cst_45 : f32 to vector<2x32xf32>
    %211 = arith.addf %210, %209 : vector<2x32xf32>
    %212 = arith.divf %210, %211 : vector<2x32xf32>
    %213 = arith.mulf %204, %157 : vector<2x32xf32>
    %214 = arith.mulf %198, %206 : vector<2x32xf32>
    %215 = arith.addf %213, %214 : vector<2x32xf32>
    %216 = math.tanh %215 : vector<2x32xf32>
    %217 = arith.mulf %212, %216 : vector<2x32xf32>
    %218 = vector.extract_strided_slice %192 {offsets = [0, 0], sizes = [2, 32], strides = [1, 1]} : vector<2x128xf32> to vector<2x32xf32>
    %219 = arith.negf %218 : vector<2x32xf32>
    %220 = math.exp %219 : vector<2x32xf32>
    %cst_46 = arith.constant 1.000000e+00 : f32
    %221 = vector.broadcast %cst_46 : f32 to vector<2x32xf32>
    %222 = arith.addf %221, %220 : vector<2x32xf32>
    %223 = arith.divf %221, %222 : vector<2x32xf32>
    %224 = vector.extract_strided_slice %192 {offsets = [0, 32], sizes = [2, 32], strides = [1, 1]} : vector<2x128xf32> to vector<2x32xf32>
    %225 = arith.negf %224 : vector<2x32xf32>
    %226 = math.exp %225 : vector<2x32xf32>
    %cst_47 = arith.constant 1.000000e+00 : f32
    %227 = vector.broadcast %cst_47 : f32 to vector<2x32xf32>
    %228 = arith.addf %227, %226 : vector<2x32xf32>
    %229 = arith.divf %227, %228 : vector<2x32xf32>
    %230 = vector.extract_strided_slice %192 {offsets = [0, 64], sizes = [2, 32], strides = [1, 1]} : vector<2x128xf32> to vector<2x32xf32>
    %231 = math.tanh %230 : vector<2x32xf32>
    %232 = vector.extract_strided_slice %192 {offsets = [0, 96], sizes = [2, 32], strides = [1, 1]} : vector<2x128xf32> to vector<2x32xf32>
    %233 = arith.negf %232 : vector<2x32xf32>
    %234 = math.exp %233 : vector<2x32xf32>
    %cst_48 = arith.constant 1.000000e+00 : f32
    %235 = vector.broadcast %cst_48 : f32 to vector<2x32xf32>
    %236 = arith.addf %235, %234 : vector<2x32xf32>
    %237 = arith.divf %235, %236 : vector<2x32xf32>
    %238 = arith.mulf %229, %182 : vector<2x32xf32>
    %239 = arith.mulf %223, %231 : vector<2x32xf32>
    %240 = arith.addf %238, %239 : vector<2x32xf32>
    %241 = math.tanh %240 : vector<2x32xf32>
    %242 = arith.mulf %237, %241 : vector<2x32xf32>
    %c6 = arith.constant 6 : index
    %c0_49 = arith.constant 0 : index
    %243 = vector.load %arg13[%c6, %c0_49] : memref<16x64xf32, #tpu.memory_space<vmem>>, vector<2x32xf32>
    tpu.vector_store %arg13[%c6, %c0_49], %217 {strides = array<i32>} : memref<16x64xf32, #tpu.memory_space<vmem>>, vector<2x32xf32>,
    %c8 = arith.constant 8 : index
    %c32_50 = arith.constant 32 : index
    %244 = vector.load %arg13[%c8, %c32_50] : memref<16x64xf32, #tpu.memory_space<vmem>>, vector<2x32xf32>
    tpu.vector_store %arg13[%c8, %c32_50], %242 {strides = array<i32>} : memref<16x64xf32, #tpu.memory_space<vmem>>, vector<2x32xf32>,
    %245 = vector.extract_strided_slice %6 {offsets = [8, 0], sizes = [2, 128], strides = [1, 1]} : vector<16x256xf32> to vector<2x128xf32>
    %cst_51 = arith.constant dense<0.000000e+00> : vector<2x128xf32>
    %246 = tpu.matmul %217, %7, %cst_51 {dimension_numbers = #tpu.dot_dimension_numbers<[1], [0], [0], [1], [0, 0, 1, 1], [], []>} : vector<2x32xf32>, vector<32x128xf32>, vector<2x128xf32> -> vector<2x128xf32>
    %247 = arith.addf %245, %246 : vector<2x128xf32>
    %248 = vector.extract_strided_slice %6 {offsets = [6, 128], sizes = [2, 128], strides = [1, 1]} : vector<16x256xf32> to vector<2x128xf32>
    %cst_52 = arith.constant dense<0.000000e+00> : vector<2x128xf32>
    %249 = tpu.matmul %242, %8, %cst_52 {dimension_numbers = #tpu.dot_dimension_numbers<[1], [0], [0], [1], [0, 0, 1, 1], [], []>} : vector<2x32xf32>, vector<32x128xf32>, vector<2x128xf32> -> vector<2x128xf32>
    %250 = arith.addf %248, %249 : vector<2x128xf32>
    %251 = vector.extract_strided_slice %247 {offsets = [0, 0], sizes = [2, 32], strides = [1, 1]} : vector<2x128xf32> to vector<2x32xf32>
    %252 = arith.negf %251 : vector<2x32xf32>
    %253 = math.exp %252 : vector<2x32xf32>
    %cst_53 = arith.constant 1.000000e+00 : f32
    %254 = vector.broadcast %cst_53 : f32 to vector<2x32xf32>
    %255 = arith.addf %254, %253 : vector<2x32xf32>
    %256 = arith.divf %254, %255 : vector<2x32xf32>
    %257 = vector.extract_strided_slice %247 {offsets = [0, 32], sizes = [2, 32], strides = [1, 1]} : vector<2x128xf32> to vector<2x32xf32>
    %258 = arith.negf %257 : vector<2x32xf32>
    %259 = math.exp %258 : vector<2x32xf32>
    %cst_54 = arith.constant 1.000000e+00 : f32
    %260 = vector.broadcast %cst_54 : f32 to vector<2x32xf32>
    %261 = arith.addf %260, %259 : vector<2x32xf32>
    %262 = arith.divf %260, %261 : vector<2x32xf32>
    %263 = vector.extract_strided_slice %247 {offsets = [0, 64], sizes = [2, 32], strides = [1, 1]} : vector<2x128xf32> to vector<2x32xf32>
    %264 = math.tanh %263 : vector<2x32xf32>
    %265 = vector.extract_strided_slice %247 {offsets = [0, 96], sizes = [2, 32], strides = [1, 1]} : vector<2x128xf32> to vector<2x32xf32>
    %266 = arith.negf %265 : vector<2x32xf32>
    %267 = math.exp %266 : vector<2x32xf32>
    %cst_55 = arith.constant 1.000000e+00 : f32
    %268 = vector.broadcast %cst_55 : f32 to vector<2x32xf32>
    %269 = arith.addf %268, %267 : vector<2x32xf32>
    %270 = arith.divf %268, %269 : vector<2x32xf32>
    %271 = arith.mulf %262, %215 : vector<2x32xf32>
    %272 = arith.mulf %256, %264 : vector<2x32xf32>
    %273 = arith.addf %271, %272 : vector<2x32xf32>
    %274 = math.tanh %273 : vector<2x32xf32>
    %275 = arith.mulf %270, %274 : vector<2x32xf32>
    %276 = vector.extract_strided_slice %250 {offsets = [0, 0], sizes = [2, 32], strides = [1, 1]} : vector<2x128xf32> to vector<2x32xf32>
    %277 = arith.negf %276 : vector<2x32xf32>
    %278 = math.exp %277 : vector<2x32xf32>
    %cst_56 = arith.constant 1.000000e+00 : f32
    %279 = vector.broadcast %cst_56 : f32 to vector<2x32xf32>
    %280 = arith.addf %279, %278 : vector<2x32xf32>
    %281 = arith.divf %279, %280 : vector<2x32xf32>
    %282 = vector.extract_strided_slice %250 {offsets = [0, 32], sizes = [2, 32], strides = [1, 1]} : vector<2x128xf32> to vector<2x32xf32>
    %283 = arith.negf %282 : vector<2x32xf32>
    %284 = math.exp %283 : vector<2x32xf32>
    %cst_57 = arith.constant 1.000000e+00 : f32
    %285 = vector.broadcast %cst_57 : f32 to vector<2x32xf32>
    %286 = arith.addf %285, %284 : vector<2x32xf32>
    %287 = arith.divf %285, %286 : vector<2x32xf32>
    %288 = vector.extract_strided_slice %250 {offsets = [0, 64], sizes = [2, 32], strides = [1, 1]} : vector<2x128xf32> to vector<2x32xf32>
    %289 = math.tanh %288 : vector<2x32xf32>
    %290 = vector.extract_strided_slice %250 {offsets = [0, 96], sizes = [2, 32], strides = [1, 1]} : vector<2x128xf32> to vector<2x32xf32>
    %291 = arith.negf %290 : vector<2x32xf32>
    %292 = math.exp %291 : vector<2x32xf32>
    %cst_58 = arith.constant 1.000000e+00 : f32
    %293 = vector.broadcast %cst_58 : f32 to vector<2x32xf32>
    %294 = arith.addf %293, %292 : vector<2x32xf32>
    %295 = arith.divf %293, %294 : vector<2x32xf32>
    %296 = arith.mulf %287, %240 : vector<2x32xf32>
    %297 = arith.mulf %281, %289 : vector<2x32xf32>
    %298 = arith.addf %296, %297 : vector<2x32xf32>
    %299 = math.tanh %298 : vector<2x32xf32>
    %300 = arith.mulf %295, %299 : vector<2x32xf32>
    %c8_59 = arith.constant 8 : index
    %c0_60 = arith.constant 0 : index
    %301 = vector.load %arg13[%c8_59, %c0_60] : memref<16x64xf32, #tpu.memory_space<vmem>>, vector<2x32xf32>
    tpu.vector_store %arg13[%c8_59, %c0_60], %275 {strides = array<i32>} : memref<16x64xf32, #tpu.memory_space<vmem>>, vector<2x32xf32>,
    %c6_61 = arith.constant 6 : index
    %c32_62 = arith.constant 32 : index
    %302 = vector.load %arg13[%c6_61, %c32_62] : memref<16x64xf32, #tpu.memory_space<vmem>>, vector<2x32xf32>
    tpu.vector_store %arg13[%c6_61, %c32_62], %300 {strides = array<i32>} : memref<16x64xf32, #tpu.memory_space<vmem>>, vector<2x32xf32>,
    %303 = vector.extract_strided_slice %6 {offsets = [10, 0], sizes = [2, 128], strides = [1, 1]} : vector<16x256xf32> to vector<2x128xf32>
    %cst_63 = arith.constant dense<0.000000e+00> : vector<2x128xf32>
    %304 = tpu.matmul %275, %7, %cst_63 {dimension_numbers = #tpu.dot_dimension_numbers<[1], [0], [0], [1], [0, 0, 1, 1], [], []>} : vector<2x32xf32>, vector<32x128xf32>, vector<2x128xf32> -> vector<2x128xf32>
    %305 = arith.addf %303, %304 : vector<2x128xf32>
    %306 = vector.extract_strided_slice %6 {offsets = [4, 128], sizes = [2, 128], strides = [1, 1]} : vector<16x256xf32> to vector<2x128xf32>
    %cst_64 = arith.constant dense<0.000000e+00> : vector<2x128xf32>
    %307 = tpu.matmul %300, %8, %cst_64 {dimension_numbers = #tpu.dot_dimension_numbers<[1], [0], [0], [1], [0, 0, 1, 1], [], []>} : vector<2x32xf32>, vector<32x128xf32>, vector<2x128xf32> -> vector<2x128xf32>
    %308 = arith.addf %306, %307 : vector<2x128xf32>
    %309 = vector.extract_strided_slice %305 {offsets = [0, 0], sizes = [2, 32], strides = [1, 1]} : vector<2x128xf32> to vector<2x32xf32>
    %310 = arith.negf %309 : vector<2x32xf32>
    %311 = math.exp %310 : vector<2x32xf32>
    %cst_65 = arith.constant 1.000000e+00 : f32
    %312 = vector.broadcast %cst_65 : f32 to vector<2x32xf32>
    %313 = arith.addf %312, %311 : vector<2x32xf32>
    %314 = arith.divf %312, %313 : vector<2x32xf32>
    %315 = vector.extract_strided_slice %305 {offsets = [0, 32], sizes = [2, 32], strides = [1, 1]} : vector<2x128xf32> to vector<2x32xf32>
    %316 = arith.negf %315 : vector<2x32xf32>
    %317 = math.exp %316 : vector<2x32xf32>
    %cst_66 = arith.constant 1.000000e+00 : f32
    %318 = vector.broadcast %cst_66 : f32 to vector<2x32xf32>
    %319 = arith.addf %318, %317 : vector<2x32xf32>
    %320 = arith.divf %318, %319 : vector<2x32xf32>
    %321 = vector.extract_strided_slice %305 {offsets = [0, 64], sizes = [2, 32], strides = [1, 1]} : vector<2x128xf32> to vector<2x32xf32>
    %322 = math.tanh %321 : vector<2x32xf32>
    %323 = vector.extract_strided_slice %305 {offsets = [0, 96], sizes = [2, 32], strides = [1, 1]} : vector<2x128xf32> to vector<2x32xf32>
    %324 = arith.negf %323 : vector<2x32xf32>
    %325 = math.exp %324 : vector<2x32xf32>
    %cst_67 = arith.constant 1.000000e+00 : f32
    %326 = vector.broadcast %cst_67 : f32 to vector<2x32xf32>
    %327 = arith.addf %326, %325 : vector<2x32xf32>
    %328 = arith.divf %326, %327 : vector<2x32xf32>
    %329 = arith.mulf %320, %273 : vector<2x32xf32>
    %330 = arith.mulf %314, %322 : vector<2x32xf32>
    %331 = arith.addf %329, %330 : vector<2x32xf32>
    %332 = math.tanh %331 : vector<2x32xf32>
    %333 = arith.mulf %328, %332 : vector<2x32xf32>
    %334 = vector.extract_strided_slice %308 {offsets = [0, 0], sizes = [2, 32], strides = [1, 1]} : vector<2x128xf32> to vector<2x32xf32>
    %335 = arith.negf %334 : vector<2x32xf32>
    %336 = math.exp %335 : vector<2x32xf32>
    %cst_68 = arith.constant 1.000000e+00 : f32
    %337 = vector.broadcast %cst_68 : f32 to vector<2x32xf32>
    %338 = arith.addf %337, %336 : vector<2x32xf32>
    %339 = arith.divf %337, %338 : vector<2x32xf32>
    %340 = vector.extract_strided_slice %308 {offsets = [0, 32], sizes = [2, 32], strides = [1, 1]} : vector<2x128xf32> to vector<2x32xf32>
    %341 = arith.negf %340 : vector<2x32xf32>
    %342 = math.exp %341 : vector<2x32xf32>
    %cst_69 = arith.constant 1.000000e+00 : f32
    %343 = vector.broadcast %cst_69 : f32 to vector<2x32xf32>
    %344 = arith.addf %343, %342 : vector<2x32xf32>
    %345 = arith.divf %343, %344 : vector<2x32xf32>
    %346 = vector.extract_strided_slice %308 {offsets = [0, 64], sizes = [2, 32], strides = [1, 1]} : vector<2x128xf32> to vector<2x32xf32>
    %347 = math.tanh %346 : vector<2x32xf32>
    %348 = vector.extract_strided_slice %308 {offsets = [0, 96], sizes = [2, 32], strides = [1, 1]} : vector<2x128xf32> to vector<2x32xf32>
    %349 = arith.negf %348 : vector<2x32xf32>
    %350 = math.exp %349 : vector<2x32xf32>
    %cst_70 = arith.constant 1.000000e+00 : f32
    %351 = vector.broadcast %cst_70 : f32 to vector<2x32xf32>
    %352 = arith.addf %351, %350 : vector<2x32xf32>
    %353 = arith.divf %351, %352 : vector<2x32xf32>
    %354 = arith.mulf %345, %298 : vector<2x32xf32>
    %355 = arith.mulf %339, %347 : vector<2x32xf32>
    %356 = arith.addf %354, %355 : vector<2x32xf32>
    %357 = math.tanh %356 : vector<2x32xf32>
    %358 = arith.mulf %353, %357 : vector<2x32xf32>
    %c10_71 = arith.constant 10 : index
    %c0_72 = arith.constant 0 : index
    %359 = vector.load %arg13[%c10_71, %c0_72] : memref<16x64xf32, #tpu.memory_space<vmem>>, vector<2x32xf32>
    tpu.vector_store %arg13[%c10_71, %c0_72], %333 {strides = array<i32>} : memref<16x64xf32, #tpu.memory_space<vmem>>, vector<2x32xf32>,
    %c4_73 = arith.constant 4 : index
    %c32_74 = arith.constant 32 : index
    %360 = vector.load %arg13[%c4_73, %c32_74] : memref<16x64xf32, #tpu.memory_space<vmem>>, vector<2x32xf32>
    tpu.vector_store %arg13[%c4_73, %c32_74], %358 {strides = array<i32>} : memref<16x64xf32, #tpu.memory_space<vmem>>, vector<2x32xf32>,
    %361 = vector.extract_strided_slice %6 {offsets = [12, 0], sizes = [2, 128], strides = [1, 1]} : vector<16x256xf32> to vector<2x128xf32>
    %cst_75 = arith.constant dense<0.000000e+00> : vector<2x128xf32>
    %362 = tpu.matmul %333, %7, %cst_75 {dimension_numbers = #tpu.dot_dimension_numbers<[1], [0], [0], [1], [0, 0, 1, 1], [], []>} : vector<2x32xf32>, vector<32x128xf32>, vector<2x128xf32> -> vector<2x128xf32>
    %363 = arith.addf %361, %362 : vector<2x128xf32>
    %364 = vector.extract_strided_slice %6 {offsets = [2, 128], sizes = [2, 128], strides = [1, 1]} : vector<16x256xf32> to vector<2x128xf32>
    %cst_76 = arith.constant dense<0.000000e+00> : vector<2x128xf32>
    %365 = tpu.matmul %358, %8, %cst_76 {dimension_numbers = #tpu.dot_dimension_numbers<[1], [0], [0], [1], [0, 0, 1, 1], [], []>} : vector<2x32xf32>, vector<32x128xf32>, vector<2x128xf32> -> vector<2x128xf32>
    %366 = arith.addf %364, %365 : vector<2x128xf32>
    %367 = vector.extract_strided_slice %363 {offsets = [0, 0], sizes = [2, 32], strides = [1, 1]} : vector<2x128xf32> to vector<2x32xf32>
    %368 = arith.negf %367 : vector<2x32xf32>
    %369 = math.exp %368 : vector<2x32xf32>
    %cst_77 = arith.constant 1.000000e+00 : f32
    %370 = vector.broadcast %cst_77 : f32 to vector<2x32xf32>
    %371 = arith.addf %370, %369 : vector<2x32xf32>
    %372 = arith.divf %370, %371 : vector<2x32xf32>
    %373 = vector.extract_strided_slice %363 {offsets = [0, 32], sizes = [2, 32], strides = [1, 1]} : vector<2x128xf32> to vector<2x32xf32>
    %374 = arith.negf %373 : vector<2x32xf32>
    %375 = math.exp %374 : vector<2x32xf32>
    %cst_78 = arith.constant 1.000000e+00 : f32
    %376 = vector.broadcast %cst_78 : f32 to vector<2x32xf32>
    %377 = arith.addf %376, %375 : vector<2x32xf32>
    %378 = arith.divf %376, %377 : vector<2x32xf32>
    %379 = vector.extract_strided_slice %363 {offsets = [0, 64], sizes = [2, 32], strides = [1, 1]} : vector<2x128xf32> to vector<2x32xf32>
    %380 = math.tanh %379 : vector<2x32xf32>
    %381 = vector.extract_strided_slice %363 {offsets = [0, 96], sizes = [2, 32], strides = [1, 1]} : vector<2x128xf32> to vector<2x32xf32>
    %382 = arith.negf %381 : vector<2x32xf32>
    %383 = math.exp %382 : vector<2x32xf32>
    %cst_79 = arith.constant 1.000000e+00 : f32
    %384 = vector.broadcast %cst_79 : f32 to vector<2x32xf32>
    %385 = arith.addf %384, %383 : vector<2x32xf32>
    %386 = arith.divf %384, %385 : vector<2x32xf32>
    %387 = arith.mulf %378, %331 : vector<2x32xf32>
    %388 = arith.mulf %372, %380 : vector<2x32xf32>
    %389 = arith.addf %387, %388 : vector<2x32xf32>
    %390 = math.tanh %389 : vector<2x32xf32>
    %391 = arith.mulf %386, %390 : vector<2x32xf32>
    %392 = vector.extract_strided_slice %366 {offsets = [0, 0], sizes = [2, 32], strides = [1, 1]} : vector<2x128xf32> to vector<2x32xf32>
    %393 = arith.negf %392 : vector<2x32xf32>
    %394 = math.exp %393 : vector<2x32xf32>
    %cst_80 = arith.constant 1.000000e+00 : f32
    %395 = vector.broadcast %cst_80 : f32 to vector<2x32xf32>
    %396 = arith.addf %395, %394 : vector<2x32xf32>
    %397 = arith.divf %395, %396 : vector<2x32xf32>
    %398 = vector.extract_strided_slice %366 {offsets = [0, 32], sizes = [2, 32], strides = [1, 1]} : vector<2x128xf32> to vector<2x32xf32>
    %399 = arith.negf %398 : vector<2x32xf32>
    %400 = math.exp %399 : vector<2x32xf32>
    %cst_81 = arith.constant 1.000000e+00 : f32
    %401 = vector.broadcast %cst_81 : f32 to vector<2x32xf32>
    %402 = arith.addf %401, %400 : vector<2x32xf32>
    %403 = arith.divf %401, %402 : vector<2x32xf32>
    %404 = vector.extract_strided_slice %366 {offsets = [0, 64], sizes = [2, 32], strides = [1, 1]} : vector<2x128xf32> to vector<2x32xf32>
    %405 = math.tanh %404 : vector<2x32xf32>
    %406 = vector.extract_strided_slice %366 {offsets = [0, 96], sizes = [2, 32], strides = [1, 1]} : vector<2x128xf32> to vector<2x32xf32>
    %407 = arith.negf %406 : vector<2x32xf32>
    %408 = math.exp %407 : vector<2x32xf32>
    %cst_82 = arith.constant 1.000000e+00 : f32
    %409 = vector.broadcast %cst_82 : f32 to vector<2x32xf32>
    %410 = arith.addf %409, %408 : vector<2x32xf32>
    %411 = arith.divf %409, %410 : vector<2x32xf32>
    %412 = arith.mulf %403, %356 : vector<2x32xf32>
    %413 = arith.mulf %397, %405 : vector<2x32xf32>
    %414 = arith.addf %412, %413 : vector<2x32xf32>
    %415 = math.tanh %414 : vector<2x32xf32>
    %416 = arith.mulf %411, %415 : vector<2x32xf32>
    %c12_83 = arith.constant 12 : index
    %c0_84 = arith.constant 0 : index
    %417 = vector.load %arg13[%c12_83, %c0_84] : memref<16x64xf32, #tpu.memory_space<vmem>>, vector<2x32xf32>
    tpu.vector_store %arg13[%c12_83, %c0_84], %391 {strides = array<i32>} : memref<16x64xf32, #tpu.memory_space<vmem>>, vector<2x32xf32>,
    %c2_85 = arith.constant 2 : index
    %c32_86 = arith.constant 32 : index
    %418 = vector.load %arg13[%c2_85, %c32_86] : memref<16x64xf32, #tpu.memory_space<vmem>>, vector<2x32xf32>
    tpu.vector_store %arg13[%c2_85, %c32_86], %416 {strides = array<i32>} : memref<16x64xf32, #tpu.memory_space<vmem>>, vector<2x32xf32>,
    %419 = vector.extract_strided_slice %6 {offsets = [14, 0], sizes = [2, 128], strides = [1, 1]} : vector<16x256xf32> to vector<2x128xf32>
    %cst_87 = arith.constant dense<0.000000e+00> : vector<2x128xf32>
    %420 = tpu.matmul %391, %7, %cst_87 {dimension_numbers = #tpu.dot_dimension_numbers<[1], [0], [0], [1], [0, 0, 1, 1], [], []>} : vector<2x32xf32>, vector<32x128xf32>, vector<2x128xf32> -> vector<2x128xf32>
    %421 = arith.addf %419, %420 : vector<2x128xf32>
    %422 = vector.extract_strided_slice %6 {offsets = [0, 128], sizes = [2, 128], strides = [1, 1]} : vector<16x256xf32> to vector<2x128xf32>
    %cst_88 = arith.constant dense<0.000000e+00> : vector<2x128xf32>
    %423 = tpu.matmul %416, %8, %cst_88 {dimension_numbers = #tpu.dot_dimension_numbers<[1], [0], [0], [1], [0, 0, 1, 1], [], []>} : vector<2x32xf32>, vector<32x128xf32>, vector<2x128xf32> -> vector<2x128xf32>
    %424 = arith.addf %422, %423 : vector<2x128xf32>
    %425 = vector.extract_strided_slice %421 {offsets = [0, 0], sizes = [2, 32], strides = [1, 1]} : vector<2x128xf32> to vector<2x32xf32>
    %426 = arith.negf %425 : vector<2x32xf32>
    %427 = math.exp %426 : vector<2x32xf32>
    %cst_89 = arith.constant 1.000000e+00 : f32
    %428 = vector.broadcast %cst_89 : f32 to vector<2x32xf32>
    %429 = arith.addf %428, %427 : vector<2x32xf32>
    %430 = arith.divf %428, %429 : vector<2x32xf32>
    %431 = vector.extract_strided_slice %421 {offsets = [0, 32], sizes = [2, 32], strides = [1, 1]} : vector<2x128xf32> to vector<2x32xf32>
    %432 = arith.negf %431 : vector<2x32xf32>
    %433 = math.exp %432 : vector<2x32xf32>
    %cst_90 = arith.constant 1.000000e+00 : f32
    %434 = vector.broadcast %cst_90 : f32 to vector<2x32xf32>
    %435 = arith.addf %434, %433 : vector<2x32xf32>
    %436 = arith.divf %434, %435 : vector<2x32xf32>
    %437 = vector.extract_strided_slice %421 {offsets = [0, 64], sizes = [2, 32], strides = [1, 1]} : vector<2x128xf32> to vector<2x32xf32>
    %438 = math.tanh %437 : vector<2x32xf32>
    %439 = vector.extract_strided_slice %421 {offsets = [0, 96], sizes = [2, 32], strides = [1, 1]} : vector<2x128xf32> to vector<2x32xf32>
    %440 = arith.negf %439 : vector<2x32xf32>
    %441 = math.exp %440 : vector<2x32xf32>
    %cst_91 = arith.constant 1.000000e+00 : f32
    %442 = vector.broadcast %cst_91 : f32 to vector<2x32xf32>
    %443 = arith.addf %442, %441 : vector<2x32xf32>
    %444 = arith.divf %442, %443 : vector<2x32xf32>
    %445 = arith.mulf %436, %389 : vector<2x32xf32>
    %446 = arith.mulf %430, %438 : vector<2x32xf32>
    %447 = arith.addf %445, %446 : vector<2x32xf32>
    %448 = math.tanh %447 : vector<2x32xf32>
    %449 = arith.mulf %444, %448 : vector<2x32xf32>
    %450 = vector.extract_strided_slice %424 {offsets = [0, 0], sizes = [2, 32], strides = [1, 1]} : vector<2x128xf32> to vector<2x32xf32>
    %451 = arith.negf %450 : vector<2x32xf32>
    %452 = math.exp %451 : vector<2x32xf32>
    %cst_92 = arith.constant 1.000000e+00 : f32
    %453 = vector.broadcast %cst_92 : f32 to vector<2x32xf32>
    %454 = arith.addf %453, %452 : vector<2x32xf32>
    %455 = arith.divf %453, %454 : vector<2x32xf32>
    %456 = vector.extract_strided_slice %424 {offsets = [0, 32], sizes = [2, 32], strides = [1, 1]} : vector<2x128xf32> to vector<2x32xf32>
    %457 = arith.negf %456 : vector<2x32xf32>
    %458 = math.exp %457 : vector<2x32xf32>
    %cst_93 = arith.constant 1.000000e+00 : f32
    %459 = vector.broadcast %cst_93 : f32 to vector<2x32xf32>
    %460 = arith.addf %459, %458 : vector<2x32xf32>
    %461 = arith.divf %459, %460 : vector<2x32xf32>
    %462 = vector.extract_strided_slice %424 {offsets = [0, 64], sizes = [2, 32], strides = [1, 1]} : vector<2x128xf32> to vector<2x32xf32>
    %463 = math.tanh %462 : vector<2x32xf32>
    %464 = vector.extract_strided_slice %424 {offsets = [0, 96], sizes = [2, 32], strides = [1, 1]} : vector<2x128xf32> to vector<2x32xf32>
    %465 = arith.negf %464 : vector<2x32xf32>
    %466 = math.exp %465 : vector<2x32xf32>
    %cst_94 = arith.constant 1.000000e+00 : f32
    %467 = vector.broadcast %cst_94 : f32 to vector<2x32xf32>
    %468 = arith.addf %467, %466 : vector<2x32xf32>
    %469 = arith.divf %467, %468 : vector<2x32xf32>
    %470 = arith.mulf %461, %414 : vector<2x32xf32>
    %471 = arith.mulf %455, %463 : vector<2x32xf32>
    %472 = arith.addf %470, %471 : vector<2x32xf32>
    %473 = math.tanh %472 : vector<2x32xf32>
    %474 = arith.mulf %469, %473 : vector<2x32xf32>
    %c14_95 = arith.constant 14 : index
    %c0_96 = arith.constant 0 : index
    %475 = vector.load %arg13[%c14_95, %c0_96] : memref<16x64xf32, #tpu.memory_space<vmem>>, vector<2x32xf32>
    tpu.vector_store %arg13[%c14_95, %c0_96], %449 {strides = array<i32>} : memref<16x64xf32, #tpu.memory_space<vmem>>, vector<2x32xf32>,
    %c0_97 = arith.constant 0 : index
    %c32_98 = arith.constant 32 : index
    %476 = vector.load %arg13[%c0_97, %c32_98] : memref<16x64xf32, #tpu.memory_space<vmem>>, vector<2x32xf32>
    tpu.vector_store %arg13[%c0_97, %c32_98], %474 {strides = array<i32>} : memref<16x64xf32, #tpu.memory_space<vmem>>, vector<2x32xf32>,
    %c0_99 = arith.constant 0 : index
    %c0_100 = arith.constant 0 : index
    %477 = vector.load %arg13[%c0_99, %c0_100] : memref<16x64xf32, #tpu.memory_space<vmem>>, vector<16x64xf32>
    %c0_101 = arith.constant 0 : index
    %c0_102 = arith.constant 0 : index
    %478 = vector.load %arg4[%c0_101, %c0_102] : memref<64x256xf32, #tpu.memory_space<vmem>>, vector<64x256xf32>
    %c0_103 = arith.constant 0 : index
    %c0_104 = arith.constant 0 : index
    %479 = vector.load %arg5[%c0_103, %c0_104] : memref<32x256xf32, #tpu.memory_space<vmem>>, vector<32x256xf32>
    %c0_105 = arith.constant 0 : index
    %c0_106 = arith.constant 0 : index
    %480 = vector.load %arg6[%c0_105, %c0_106] : memref<1x256xf32, #tpu.memory_space<vmem>>, vector<1x256xf32>
    %cst_107 = arith.constant dense<0.000000e+00> : vector<16x256xf32>
    %481 = tpu.matmul %477, %478, %cst_107 {dimension_numbers = #tpu.dot_dimension_numbers<[1], [0], [0], [1], [0, 0, 1, 1], [], []>} : vector<16x64xf32>, vector<64x256xf32>, vector<16x256xf32> -> vector<16x256xf32>
    %482 = vector.broadcast %480 : vector<1x256xf32> to vector<16x256xf32>
    %483 = arith.addf %481, %482 : vector<16x256xf32>
    %484 = vector.extract_strided_slice %479 {offsets = [0, 0], sizes = [32, 128], strides = [1, 1]} : vector<32x256xf32> to vector<32x128xf32>
    %485 = vector.extract_strided_slice %479 {offsets = [0, 128], sizes = [32, 128], strides = [1, 1]} : vector<32x256xf32> to vector<32x128xf32>
    %cst_108 = arith.constant 0.000000e+00 : f32
    %486 = vector.broadcast %cst_108 : f32 to vector<2x32xf32>
    %cst_109 = arith.constant 0.000000e+00 : f32
    %487 = vector.broadcast %cst_109 : f32 to vector<2x32xf32>
    %cst_110 = arith.constant 0.000000e+00 : f32
    %488 = vector.broadcast %cst_110 : f32 to vector<2x32xf32>
    %cst_111 = arith.constant 0.000000e+00 : f32
    %489 = vector.broadcast %cst_111 : f32 to vector<2x32xf32>
    %490 = vector.extract_strided_slice %483 {offsets = [0, 0], sizes = [2, 128], strides = [1, 1]} : vector<16x256xf32> to vector<2x128xf32>
    %cst_112 = arith.constant dense<0.000000e+00> : vector<2x128xf32>
    %491 = tpu.matmul %486, %484, %cst_112 {dimension_numbers = #tpu.dot_dimension_numbers<[1], [0], [0], [1], [0, 0, 1, 1], [], []>} : vector<2x32xf32>, vector<32x128xf32>, vector<2x128xf32> -> vector<2x128xf32>
    %492 = arith.addf %490, %491 : vector<2x128xf32>
    %493 = vector.extract_strided_slice %483 {offsets = [14, 128], sizes = [2, 128], strides = [1, 1]} : vector<16x256xf32> to vector<2x128xf32>
    %cst_113 = arith.constant dense<0.000000e+00> : vector<2x128xf32>
    %494 = tpu.matmul %488, %485, %cst_113 {dimension_numbers = #tpu.dot_dimension_numbers<[1], [0], [0], [1], [0, 0, 1, 1], [], []>} : vector<2x32xf32>, vector<32x128xf32>, vector<2x128xf32> -> vector<2x128xf32>
    %495 = arith.addf %493, %494 : vector<2x128xf32>
    %496 = vector.extract_strided_slice %492 {offsets = [0, 0], sizes = [2, 32], strides = [1, 1]} : vector<2x128xf32> to vector<2x32xf32>
    %497 = arith.negf %496 : vector<2x32xf32>
    %498 = math.exp %497 : vector<2x32xf32>
    %cst_114 = arith.constant 1.000000e+00 : f32
    %499 = vector.broadcast %cst_114 : f32 to vector<2x32xf32>
    %500 = arith.addf %499, %498 : vector<2x32xf32>
    %501 = arith.divf %499, %500 : vector<2x32xf32>
    %502 = vector.extract_strided_slice %492 {offsets = [0, 32], sizes = [2, 32], strides = [1, 1]} : vector<2x128xf32> to vector<2x32xf32>
    %503 = arith.negf %502 : vector<2x32xf32>
    %504 = math.exp %503 : vector<2x32xf32>
    %cst_115 = arith.constant 1.000000e+00 : f32
    %505 = vector.broadcast %cst_115 : f32 to vector<2x32xf32>
    %506 = arith.addf %505, %504 : vector<2x32xf32>
    %507 = arith.divf %505, %506 : vector<2x32xf32>
    %508 = vector.extract_strided_slice %492 {offsets = [0, 64], sizes = [2, 32], strides = [1, 1]} : vector<2x128xf32> to vector<2x32xf32>
    %509 = math.tanh %508 : vector<2x32xf32>
    %510 = vector.extract_strided_slice %492 {offsets = [0, 96], sizes = [2, 32], strides = [1, 1]} : vector<2x128xf32> to vector<2x32xf32>
    %511 = arith.negf %510 : vector<2x32xf32>
    %512 = math.exp %511 : vector<2x32xf32>
    %cst_116 = arith.constant 1.000000e+00 : f32
    %513 = vector.broadcast %cst_116 : f32 to vector<2x32xf32>
    %514 = arith.addf %513, %512 : vector<2x32xf32>
    %515 = arith.divf %513, %514 : vector<2x32xf32>
    %516 = arith.mulf %507, %487 : vector<2x32xf32>
    %517 = arith.mulf %501, %509 : vector<2x32xf32>
    %518 = arith.addf %516, %517 : vector<2x32xf32>
    %519 = math.tanh %518 : vector<2x32xf32>
    %520 = arith.mulf %515, %519 : vector<2x32xf32>
    %521 = vector.extract_strided_slice %495 {offsets = [0, 0], sizes = [2, 32], strides = [1, 1]} : vector<2x128xf32> to vector<2x32xf32>
    %522 = arith.negf %521 : vector<2x32xf32>
    %523 = math.exp %522 : vector<2x32xf32>
    %cst_117 = arith.constant 1.000000e+00 : f32
    %524 = vector.broadcast %cst_117 : f32 to vector<2x32xf32>
    %525 = arith.addf %524, %523 : vector<2x32xf32>
    %526 = arith.divf %524, %525 : vector<2x32xf32>
    %527 = vector.extract_strided_slice %495 {offsets = [0, 32], sizes = [2, 32], strides = [1, 1]} : vector<2x128xf32> to vector<2x32xf32>
    %528 = arith.negf %527 : vector<2x32xf32>
    %529 = math.exp %528 : vector<2x32xf32>
    %cst_118 = arith.constant 1.000000e+00 : f32
    %530 = vector.broadcast %cst_118 : f32 to vector<2x32xf32>
    %531 = arith.addf %530, %529 : vector<2x32xf32>
    %532 = arith.divf %530, %531 : vector<2x32xf32>
    %533 = vector.extract_strided_slice %495 {offsets = [0, 64], sizes = [2, 32], strides = [1, 1]} : vector<2x128xf32> to vector<2x32xf32>
    %534 = math.tanh %533 : vector<2x32xf32>
    %535 = vector.extract_strided_slice %495 {offsets = [0, 96], sizes = [2, 32], strides = [1, 1]} : vector<2x128xf32> to vector<2x32xf32>
    %536 = arith.negf %535 : vector<2x32xf32>
    %537 = math.exp %536 : vector<2x32xf32>
    %cst_119 = arith.constant 1.000000e+00 : f32
    %538 = vector.broadcast %cst_119 : f32 to vector<2x32xf32>
    %539 = arith.addf %538, %537 : vector<2x32xf32>
    %540 = arith.divf %538, %539 : vector<2x32xf32>
    %541 = arith.mulf %532, %489 : vector<2x32xf32>
    %542 = arith.mulf %526, %534 : vector<2x32xf32>
    %543 = arith.addf %541, %542 : vector<2x32xf32>
    %544 = math.tanh %543 : vector<2x32xf32>
    %545 = arith.mulf %540, %544 : vector<2x32xf32>
    %c0_120 = arith.constant 0 : index
    %c0_121 = arith.constant 0 : index
    %546 = vector.load %arg14[%c0_120, %c0_121] : memref<16x64xf32, #tpu.memory_space<vmem>>, vector<2x32xf32>
    tpu.vector_store %arg14[%c0_120, %c0_121], %520 {strides = array<i32>} : memref<16x64xf32, #tpu.memory_space<vmem>>, vector<2x32xf32>,
    %c14_122 = arith.constant 14 : index
    %c32_123 = arith.constant 32 : index
    %547 = vector.load %arg14[%c14_122, %c32_123] : memref<16x64xf32, #tpu.memory_space<vmem>>, vector<2x32xf32>
    tpu.vector_store %arg14[%c14_122, %c32_123], %545 {strides = array<i32>} : memref<16x64xf32, #tpu.memory_space<vmem>>, vector<2x32xf32>,
    %548 = vector.extract_strided_slice %483 {offsets = [2, 0], sizes = [2, 128], strides = [1, 1]} : vector<16x256xf32> to vector<2x128xf32>
    %cst_124 = arith.constant dense<0.000000e+00> : vector<2x128xf32>
    %549 = tpu.matmul %520, %484, %cst_124 {dimension_numbers = #tpu.dot_dimension_numbers<[1], [0], [0], [1], [0, 0, 1, 1], [], []>} : vector<2x32xf32>, vector<32x128xf32>, vector<2x128xf32> -> vector<2x128xf32>
    %550 = arith.addf %548, %549 : vector<2x128xf32>
    %551 = vector.extract_strided_slice %483 {offsets = [12, 128], sizes = [2, 128], strides = [1, 1]} : vector<16x256xf32> to vector<2x128xf32>
    %cst_125 = arith.constant dense<0.000000e+00> : vector<2x128xf32>
    %552 = tpu.matmul %545, %485, %cst_125 {dimension_numbers = #tpu.dot_dimension_numbers<[1], [0], [0], [1], [0, 0, 1, 1], [], []>} : vector<2x32xf32>, vector<32x128xf32>, vector<2x128xf32> -> vector<2x128xf32>
    %553 = arith.addf %551, %552 : vector<2x128xf32>
    %554 = vector.extract_strided_slice %550 {offsets = [0, 0], sizes = [2, 32], strides = [1, 1]} : vector<2x128xf32> to vector<2x32xf32>
    %555 = arith.negf %554 : vector<2x32xf32>
    %556 = math.exp %555 : vector<2x32xf32>
    %cst_126 = arith.constant 1.000000e+00 : f32
    %557 = vector.broadcast %cst_126 : f32 to vector<2x32xf32>
    %558 = arith.addf %557, %556 : vector<2x32xf32>
    %559 = arith.divf %557, %558 : vector<2x32xf32>
    %560 = vector.extract_strided_slice %550 {offsets = [0, 32], sizes = [2, 32], strides = [1, 1]} : vector<2x128xf32> to vector<2x32xf32>
    %561 = arith.negf %560 : vector<2x32xf32>
    %562 = math.exp %561 : vector<2x32xf32>
    %cst_127 = arith.constant 1.000000e+00 : f32
    %563 = vector.broadcast %cst_127 : f32 to vector<2x32xf32>
    %564 = arith.addf %563, %562 : vector<2x32xf32>
    %565 = arith.divf %563, %564 : vector<2x32xf32>
    %566 = vector.extract_strided_slice %550 {offsets = [0, 64], sizes = [2, 32], strides = [1, 1]} : vector<2x128xf32> to vector<2x32xf32>
    %567 = math.tanh %566 : vector<2x32xf32>
    %568 = vector.extract_strided_slice %550 {offsets = [0, 96], sizes = [2, 32], strides = [1, 1]} : vector<2x128xf32> to vector<2x32xf32>
    %569 = arith.negf %568 : vector<2x32xf32>
    %570 = math.exp %569 : vector<2x32xf32>
    %cst_128 = arith.constant 1.000000e+00 : f32
    %571 = vector.broadcast %cst_128 : f32 to vector<2x32xf32>
    %572 = arith.addf %571, %570 : vector<2x32xf32>
    %573 = arith.divf %571, %572 : vector<2x32xf32>
    %574 = arith.mulf %565, %518 : vector<2x32xf32>
    %575 = arith.mulf %559, %567 : vector<2x32xf32>
    %576 = arith.addf %574, %575 : vector<2x32xf32>
    %577 = math.tanh %576 : vector<2x32xf32>
    %578 = arith.mulf %573, %577 : vector<2x32xf32>
    %579 = vector.extract_strided_slice %553 {offsets = [0, 0], sizes = [2, 32], strides = [1, 1]} : vector<2x128xf32> to vector<2x32xf32>
    %580 = arith.negf %579 : vector<2x32xf32>
    %581 = math.exp %580 : vector<2x32xf32>
    %cst_129 = arith.constant 1.000000e+00 : f32
    %582 = vector.broadcast %cst_129 : f32 to vector<2x32xf32>
    %583 = arith.addf %582, %581 : vector<2x32xf32>
    %584 = arith.divf %582, %583 : vector<2x32xf32>
    %585 = vector.extract_strided_slice %553 {offsets = [0, 32], sizes = [2, 32], strides = [1, 1]} : vector<2x128xf32> to vector<2x32xf32>
    %586 = arith.negf %585 : vector<2x32xf32>
    %587 = math.exp %586 : vector<2x32xf32>
    %cst_130 = arith.constant 1.000000e+00 : f32
    %588 = vector.broadcast %cst_130 : f32 to vector<2x32xf32>
    %589 = arith.addf %588, %587 : vector<2x32xf32>
    %590 = arith.divf %588, %589 : vector<2x32xf32>
    %591 = vector.extract_strided_slice %553 {offsets = [0, 64], sizes = [2, 32], strides = [1, 1]} : vector<2x128xf32> to vector<2x32xf32>
    %592 = math.tanh %591 : vector<2x32xf32>
    %593 = vector.extract_strided_slice %553 {offsets = [0, 96], sizes = [2, 32], strides = [1, 1]} : vector<2x128xf32> to vector<2x32xf32>
    %594 = arith.negf %593 : vector<2x32xf32>
    %595 = math.exp %594 : vector<2x32xf32>
    %cst_131 = arith.constant 1.000000e+00 : f32
    %596 = vector.broadcast %cst_131 : f32 to vector<2x32xf32>
    %597 = arith.addf %596, %595 : vector<2x32xf32>
    %598 = arith.divf %596, %597 : vector<2x32xf32>
    %599 = arith.mulf %590, %543 : vector<2x32xf32>
    %600 = arith.mulf %584, %592 : vector<2x32xf32>
    %601 = arith.addf %599, %600 : vector<2x32xf32>
    %602 = math.tanh %601 : vector<2x32xf32>
    %603 = arith.mulf %598, %602 : vector<2x32xf32>
    %c2_132 = arith.constant 2 : index
    %c0_133 = arith.constant 0 : index
    %604 = vector.load %arg14[%c2_132, %c0_133] : memref<16x64xf32, #tpu.memory_space<vmem>>, vector<2x32xf32>
    tpu.vector_store %arg14[%c2_132, %c0_133], %578 {strides = array<i32>} : memref<16x64xf32, #tpu.memory_space<vmem>>, vector<2x32xf32>,
    %c12_134 = arith.constant 12 : index
    %c32_135 = arith.constant 32 : index
    %605 = vector.load %arg14[%c12_134, %c32_135] : memref<16x64xf32, #tpu.memory_space<vmem>>, vector<2x32xf32>
    tpu.vector_store %arg14[%c12_134, %c32_135], %603 {strides = array<i32>} : memref<16x64xf32, #tpu.memory_space<vmem>>, vector<2x32xf32>,
    %606 = vector.extract_strided_slice %483 {offsets = [4, 0], sizes = [2, 128], strides = [1, 1]} : vector<16x256xf32> to vector<2x128xf32>
    %cst_136 = arith.constant dense<0.000000e+00> : vector<2x128xf32>
    %607 = tpu.matmul %578, %484, %cst_136 {dimension_numbers = #tpu.dot_dimension_numbers<[1], [0], [0], [1], [0, 0, 1, 1], [], []>} : vector<2x32xf32>, vector<32x128xf32>, vector<2x128xf32> -> vector<2x128xf32>
    %608 = arith.addf %606, %607 : vector<2x128xf32>
    %609 = vector.extract_strided_slice %483 {offsets = [10, 128], sizes = [2, 128], strides = [1, 1]} : vector<16x256xf32> to vector<2x128xf32>
    %cst_137 = arith.constant dense<0.000000e+00> : vector<2x128xf32>
    %610 = tpu.matmul %603, %485, %cst_137 {dimension_numbers = #tpu.dot_dimension_numbers<[1], [0], [0], [1], [0, 0, 1, 1], [], []>} : vector<2x32xf32>, vector<32x128xf32>, vector<2x128xf32> -> vector<2x128xf32>
    %611 = arith.addf %609, %610 : vector<2x128xf32>
    %612 = vector.extract_strided_slice %608 {offsets = [0, 0], sizes = [2, 32], strides = [1, 1]} : vector<2x128xf32> to vector<2x32xf32>
    %613 = arith.negf %612 : vector<2x32xf32>
    %614 = math.exp %613 : vector<2x32xf32>
    %cst_138 = arith.constant 1.000000e+00 : f32
    %615 = vector.broadcast %cst_138 : f32 to vector<2x32xf32>
    %616 = arith.addf %615, %614 : vector<2x32xf32>
    %617 = arith.divf %615, %616 : vector<2x32xf32>
    %618 = vector.extract_strided_slice %608 {offsets = [0, 32], sizes = [2, 32], strides = [1, 1]} : vector<2x128xf32> to vector<2x32xf32>
    %619 = arith.negf %618 : vector<2x32xf32>
    %620 = math.exp %619 : vector<2x32xf32>
    %cst_139 = arith.constant 1.000000e+00 : f32
    %621 = vector.broadcast %cst_139 : f32 to vector<2x32xf32>
    %622 = arith.addf %621, %620 : vector<2x32xf32>
    %623 = arith.divf %621, %622 : vector<2x32xf32>
    %624 = vector.extract_strided_slice %608 {offsets = [0, 64], sizes = [2, 32], strides = [1, 1]} : vector<2x128xf32> to vector<2x32xf32>
    %625 = math.tanh %624 : vector<2x32xf32>
    %626 = vector.extract_strided_slice %608 {offsets = [0, 96], sizes = [2, 32], strides = [1, 1]} : vector<2x128xf32> to vector<2x32xf32>
    %627 = arith.negf %626 : vector<2x32xf32>
    %628 = math.exp %627 : vector<2x32xf32>
    %cst_140 = arith.constant 1.000000e+00 : f32
    %629 = vector.broadcast %cst_140 : f32 to vector<2x32xf32>
    %630 = arith.addf %629, %628 : vector<2x32xf32>
    %631 = arith.divf %629, %630 : vector<2x32xf32>
    %632 = arith.mulf %623, %576 : vector<2x32xf32>
    %633 = arith.mulf %617, %625 : vector<2x32xf32>
    %634 = arith.addf %632, %633 : vector<2x32xf32>
    %635 = math.tanh %634 : vector<2x32xf32>
    %636 = arith.mulf %631, %635 : vector<2x32xf32>
    %637 = vector.extract_strided_slice %611 {offsets = [0, 0], sizes = [2, 32], strides = [1, 1]} : vector<2x128xf32> to vector<2x32xf32>
    %638 = arith.negf %637 : vector<2x32xf32>
    %639 = math.exp %638 : vector<2x32xf32>
    %cst_141 = arith.constant 1.000000e+00 : f32
    %640 = vector.broadcast %cst_141 : f32 to vector<2x32xf32>
    %641 = arith.addf %640, %639 : vector<2x32xf32>
    %642 = arith.divf %640, %641 : vector<2x32xf32>
    %643 = vector.extract_strided_slice %611 {offsets = [0, 32], sizes = [2, 32], strides = [1, 1]} : vector<2x128xf32> to vector<2x32xf32>
    %644 = arith.negf %643 : vector<2x32xf32>
    %645 = math.exp %644 : vector<2x32xf32>
    %cst_142 = arith.constant 1.000000e+00 : f32
    %646 = vector.broadcast %cst_142 : f32 to vector<2x32xf32>
    %647 = arith.addf %646, %645 : vector<2x32xf32>
    %648 = arith.divf %646, %647 : vector<2x32xf32>
    %649 = vector.extract_strided_slice %611 {offsets = [0, 64], sizes = [2, 32], strides = [1, 1]} : vector<2x128xf32> to vector<2x32xf32>
    %650 = math.tanh %649 : vector<2x32xf32>
    %651 = vector.extract_strided_slice %611 {offsets = [0, 96], sizes = [2, 32], strides = [1, 1]} : vector<2x128xf32> to vector<2x32xf32>
    %652 = arith.negf %651 : vector<2x32xf32>
    %653 = math.exp %652 : vector<2x32xf32>
    %cst_143 = arith.constant 1.000000e+00 : f32
    %654 = vector.broadcast %cst_143 : f32 to vector<2x32xf32>
    %655 = arith.addf %654, %653 : vector<2x32xf32>
    %656 = arith.divf %654, %655 : vector<2x32xf32>
    %657 = arith.mulf %648, %601 : vector<2x32xf32>
    %658 = arith.mulf %642, %650 : vector<2x32xf32>
    %659 = arith.addf %657, %658 : vector<2x32xf32>
    %660 = math.tanh %659 : vector<2x32xf32>
    %661 = arith.mulf %656, %660 : vector<2x32xf32>
    %c4_144 = arith.constant 4 : index
    %c0_145 = arith.constant 0 : index
    %662 = vector.load %arg14[%c4_144, %c0_145] : memref<16x64xf32, #tpu.memory_space<vmem>>, vector<2x32xf32>
    tpu.vector_store %arg14[%c4_144, %c0_145], %636 {strides = array<i32>} : memref<16x64xf32, #tpu.memory_space<vmem>>, vector<2x32xf32>,
    %c10_146 = arith.constant 10 : index
    %c32_147 = arith.constant 32 : index
    %663 = vector.load %arg14[%c10_146, %c32_147] : memref<16x64xf32, #tpu.memory_space<vmem>>, vector<2x32xf32>
    tpu.vector_store %arg14[%c10_146, %c32_147], %661 {strides = array<i32>} : memref<16x64xf32, #tpu.memory_space<vmem>>, vector<2x32xf32>,
    %664 = vector.extract_strided_slice %483 {offsets = [6, 0], sizes = [2, 128], strides = [1, 1]} : vector<16x256xf32> to vector<2x128xf32>
    %cst_148 = arith.constant dense<0.000000e+00> : vector<2x128xf32>
    %665 = tpu.matmul %636, %484, %cst_148 {dimension_numbers = #tpu.dot_dimension_numbers<[1], [0], [0], [1], [0, 0, 1, 1], [], []>} : vector<2x32xf32>, vector<32x128xf32>, vector<2x128xf32> -> vector<2x128xf32>
    %666 = arith.addf %664, %665 : vector<2x128xf32>
    %667 = vector.extract_strided_slice %483 {offsets = [8, 128], sizes = [2, 128], strides = [1, 1]} : vector<16x256xf32> to vector<2x128xf32>
    %cst_149 = arith.constant dense<0.000000e+00> : vector<2x128xf32>
    %668 = tpu.matmul %661, %485, %cst_149 {dimension_numbers = #tpu.dot_dimension_numbers<[1], [0], [0], [1], [0, 0, 1, 1], [], []>} : vector<2x32xf32>, vector<32x128xf32>, vector<2x128xf32> -> vector<2x128xf32>
    %669 = arith.addf %667, %668 : vector<2x128xf32>
    %670 = vector.extract_strided_slice %666 {offsets = [0, 0], sizes = [2, 32], strides = [1, 1]} : vector<2x128xf32> to vector<2x32xf32>
    %671 = arith.negf %670 : vector<2x32xf32>
    %672 = math.exp %671 : vector<2x32xf32>
    %cst_150 = arith.constant 1.000000e+00 : f32
    %673 = vector.broadcast %cst_150 : f32 to vector<2x32xf32>
    %674 = arith.addf %673, %672 : vector<2x32xf32>
    %675 = arith.divf %673, %674 : vector<2x32xf32>
    %676 = vector.extract_strided_slice %666 {offsets = [0, 32], sizes = [2, 32], strides = [1, 1]} : vector<2x128xf32> to vector<2x32xf32>
    %677 = arith.negf %676 : vector<2x32xf32>
    %678 = math.exp %677 : vector<2x32xf32>
    %cst_151 = arith.constant 1.000000e+00 : f32
    %679 = vector.broadcast %cst_151 : f32 to vector<2x32xf32>
    %680 = arith.addf %679, %678 : vector<2x32xf32>
    %681 = arith.divf %679, %680 : vector<2x32xf32>
    %682 = vector.extract_strided_slice %666 {offsets = [0, 64], sizes = [2, 32], strides = [1, 1]} : vector<2x128xf32> to vector<2x32xf32>
    %683 = math.tanh %682 : vector<2x32xf32>
    %684 = vector.extract_strided_slice %666 {offsets = [0, 96], sizes = [2, 32], strides = [1, 1]} : vector<2x128xf32> to vector<2x32xf32>
    %685 = arith.negf %684 : vector<2x32xf32>
    %686 = math.exp %685 : vector<2x32xf32>
    %cst_152 = arith.constant 1.000000e+00 : f32
    %687 = vector.broadcast %cst_152 : f32 to vector<2x32xf32>
    %688 = arith.addf %687, %686 : vector<2x32xf32>
    %689 = arith.divf %687, %688 : vector<2x32xf32>
    %690 = arith.mulf %681, %634 : vector<2x32xf32>
    %691 = arith.mulf %675, %683 : vector<2x32xf32>
    %692 = arith.addf %690, %691 : vector<2x32xf32>
    %693 = math.tanh %692 : vector<2x32xf32>
    %694 = arith.mulf %689, %693 : vector<2x32xf32>
    %695 = vector.extract_strided_slice %669 {offsets = [0, 0], sizes = [2, 32], strides = [1, 1]} : vector<2x128xf32> to vector<2x32xf32>
    %696 = arith.negf %695 : vector<2x32xf32>
    %697 = math.exp %696 : vector<2x32xf32>
    %cst_153 = arith.constant 1.000000e+00 : f32
    %698 = vector.broadcast %cst_153 : f32 to vector<2x32xf32>
    %699 = arith.addf %698, %697 : vector<2x32xf32>
    %700 = arith.divf %698, %699 : vector<2x32xf32>
    %701 = vector.extract_strided_slice %669 {offsets = [0, 32], sizes = [2, 32], strides = [1, 1]} : vector<2x128xf32> to vector<2x32xf32>
    %702 = arith.negf %701 : vector<2x32xf32>
    %703 = math.exp %702 : vector<2x32xf32>
    %cst_154 = arith.constant 1.000000e+00 : f32
    %704 = vector.broadcast %cst_154 : f32 to vector<2x32xf32>
    %705 = arith.addf %704, %703 : vector<2x32xf32>
    %706 = arith.divf %704, %705 : vector<2x32xf32>
    %707 = vector.extract_strided_slice %669 {offsets = [0, 64], sizes = [2, 32], strides = [1, 1]} : vector<2x128xf32> to vector<2x32xf32>
    %708 = math.tanh %707 : vector<2x32xf32>
    %709 = vector.extract_strided_slice %669 {offsets = [0, 96], sizes = [2, 32], strides = [1, 1]} : vector<2x128xf32> to vector<2x32xf32>
    %710 = arith.negf %709 : vector<2x32xf32>
    %711 = math.exp %710 : vector<2x32xf32>
    %cst_155 = arith.constant 1.000000e+00 : f32
    %712 = vector.broadcast %cst_155 : f32 to vector<2x32xf32>
    %713 = arith.addf %712, %711 : vector<2x32xf32>
    %714 = arith.divf %712, %713 : vector<2x32xf32>
    %715 = arith.mulf %706, %659 : vector<2x32xf32>
    %716 = arith.mulf %700, %708 : vector<2x32xf32>
    %717 = arith.addf %715, %716 : vector<2x32xf32>
    %718 = math.tanh %717 : vector<2x32xf32>
    %719 = arith.mulf %714, %718 : vector<2x32xf32>
    %c6_156 = arith.constant 6 : index
    %c0_157 = arith.constant 0 : index
    %720 = vector.load %arg14[%c6_156, %c0_157] : memref<16x64xf32, #tpu.memory_space<vmem>>, vector<2x32xf32>
    tpu.vector_store %arg14[%c6_156, %c0_157], %694 {strides = array<i32>} : memref<16x64xf32, #tpu.memory_space<vmem>>, vector<2x32xf32>,
    %c8_158 = arith.constant 8 : index
    %c32_159 = arith.constant 32 : index
    %721 = vector.load %arg14[%c8_158, %c32_159] : memref<16x64xf32, #tpu.memory_space<vmem>>, vector<2x32xf32>
    tpu.vector_store %arg14[%c8_158, %c32_159], %719 {strides = array<i32>} : memref<16x64xf32, #tpu.memory_space<vmem>>, vector<2x32xf32>,
    %722 = vector.extract_strided_slice %483 {offsets = [8, 0], sizes = [2, 128], strides = [1, 1]} : vector<16x256xf32> to vector<2x128xf32>
    %cst_160 = arith.constant dense<0.000000e+00> : vector<2x128xf32>
    %723 = tpu.matmul %694, %484, %cst_160 {dimension_numbers = #tpu.dot_dimension_numbers<[1], [0], [0], [1], [0, 0, 1, 1], [], []>} : vector<2x32xf32>, vector<32x128xf32>, vector<2x128xf32> -> vector<2x128xf32>
    %724 = arith.addf %722, %723 : vector<2x128xf32>
    %725 = vector.extract_strided_slice %483 {offsets = [6, 128], sizes = [2, 128], strides = [1, 1]} : vector<16x256xf32> to vector<2x128xf32>
    %cst_161 = arith.constant dense<0.000000e+00> : vector<2x128xf32>
    %726 = tpu.matmul %719, %485, %cst_161 {dimension_numbers = #tpu.dot_dimension_numbers<[1], [0], [0], [1], [0, 0, 1, 1], [], []>} : vector<2x32xf32>, vector<32x128xf32>, vector<2x128xf32> -> vector<2x128xf32>
    %727 = arith.addf %725, %726 : vector<2x128xf32>
    %728 = vector.extract_strided_slice %724 {offsets = [0, 0], sizes = [2, 32], strides = [1, 1]} : vector<2x128xf32> to vector<2x32xf32>
    %729 = arith.negf %728 : vector<2x32xf32>
    %730 = math.exp %729 : vector<2x32xf32>
    %cst_162 = arith.constant 1.000000e+00 : f32
    %731 = vector.broadcast %cst_162 : f32 to vector<2x32xf32>
    %732 = arith.addf %731, %730 : vector<2x32xf32>
    %733 = arith.divf %731, %732 : vector<2x32xf32>
    %734 = vector.extract_strided_slice %724 {offsets = [0, 32], sizes = [2, 32], strides = [1, 1]} : vector<2x128xf32> to vector<2x32xf32>
    %735 = arith.negf %734 : vector<2x32xf32>
    %736 = math.exp %735 : vector<2x32xf32>
    %cst_163 = arith.constant 1.000000e+00 : f32
    %737 = vector.broadcast %cst_163 : f32 to vector<2x32xf32>
    %738 = arith.addf %737, %736 : vector<2x32xf32>
    %739 = arith.divf %737, %738 : vector<2x32xf32>
    %740 = vector.extract_strided_slice %724 {offsets = [0, 64], sizes = [2, 32], strides = [1, 1]} : vector<2x128xf32> to vector<2x32xf32>
    %741 = math.tanh %740 : vector<2x32xf32>
    %742 = vector.extract_strided_slice %724 {offsets = [0, 96], sizes = [2, 32], strides = [1, 1]} : vector<2x128xf32> to vector<2x32xf32>
    %743 = arith.negf %742 : vector<2x32xf32>
    %744 = math.exp %743 : vector<2x32xf32>
    %cst_164 = arith.constant 1.000000e+00 : f32
    %745 = vector.broadcast %cst_164 : f32 to vector<2x32xf32>
    %746 = arith.addf %745, %744 : vector<2x32xf32>
    %747 = arith.divf %745, %746 : vector<2x32xf32>
    %748 = arith.mulf %739, %692 : vector<2x32xf32>
    %749 = arith.mulf %733, %741 : vector<2x32xf32>
    %750 = arith.addf %748, %749 : vector<2x32xf32>
    %751 = math.tanh %750 : vector<2x32xf32>
    %752 = arith.mulf %747, %751 : vector<2x32xf32>
    %753 = vector.extract_strided_slice %727 {offsets = [0, 0], sizes = [2, 32], strides = [1, 1]} : vector<2x128xf32> to vector<2x32xf32>
    %754 = arith.negf %753 : vector<2x32xf32>
    %755 = math.exp %754 : vector<2x32xf32>
    %cst_165 = arith.constant 1.000000e+00 : f32
    %756 = vector.broadcast %cst_165 : f32 to vector<2x32xf32>
    %757 = arith.addf %756, %755 : vector<2x32xf32>
    %758 = arith.divf %756, %757 : vector<2x32xf32>
    %759 = vector.extract_strided_slice %727 {offsets = [0, 32], sizes = [2, 32], strides = [1, 1]} : vector<2x128xf32> to vector<2x32xf32>
    %760 = arith.negf %759 : vector<2x32xf32>
    %761 = math.exp %760 : vector<2x32xf32>
    %cst_166 = arith.constant 1.000000e+00 : f32
    %762 = vector.broadcast %cst_166 : f32 to vector<2x32xf32>
    %763 = arith.addf %762, %761 : vector<2x32xf32>
    %764 = arith.divf %762, %763 : vector<2x32xf32>
    %765 = vector.extract_strided_slice %727 {offsets = [0, 64], sizes = [2, 32], strides = [1, 1]} : vector<2x128xf32> to vector<2x32xf32>
    %766 = math.tanh %765 : vector<2x32xf32>
    %767 = vector.extract_strided_slice %727 {offsets = [0, 96], sizes = [2, 32], strides = [1, 1]} : vector<2x128xf32> to vector<2x32xf32>
    %768 = arith.negf %767 : vector<2x32xf32>
    %769 = math.exp %768 : vector<2x32xf32>
    %cst_167 = arith.constant 1.000000e+00 : f32
    %770 = vector.broadcast %cst_167 : f32 to vector<2x32xf32>
    %771 = arith.addf %770, %769 : vector<2x32xf32>
    %772 = arith.divf %770, %771 : vector<2x32xf32>
    %773 = arith.mulf %764, %717 : vector<2x32xf32>
    %774 = arith.mulf %758, %766 : vector<2x32xf32>
    %775 = arith.addf %773, %774 : vector<2x32xf32>
    %776 = math.tanh %775 : vector<2x32xf32>
    %777 = arith.mulf %772, %776 : vector<2x32xf32>
    %c8_168 = arith.constant 8 : index
    %c0_169 = arith.constant 0 : index
    %778 = vector.load %arg14[%c8_168, %c0_169] : memref<16x64xf32, #tpu.memory_space<vmem>>, vector<2x32xf32>
    tpu.vector_store %arg14[%c8_168, %c0_169], %752 {strides = array<i32>} : memref<16x64xf32, #tpu.memory_space<vmem>>, vector<2x32xf32>,
    %c6_170 = arith.constant 6 : index
    %c32_171 = arith.constant 32 : index
    %779 = vector.load %arg14[%c6_170, %c32_171] : memref<16x64xf32, #tpu.memory_space<vmem>>, vector<2x32xf32>
    tpu.vector_store %arg14[%c6_170, %c32_171], %777 {strides = array<i32>} : memref<16x64xf32, #tpu.memory_space<vmem>>, vector<2x32xf32>,
    %780 = vector.extract_strided_slice %483 {offsets = [10, 0], sizes = [2, 128], strides = [1, 1]} : vector<16x256xf32> to vector<2x128xf32>
    %cst_172 = arith.constant dense<0.000000e+00> : vector<2x128xf32>
    %781 = tpu.matmul %752, %484, %cst_172 {dimension_numbers = #tpu.dot_dimension_numbers<[1], [0], [0], [1], [0, 0, 1, 1], [], []>} : vector<2x32xf32>, vector<32x128xf32>, vector<2x128xf32> -> vector<2x128xf32>
    %782 = arith.addf %780, %781 : vector<2x128xf32>
    %783 = vector.extract_strided_slice %483 {offsets = [4, 128], sizes = [2, 128], strides = [1, 1]} : vector<16x256xf32> to vector<2x128xf32>
    %cst_173 = arith.constant dense<0.000000e+00> : vector<2x128xf32>
    %784 = tpu.matmul %777, %485, %cst_173 {dimension_numbers = #tpu.dot_dimension_numbers<[1], [0], [0], [1], [0, 0, 1, 1], [], []>} : vector<2x32xf32>, vector<32x128xf32>, vector<2x128xf32> -> vector<2x128xf32>
    %785 = arith.addf %783, %784 : vector<2x128xf32>
    %786 = vector.extract_strided_slice %782 {offsets = [0, 0], sizes = [2, 32], strides = [1, 1]} : vector<2x128xf32> to vector<2x32xf32>
    %787 = arith.negf %786 : vector<2x32xf32>
    %788 = math.exp %787 : vector<2x32xf32>
    %cst_174 = arith.constant 1.000000e+00 : f32
    %789 = vector.broadcast %cst_174 : f32 to vector<2x32xf32>
    %790 = arith.addf %789, %788 : vector<2x32xf32>
    %791 = arith.divf %789, %790 : vector<2x32xf32>
    %792 = vector.extract_strided_slice %782 {offsets = [0, 32], sizes = [2, 32], strides = [1, 1]} : vector<2x128xf32> to vector<2x32xf32>
    %793 = arith.negf %792 : vector<2x32xf32>
    %794 = math.exp %793 : vector<2x32xf32>
    %cst_175 = arith.constant 1.000000e+00 : f32
    %795 = vector.broadcast %cst_175 : f32 to vector<2x32xf32>
    %796 = arith.addf %795, %794 : vector<2x32xf32>
    %797 = arith.divf %795, %796 : vector<2x32xf32>
    %798 = vector.extract_strided_slice %782 {offsets = [0, 64], sizes = [2, 32], strides = [1, 1]} : vector<2x128xf32> to vector<2x32xf32>
    %799 = math.tanh %798 : vector<2x32xf32>
    %800 = vector.extract_strided_slice %782 {offsets = [0, 96], sizes = [2, 32], strides = [1, 1]} : vector<2x128xf32> to vector<2x32xf32>
    %801 = arith.negf %800 : vector<2x32xf32>
    %802 = math.exp %801 : vector<2x32xf32>
    %cst_176 = arith.constant 1.000000e+00 : f32
    %803 = vector.broadcast %cst_176 : f32 to vector<2x32xf32>
    %804 = arith.addf %803, %802 : vector<2x32xf32>
    %805 = arith.divf %803, %804 : vector<2x32xf32>
    %806 = arith.mulf %797, %750 : vector<2x32xf32>
    %807 = arith.mulf %791, %799 : vector<2x32xf32>
    %808 = arith.addf %806, %807 : vector<2x32xf32>
    %809 = math.tanh %808 : vector<2x32xf32>
    %810 = arith.mulf %805, %809 : vector<2x32xf32>
    %811 = vector.extract_strided_slice %785 {offsets = [0, 0], sizes = [2, 32], strides = [1, 1]} : vector<2x128xf32> to vector<2x32xf32>
    %812 = arith.negf %811 : vector<2x32xf32>
    %813 = math.exp %812 : vector<2x32xf32>
    %cst_177 = arith.constant 1.000000e+00 : f32
    %814 = vector.broadcast %cst_177 : f32 to vector<2x32xf32>
    %815 = arith.addf %814, %813 : vector<2x32xf32>
    %816 = arith.divf %814, %815 : vector<2x32xf32>
    %817 = vector.extract_strided_slice %785 {offsets = [0, 32], sizes = [2, 32], strides = [1, 1]} : vector<2x128xf32> to vector<2x32xf32>
    %818 = arith.negf %817 : vector<2x32xf32>
    %819 = math.exp %818 : vector<2x32xf32>
    %cst_178 = arith.constant 1.000000e+00 : f32
    %820 = vector.broadcast %cst_178 : f32 to vector<2x32xf32>
    %821 = arith.addf %820, %819 : vector<2x32xf32>
    %822 = arith.divf %820, %821 : vector<2x32xf32>
    %823 = vector.extract_strided_slice %785 {offsets = [0, 64], sizes = [2, 32], strides = [1, 1]} : vector<2x128xf32> to vector<2x32xf32>
    %824 = math.tanh %823 : vector<2x32xf32>
    %825 = vector.extract_strided_slice %785 {offsets = [0, 96], sizes = [2, 32], strides = [1, 1]} : vector<2x128xf32> to vector<2x32xf32>
    %826 = arith.negf %825 : vector<2x32xf32>
    %827 = math.exp %826 : vector<2x32xf32>
    %cst_179 = arith.constant 1.000000e+00 : f32
    %828 = vector.broadcast %cst_179 : f32 to vector<2x32xf32>
    %829 = arith.addf %828, %827 : vector<2x32xf32>
    %830 = arith.divf %828, %829 : vector<2x32xf32>
    %831 = arith.mulf %822, %775 : vector<2x32xf32>
    %832 = arith.mulf %816, %824 : vector<2x32xf32>
    %833 = arith.addf %831, %832 : vector<2x32xf32>
    %834 = math.tanh %833 : vector<2x32xf32>
    %835 = arith.mulf %830, %834 : vector<2x32xf32>
    %c10_180 = arith.constant 10 : index
    %c0_181 = arith.constant 0 : index
    %836 = vector.load %arg14[%c10_180, %c0_181] : memref<16x64xf32, #tpu.memory_space<vmem>>, vector<2x32xf32>
    tpu.vector_store %arg14[%c10_180, %c0_181], %810 {strides = array<i32>} : memref<16x64xf32, #tpu.memory_space<vmem>>, vector<2x32xf32>,
    %c4_182 = arith.constant 4 : index
    %c32_183 = arith.constant 32 : index
    %837 = vector.load %arg14[%c4_182, %c32_183] : memref<16x64xf32, #tpu.memory_space<vmem>>, vector<2x32xf32>
    tpu.vector_store %arg14[%c4_182, %c32_183], %835 {strides = array<i32>} : memref<16x64xf32, #tpu.memory_space<vmem>>, vector<2x32xf32>,
    %838 = vector.extract_strided_slice %483 {offsets = [12, 0], sizes = [2, 128], strides = [1, 1]} : vector<16x256xf32> to vector<2x128xf32>
    %cst_184 = arith.constant dense<0.000000e+00> : vector<2x128xf32>
    %839 = tpu.matmul %810, %484, %cst_184 {dimension_numbers = #tpu.dot_dimension_numbers<[1], [0], [0], [1], [0, 0, 1, 1], [], []>} : vector<2x32xf32>, vector<32x128xf32>, vector<2x128xf32> -> vector<2x128xf32>
    %840 = arith.addf %838, %839 : vector<2x128xf32>
    %841 = vector.extract_strided_slice %483 {offsets = [2, 128], sizes = [2, 128], strides = [1, 1]} : vector<16x256xf32> to vector<2x128xf32>
    %cst_185 = arith.constant dense<0.000000e+00> : vector<2x128xf32>
    %842 = tpu.matmul %835, %485, %cst_185 {dimension_numbers = #tpu.dot_dimension_numbers<[1], [0], [0], [1], [0, 0, 1, 1], [], []>} : vector<2x32xf32>, vector<32x128xf32>, vector<2x128xf32> -> vector<2x128xf32>
    %843 = arith.addf %841, %842 : vector<2x128xf32>
    %844 = vector.extract_strided_slice %840 {offsets = [0, 0], sizes = [2, 32], strides = [1, 1]} : vector<2x128xf32> to vector<2x32xf32>
    %845 = arith.negf %844 : vector<2x32xf32>
    %846 = math.exp %845 : vector<2x32xf32>
    %cst_186 = arith.constant 1.000000e+00 : f32
    %847 = vector.broadcast %cst_186 : f32 to vector<2x32xf32>
    %848 = arith.addf %847, %846 : vector<2x32xf32>
    %849 = arith.divf %847, %848 : vector<2x32xf32>
    %850 = vector.extract_strided_slice %840 {offsets = [0, 32], sizes = [2, 32], strides = [1, 1]} : vector<2x128xf32> to vector<2x32xf32>
    %851 = arith.negf %850 : vector<2x32xf32>
    %852 = math.exp %851 : vector<2x32xf32>
    %cst_187 = arith.constant 1.000000e+00 : f32
    %853 = vector.broadcast %cst_187 : f32 to vector<2x32xf32>
    %854 = arith.addf %853, %852 : vector<2x32xf32>
    %855 = arith.divf %853, %854 : vector<2x32xf32>
    %856 = vector.extract_strided_slice %840 {offsets = [0, 64], sizes = [2, 32], strides = [1, 1]} : vector<2x128xf32> to vector<2x32xf32>
    %857 = math.tanh %856 : vector<2x32xf32>
    %858 = vector.extract_strided_slice %840 {offsets = [0, 96], sizes = [2, 32], strides = [1, 1]} : vector<2x128xf32> to vector<2x32xf32>
    %859 = arith.negf %858 : vector<2x32xf32>
    %860 = math.exp %859 : vector<2x32xf32>
    %cst_188 = arith.constant 1.000000e+00 : f32
    %861 = vector.broadcast %cst_188 : f32 to vector<2x32xf32>
    %862 = arith.addf %861, %860 : vector<2x32xf32>
    %863 = arith.divf %861, %862 : vector<2x32xf32>
    %864 = arith.mulf %855, %808 : vector<2x32xf32>
    %865 = arith.mulf %849, %857 : vector<2x32xf32>
    %866 = arith.addf %864, %865 : vector<2x32xf32>
    %867 = math.tanh %866 : vector<2x32xf32>
    %868 = arith.mulf %863, %867 : vector<2x32xf32>
    %869 = vector.extract_strided_slice %843 {offsets = [0, 0], sizes = [2, 32], strides = [1, 1]} : vector<2x128xf32> to vector<2x32xf32>
    %870 = arith.negf %869 : vector<2x32xf32>
    %871 = math.exp %870 : vector<2x32xf32>
    %cst_189 = arith.constant 1.000000e+00 : f32
    %872 = vector.broadcast %cst_189 : f32 to vector<2x32xf32>
    %873 = arith.addf %872, %871 : vector<2x32xf32>
    %874 = arith.divf %872, %873 : vector<2x32xf32>
    %875 = vector.extract_strided_slice %843 {offsets = [0, 32], sizes = [2, 32], strides = [1, 1]} : vector<2x128xf32> to vector<2x32xf32>
    %876 = arith.negf %875 : vector<2x32xf32>
    %877 = math.exp %876 : vector<2x32xf32>
    %cst_190 = arith.constant 1.000000e+00 : f32
    %878 = vector.broadcast %cst_190 : f32 to vector<2x32xf32>
    %879 = arith.addf %878, %877 : vector<2x32xf32>
    %880 = arith.divf %878, %879 : vector<2x32xf32>
    %881 = vector.extract_strided_slice %843 {offsets = [0, 64], sizes = [2, 32], strides = [1, 1]} : vector<2x128xf32> to vector<2x32xf32>
    %882 = math.tanh %881 : vector<2x32xf32>
    %883 = vector.extract_strided_slice %843 {offsets = [0, 96], sizes = [2, 32], strides = [1, 1]} : vector<2x128xf32> to vector<2x32xf32>
    %884 = arith.negf %883 : vector<2x32xf32>
    %885 = math.exp %884 : vector<2x32xf32>
    %cst_191 = arith.constant 1.000000e+00 : f32
    %886 = vector.broadcast %cst_191 : f32 to vector<2x32xf32>
    %887 = arith.addf %886, %885 : vector<2x32xf32>
    %888 = arith.divf %886, %887 : vector<2x32xf32>
    %889 = arith.mulf %880, %833 : vector<2x32xf32>
    %890 = arith.mulf %874, %882 : vector<2x32xf32>
    %891 = arith.addf %889, %890 : vector<2x32xf32>
    %892 = math.tanh %891 : vector<2x32xf32>
    %893 = arith.mulf %888, %892 : vector<2x32xf32>
    %c12_192 = arith.constant 12 : index
    %c0_193 = arith.constant 0 : index
    %894 = vector.load %arg14[%c12_192, %c0_193] : memref<16x64xf32, #tpu.memory_space<vmem>>, vector<2x32xf32>
    tpu.vector_store %arg14[%c12_192, %c0_193], %868 {strides = array<i32>} : memref<16x64xf32, #tpu.memory_space<vmem>>, vector<2x32xf32>,
    %c2_194 = arith.constant 2 : index
    %c32_195 = arith.constant 32 : index
    %895 = vector.load %arg14[%c2_194, %c32_195] : memref<16x64xf32, #tpu.memory_space<vmem>>, vector<2x32xf32>
    tpu.vector_store %arg14[%c2_194, %c32_195], %893 {strides = array<i32>} : memref<16x64xf32, #tpu.memory_space<vmem>>, vector<2x32xf32>,
    %896 = vector.extract_strided_slice %483 {offsets = [14, 0], sizes = [2, 128], strides = [1, 1]} : vector<16x256xf32> to vector<2x128xf32>
    %cst_196 = arith.constant dense<0.000000e+00> : vector<2x128xf32>
    %897 = tpu.matmul %868, %484, %cst_196 {dimension_numbers = #tpu.dot_dimension_numbers<[1], [0], [0], [1], [0, 0, 1, 1], [], []>} : vector<2x32xf32>, vector<32x128xf32>, vector<2x128xf32> -> vector<2x128xf32>
    %898 = arith.addf %896, %897 : vector<2x128xf32>
    %899 = vector.extract_strided_slice %483 {offsets = [0, 128], sizes = [2, 128], strides = [1, 1]} : vector<16x256xf32> to vector<2x128xf32>
    %cst_197 = arith.constant dense<0.000000e+00> : vector<2x128xf32>
    %900 = tpu.matmul %893, %485, %cst_197 {dimension_numbers = #tpu.dot_dimension_numbers<[1], [0], [0], [1], [0, 0, 1, 1], [], []>} : vector<2x32xf32>, vector<32x128xf32>, vector<2x128xf32> -> vector<2x128xf32>
    %901 = arith.addf %899, %900 : vector<2x128xf32>
    %902 = vector.extract_strided_slice %898 {offsets = [0, 0], sizes = [2, 32], strides = [1, 1]} : vector<2x128xf32> to vector<2x32xf32>
    %903 = arith.negf %902 : vector<2x32xf32>
    %904 = math.exp %903 : vector<2x32xf32>
    %cst_198 = arith.constant 1.000000e+00 : f32
    %905 = vector.broadcast %cst_198 : f32 to vector<2x32xf32>
    %906 = arith.addf %905, %904 : vector<2x32xf32>
    %907 = arith.divf %905, %906 : vector<2x32xf32>
    %908 = vector.extract_strided_slice %898 {offsets = [0, 32], sizes = [2, 32], strides = [1, 1]} : vector<2x128xf32> to vector<2x32xf32>
    %909 = arith.negf %908 : vector<2x32xf32>
    %910 = math.exp %909 : vector<2x32xf32>
    %cst_199 = arith.constant 1.000000e+00 : f32
    %911 = vector.broadcast %cst_199 : f32 to vector<2x32xf32>
    %912 = arith.addf %911, %910 : vector<2x32xf32>
    %913 = arith.divf %911, %912 : vector<2x32xf32>
    %914 = vector.extract_strided_slice %898 {offsets = [0, 64], sizes = [2, 32], strides = [1, 1]} : vector<2x128xf32> to vector<2x32xf32>
    %915 = math.tanh %914 : vector<2x32xf32>
    %916 = vector.extract_strided_slice %898 {offsets = [0, 96], sizes = [2, 32], strides = [1, 1]} : vector<2x128xf32> to vector<2x32xf32>
    %917 = arith.negf %916 : vector<2x32xf32>
    %918 = math.exp %917 : vector<2x32xf32>
    %cst_200 = arith.constant 1.000000e+00 : f32
    %919 = vector.broadcast %cst_200 : f32 to vector<2x32xf32>
    %920 = arith.addf %919, %918 : vector<2x32xf32>
    %921 = arith.divf %919, %920 : vector<2x32xf32>
    %922 = arith.mulf %913, %866 : vector<2x32xf32>
    %923 = arith.mulf %907, %915 : vector<2x32xf32>
    %924 = arith.addf %922, %923 : vector<2x32xf32>
    %925 = math.tanh %924 : vector<2x32xf32>
    %926 = arith.mulf %921, %925 : vector<2x32xf32>
    %927 = vector.extract_strided_slice %901 {offsets = [0, 0], sizes = [2, 32], strides = [1, 1]} : vector<2x128xf32> to vector<2x32xf32>
    %928 = arith.negf %927 : vector<2x32xf32>
    %929 = math.exp %928 : vector<2x32xf32>
    %cst_201 = arith.constant 1.000000e+00 : f32
    %930 = vector.broadcast %cst_201 : f32 to vector<2x32xf32>
    %931 = arith.addf %930, %929 : vector<2x32xf32>
    %932 = arith.divf %930, %931 : vector<2x32xf32>
    %933 = vector.extract_strided_slice %901 {offsets = [0, 32], sizes = [2, 32], strides = [1, 1]} : vector<2x128xf32> to vector<2x32xf32>
    %934 = arith.negf %933 : vector<2x32xf32>
    %935 = math.exp %934 : vector<2x32xf32>
    %cst_202 = arith.constant 1.000000e+00 : f32
    %936 = vector.broadcast %cst_202 : f32 to vector<2x32xf32>
    %937 = arith.addf %936, %935 : vector<2x32xf32>
    %938 = arith.divf %936, %937 : vector<2x32xf32>
    %939 = vector.extract_strided_slice %901 {offsets = [0, 64], sizes = [2, 32], strides = [1, 1]} : vector<2x128xf32> to vector<2x32xf32>
    %940 = math.tanh %939 : vector<2x32xf32>
    %941 = vector.extract_strided_slice %901 {offsets = [0, 96], sizes = [2, 32], strides = [1, 1]} : vector<2x128xf32> to vector<2x32xf32>
    %942 = arith.negf %941 : vector<2x32xf32>
    %943 = math.exp %942 : vector<2x32xf32>
    %cst_203 = arith.constant 1.000000e+00 : f32
    %944 = vector.broadcast %cst_203 : f32 to vector<2x32xf32>
    %945 = arith.addf %944, %943 : vector<2x32xf32>
    %946 = arith.divf %944, %945 : vector<2x32xf32>
    %947 = arith.mulf %938, %891 : vector<2x32xf32>
    %948 = arith.mulf %932, %940 : vector<2x32xf32>
    %949 = arith.addf %947, %948 : vector<2x32xf32>
    %950 = math.tanh %949 : vector<2x32xf32>
    %951 = arith.mulf %946, %950 : vector<2x32xf32>
    %c14_204 = arith.constant 14 : index
    %c0_205 = arith.constant 0 : index
    %952 = vector.load %arg14[%c14_204, %c0_205] : memref<16x64xf32, #tpu.memory_space<vmem>>, vector<2x32xf32>
    tpu.vector_store %arg14[%c14_204, %c0_205], %926 {strides = array<i32>} : memref<16x64xf32, #tpu.memory_space<vmem>>, vector<2x32xf32>,
    %c0_206 = arith.constant 0 : index
    %c32_207 = arith.constant 32 : index
    %953 = vector.load %arg14[%c0_206, %c32_207] : memref<16x64xf32, #tpu.memory_space<vmem>>, vector<2x32xf32>
    tpu.vector_store %arg14[%c0_206, %c32_207], %951 {strides = array<i32>} : memref<16x64xf32, #tpu.memory_space<vmem>>, vector<2x32xf32>,
    %c0_208 = arith.constant 0 : index
    %c0_209 = arith.constant 0 : index
    %954 = vector.load %arg14[%c0_208, %c0_209] : memref<16x64xf32, #tpu.memory_space<vmem>>, vector<16x64xf32>
    %c0_210 = arith.constant 0 : index
    %c0_211 = arith.constant 0 : index
    %955 = vector.load %arg7[%c0_210, %c0_211] : memref<64x256xf32, #tpu.memory_space<vmem>>, vector<64x256xf32>
    %c0_212 = arith.constant 0 : index
    %c0_213 = arith.constant 0 : index
    %956 = vector.load %arg8[%c0_212, %c0_213] : memref<32x256xf32, #tpu.memory_space<vmem>>, vector<32x256xf32>
    %c0_214 = arith.constant 0 : index
    %c0_215 = arith.constant 0 : index
    %957 = vector.load %arg9[%c0_214, %c0_215] : memref<1x256xf32, #tpu.memory_space<vmem>>, vector<1x256xf32>
    %cst_216 = arith.constant dense<0.000000e+00> : vector<16x256xf32>
    %958 = tpu.matmul %954, %955, %cst_216 {dimension_numbers = #tpu.dot_dimension_numbers<[1], [0], [0], [1], [0, 0, 1, 1], [], []>} : vector<16x64xf32>, vector<64x256xf32>, vector<16x256xf32> -> vector<16x256xf32>
    %959 = vector.broadcast %957 : vector<1x256xf32> to vector<16x256xf32>
    %960 = arith.addf %958, %959 : vector<16x256xf32>
    %961 = vector.extract_strided_slice %956 {offsets = [0, 0], sizes = [32, 128], strides = [1, 1]} : vector<32x256xf32> to vector<32x128xf32>
    %962 = vector.extract_strided_slice %956 {offsets = [0, 128], sizes = [32, 128], strides = [1, 1]} : vector<32x256xf32> to vector<32x128xf32>
    %cst_217 = arith.constant 0.000000e+00 : f32
    %963 = vector.broadcast %cst_217 : f32 to vector<2x32xf32>
    %cst_218 = arith.constant 0.000000e+00 : f32
    %964 = vector.broadcast %cst_218 : f32 to vector<2x32xf32>
    %cst_219 = arith.constant 0.000000e+00 : f32
    %965 = vector.broadcast %cst_219 : f32 to vector<2x32xf32>
    %cst_220 = arith.constant 0.000000e+00 : f32
    %966 = vector.broadcast %cst_220 : f32 to vector<2x32xf32>
    %967 = vector.extract_strided_slice %960 {offsets = [0, 0], sizes = [2, 128], strides = [1, 1]} : vector<16x256xf32> to vector<2x128xf32>
    %cst_221 = arith.constant dense<0.000000e+00> : vector<2x128xf32>
    %968 = tpu.matmul %963, %961, %cst_221 {dimension_numbers = #tpu.dot_dimension_numbers<[1], [0], [0], [1], [0, 0, 1, 1], [], []>} : vector<2x32xf32>, vector<32x128xf32>, vector<2x128xf32> -> vector<2x128xf32>
    %969 = arith.addf %967, %968 : vector<2x128xf32>
    %970 = vector.extract_strided_slice %960 {offsets = [14, 128], sizes = [2, 128], strides = [1, 1]} : vector<16x256xf32> to vector<2x128xf32>
    %cst_222 = arith.constant dense<0.000000e+00> : vector<2x128xf32>
    %971 = tpu.matmul %965, %962, %cst_222 {dimension_numbers = #tpu.dot_dimension_numbers<[1], [0], [0], [1], [0, 0, 1, 1], [], []>} : vector<2x32xf32>, vector<32x128xf32>, vector<2x128xf32> -> vector<2x128xf32>
    %972 = arith.addf %970, %971 : vector<2x128xf32>
    %973 = vector.extract_strided_slice %969 {offsets = [0, 0], sizes = [2, 32], strides = [1, 1]} : vector<2x128xf32> to vector<2x32xf32>
    %974 = arith.negf %973 : vector<2x32xf32>
    %975 = math.exp %974 : vector<2x32xf32>
    %cst_223 = arith.constant 1.000000e+00 : f32
    %976 = vector.broadcast %cst_223 : f32 to vector<2x32xf32>
    %977 = arith.addf %976, %975 : vector<2x32xf32>
    %978 = arith.divf %976, %977 : vector<2x32xf32>
    %979 = vector.extract_strided_slice %969 {offsets = [0, 32], sizes = [2, 32], strides = [1, 1]} : vector<2x128xf32> to vector<2x32xf32>
    %980 = arith.negf %979 : vector<2x32xf32>
    %981 = math.exp %980 : vector<2x32xf32>
    %cst_224 = arith.constant 1.000000e+00 : f32
    %982 = vector.broadcast %cst_224 : f32 to vector<2x32xf32>
    %983 = arith.addf %982, %981 : vector<2x32xf32>
    %984 = arith.divf %982, %983 : vector<2x32xf32>
    %985 = vector.extract_strided_slice %969 {offsets = [0, 64], sizes = [2, 32], strides = [1, 1]} : vector<2x128xf32> to vector<2x32xf32>
    %986 = math.tanh %985 : vector<2x32xf32>
    %987 = vector.extract_strided_slice %969 {offsets = [0, 96], sizes = [2, 32], strides = [1, 1]} : vector<2x128xf32> to vector<2x32xf32>
    %988 = arith.negf %987 : vector<2x32xf32>
    %989 = math.exp %988 : vector<2x32xf32>
    %cst_225 = arith.constant 1.000000e+00 : f32
    %990 = vector.broadcast %cst_225 : f32 to vector<2x32xf32>
    %991 = arith.addf %990, %989 : vector<2x32xf32>
    %992 = arith.divf %990, %991 : vector<2x32xf32>
    %993 = arith.mulf %984, %964 : vector<2x32xf32>
    %994 = arith.mulf %978, %986 : vector<2x32xf32>
    %995 = arith.addf %993, %994 : vector<2x32xf32>
    %996 = math.tanh %995 : vector<2x32xf32>
    %997 = arith.mulf %992, %996 : vector<2x32xf32>
    %998 = vector.extract_strided_slice %972 {offsets = [0, 0], sizes = [2, 32], strides = [1, 1]} : vector<2x128xf32> to vector<2x32xf32>
    %999 = arith.negf %998 : vector<2x32xf32>
    %1000 = math.exp %999 : vector<2x32xf32>
    %cst_226 = arith.constant 1.000000e+00 : f32
    %1001 = vector.broadcast %cst_226 : f32 to vector<2x32xf32>
    %1002 = arith.addf %1001, %1000 : vector<2x32xf32>
    %1003 = arith.divf %1001, %1002 : vector<2x32xf32>
    %1004 = vector.extract_strided_slice %972 {offsets = [0, 32], sizes = [2, 32], strides = [1, 1]} : vector<2x128xf32> to vector<2x32xf32>
    %1005 = arith.negf %1004 : vector<2x32xf32>
    %1006 = math.exp %1005 : vector<2x32xf32>
    %cst_227 = arith.constant 1.000000e+00 : f32
    %1007 = vector.broadcast %cst_227 : f32 to vector<2x32xf32>
    %1008 = arith.addf %1007, %1006 : vector<2x32xf32>
    %1009 = arith.divf %1007, %1008 : vector<2x32xf32>
    %1010 = vector.extract_strided_slice %972 {offsets = [0, 64], sizes = [2, 32], strides = [1, 1]} : vector<2x128xf32> to vector<2x32xf32>
    %1011 = math.tanh %1010 : vector<2x32xf32>
    %1012 = vector.extract_strided_slice %972 {offsets = [0, 96], sizes = [2, 32], strides = [1, 1]} : vector<2x128xf32> to vector<2x32xf32>
    %1013 = arith.negf %1012 : vector<2x32xf32>
    %1014 = math.exp %1013 : vector<2x32xf32>
    %cst_228 = arith.constant 1.000000e+00 : f32
    %1015 = vector.broadcast %cst_228 : f32 to vector<2x32xf32>
    %1016 = arith.addf %1015, %1014 : vector<2x32xf32>
    %1017 = arith.divf %1015, %1016 : vector<2x32xf32>
    %1018 = arith.mulf %1009, %966 : vector<2x32xf32>
    %1019 = arith.mulf %1003, %1011 : vector<2x32xf32>
    %1020 = arith.addf %1018, %1019 : vector<2x32xf32>
    %1021 = math.tanh %1020 : vector<2x32xf32>
    %1022 = arith.mulf %1017, %1021 : vector<2x32xf32>
    %1023 = vector.extract_strided_slice %960 {offsets = [2, 0], sizes = [2, 128], strides = [1, 1]} : vector<16x256xf32> to vector<2x128xf32>
    %cst_229 = arith.constant dense<0.000000e+00> : vector<2x128xf32>
    %1024 = tpu.matmul %997, %961, %cst_229 {dimension_numbers = #tpu.dot_dimension_numbers<[1], [0], [0], [1], [0, 0, 1, 1], [], []>} : vector<2x32xf32>, vector<32x128xf32>, vector<2x128xf32> -> vector<2x128xf32>
    %1025 = arith.addf %1023, %1024 : vector<2x128xf32>
    %1026 = vector.extract_strided_slice %960 {offsets = [12, 128], sizes = [2, 128], strides = [1, 1]} : vector<16x256xf32> to vector<2x128xf32>
    %cst_230 = arith.constant dense<0.000000e+00> : vector<2x128xf32>
    %1027 = tpu.matmul %1022, %962, %cst_230 {dimension_numbers = #tpu.dot_dimension_numbers<[1], [0], [0], [1], [0, 0, 1, 1], [], []>} : vector<2x32xf32>, vector<32x128xf32>, vector<2x128xf32> -> vector<2x128xf32>
    %1028 = arith.addf %1026, %1027 : vector<2x128xf32>
    %1029 = vector.extract_strided_slice %1025 {offsets = [0, 0], sizes = [2, 32], strides = [1, 1]} : vector<2x128xf32> to vector<2x32xf32>
    %1030 = arith.negf %1029 : vector<2x32xf32>
    %1031 = math.exp %1030 : vector<2x32xf32>
    %cst_231 = arith.constant 1.000000e+00 : f32
    %1032 = vector.broadcast %cst_231 : f32 to vector<2x32xf32>
    %1033 = arith.addf %1032, %1031 : vector<2x32xf32>
    %1034 = arith.divf %1032, %1033 : vector<2x32xf32>
    %1035 = vector.extract_strided_slice %1025 {offsets = [0, 32], sizes = [2, 32], strides = [1, 1]} : vector<2x128xf32> to vector<2x32xf32>
    %1036 = arith.negf %1035 : vector<2x32xf32>
    %1037 = math.exp %1036 : vector<2x32xf32>
    %cst_232 = arith.constant 1.000000e+00 : f32
    %1038 = vector.broadcast %cst_232 : f32 to vector<2x32xf32>
    %1039 = arith.addf %1038, %1037 : vector<2x32xf32>
    %1040 = arith.divf %1038, %1039 : vector<2x32xf32>
    %1041 = vector.extract_strided_slice %1025 {offsets = [0, 64], sizes = [2, 32], strides = [1, 1]} : vector<2x128xf32> to vector<2x32xf32>
    %1042 = math.tanh %1041 : vector<2x32xf32>
    %1043 = vector.extract_strided_slice %1025 {offsets = [0, 96], sizes = [2, 32], strides = [1, 1]} : vector<2x128xf32> to vector<2x32xf32>
    %1044 = arith.negf %1043 : vector<2x32xf32>
    %1045 = math.exp %1044 : vector<2x32xf32>
    %cst_233 = arith.constant 1.000000e+00 : f32
    %1046 = vector.broadcast %cst_233 : f32 to vector<2x32xf32>
    %1047 = arith.addf %1046, %1045 : vector<2x32xf32>
    %1048 = arith.divf %1046, %1047 : vector<2x32xf32>
    %1049 = arith.mulf %1040, %995 : vector<2x32xf32>
    %1050 = arith.mulf %1034, %1042 : vector<2x32xf32>
    %1051 = arith.addf %1049, %1050 : vector<2x32xf32>
    %1052 = math.tanh %1051 : vector<2x32xf32>
    %1053 = arith.mulf %1048, %1052 : vector<2x32xf32>
    %1054 = vector.extract_strided_slice %1028 {offsets = [0, 0], sizes = [2, 32], strides = [1, 1]} : vector<2x128xf32> to vector<2x32xf32>
    %1055 = arith.negf %1054 : vector<2x32xf32>
    %1056 = math.exp %1055 : vector<2x32xf32>
    %cst_234 = arith.constant 1.000000e+00 : f32
    %1057 = vector.broadcast %cst_234 : f32 to vector<2x32xf32>
    %1058 = arith.addf %1057, %1056 : vector<2x32xf32>
    %1059 = arith.divf %1057, %1058 : vector<2x32xf32>
    %1060 = vector.extract_strided_slice %1028 {offsets = [0, 32], sizes = [2, 32], strides = [1, 1]} : vector<2x128xf32> to vector<2x32xf32>
    %1061 = arith.negf %1060 : vector<2x32xf32>
    %1062 = math.exp %1061 : vector<2x32xf32>
    %cst_235 = arith.constant 1.000000e+00 : f32
    %1063 = vector.broadcast %cst_235 : f32 to vector<2x32xf32>
    %1064 = arith.addf %1063, %1062 : vector<2x32xf32>
    %1065 = arith.divf %1063, %1064 : vector<2x32xf32>
    %1066 = vector.extract_strided_slice %1028 {offsets = [0, 64], sizes = [2, 32], strides = [1, 1]} : vector<2x128xf32> to vector<2x32xf32>
    %1067 = math.tanh %1066 : vector<2x32xf32>
    %1068 = vector.extract_strided_slice %1028 {offsets = [0, 96], sizes = [2, 32], strides = [1, 1]} : vector<2x128xf32> to vector<2x32xf32>
    %1069 = arith.negf %1068 : vector<2x32xf32>
    %1070 = math.exp %1069 : vector<2x32xf32>
    %cst_236 = arith.constant 1.000000e+00 : f32
    %1071 = vector.broadcast %cst_236 : f32 to vector<2x32xf32>
    %1072 = arith.addf %1071, %1070 : vector<2x32xf32>
    %1073 = arith.divf %1071, %1072 : vector<2x32xf32>
    %1074 = arith.mulf %1065, %1020 : vector<2x32xf32>
    %1075 = arith.mulf %1059, %1067 : vector<2x32xf32>
    %1076 = arith.addf %1074, %1075 : vector<2x32xf32>
    %1077 = math.tanh %1076 : vector<2x32xf32>
    %1078 = arith.mulf %1073, %1077 : vector<2x32xf32>
    %1079 = vector.extract_strided_slice %960 {offsets = [4, 0], sizes = [2, 128], strides = [1, 1]} : vector<16x256xf32> to vector<2x128xf32>
    %cst_237 = arith.constant dense<0.000000e+00> : vector<2x128xf32>
    %1080 = tpu.matmul %1053, %961, %cst_237 {dimension_numbers = #tpu.dot_dimension_numbers<[1], [0], [0], [1], [0, 0, 1, 1], [], []>} : vector<2x32xf32>, vector<32x128xf32>, vector<2x128xf32> -> vector<2x128xf32>
    %1081 = arith.addf %1079, %1080 : vector<2x128xf32>
    %1082 = vector.extract_strided_slice %960 {offsets = [10, 128], sizes = [2, 128], strides = [1, 1]} : vector<16x256xf32> to vector<2x128xf32>
    %cst_238 = arith.constant dense<0.000000e+00> : vector<2x128xf32>
    %1083 = tpu.matmul %1078, %962, %cst_238 {dimension_numbers = #tpu.dot_dimension_numbers<[1], [0], [0], [1], [0, 0, 1, 1], [], []>} : vector<2x32xf32>, vector<32x128xf32>, vector<2x128xf32> -> vector<2x128xf32>
    %1084 = arith.addf %1082, %1083 : vector<2x128xf32>
    %1085 = vector.extract_strided_slice %1081 {offsets = [0, 0], sizes = [2, 32], strides = [1, 1]} : vector<2x128xf32> to vector<2x32xf32>
    %1086 = arith.negf %1085 : vector<2x32xf32>
    %1087 = math.exp %1086 : vector<2x32xf32>
    %cst_239 = arith.constant 1.000000e+00 : f32
    %1088 = vector.broadcast %cst_239 : f32 to vector<2x32xf32>
    %1089 = arith.addf %1088, %1087 : vector<2x32xf32>
    %1090 = arith.divf %1088, %1089 : vector<2x32xf32>
    %1091 = vector.extract_strided_slice %1081 {offsets = [0, 32], sizes = [2, 32], strides = [1, 1]} : vector<2x128xf32> to vector<2x32xf32>
    %1092 = arith.negf %1091 : vector<2x32xf32>
    %1093 = math.exp %1092 : vector<2x32xf32>
    %cst_240 = arith.constant 1.000000e+00 : f32
    %1094 = vector.broadcast %cst_240 : f32 to vector<2x32xf32>
    %1095 = arith.addf %1094, %1093 : vector<2x32xf32>
    %1096 = arith.divf %1094, %1095 : vector<2x32xf32>
    %1097 = vector.extract_strided_slice %1081 {offsets = [0, 64], sizes = [2, 32], strides = [1, 1]} : vector<2x128xf32> to vector<2x32xf32>
    %1098 = math.tanh %1097 : vector<2x32xf32>
    %1099 = vector.extract_strided_slice %1081 {offsets = [0, 96], sizes = [2, 32], strides = [1, 1]} : vector<2x128xf32> to vector<2x32xf32>
    %1100 = arith.negf %1099 : vector<2x32xf32>
    %1101 = math.exp %1100 : vector<2x32xf32>
    %cst_241 = arith.constant 1.000000e+00 : f32
    %1102 = vector.broadcast %cst_241 : f32 to vector<2x32xf32>
    %1103 = arith.addf %1102, %1101 : vector<2x32xf32>
    %1104 = arith.divf %1102, %1103 : vector<2x32xf32>
    %1105 = arith.mulf %1096, %1051 : vector<2x32xf32>
    %1106 = arith.mulf %1090, %1098 : vector<2x32xf32>
    %1107 = arith.addf %1105, %1106 : vector<2x32xf32>
    %1108 = math.tanh %1107 : vector<2x32xf32>
    %1109 = arith.mulf %1104, %1108 : vector<2x32xf32>
    %1110 = vector.extract_strided_slice %1084 {offsets = [0, 0], sizes = [2, 32], strides = [1, 1]} : vector<2x128xf32> to vector<2x32xf32>
    %1111 = arith.negf %1110 : vector<2x32xf32>
    %1112 = math.exp %1111 : vector<2x32xf32>
    %cst_242 = arith.constant 1.000000e+00 : f32
    %1113 = vector.broadcast %cst_242 : f32 to vector<2x32xf32>
    %1114 = arith.addf %1113, %1112 : vector<2x32xf32>
    %1115 = arith.divf %1113, %1114 : vector<2x32xf32>
    %1116 = vector.extract_strided_slice %1084 {offsets = [0, 32], sizes = [2, 32], strides = [1, 1]} : vector<2x128xf32> to vector<2x32xf32>
    %1117 = arith.negf %1116 : vector<2x32xf32>
    %1118 = math.exp %1117 : vector<2x32xf32>
    %cst_243 = arith.constant 1.000000e+00 : f32
    %1119 = vector.broadcast %cst_243 : f32 to vector<2x32xf32>
    %1120 = arith.addf %1119, %1118 : vector<2x32xf32>
    %1121 = arith.divf %1119, %1120 : vector<2x32xf32>
    %1122 = vector.extract_strided_slice %1084 {offsets = [0, 64], sizes = [2, 32], strides = [1, 1]} : vector<2x128xf32> to vector<2x32xf32>
    %1123 = math.tanh %1122 : vector<2x32xf32>
    %1124 = vector.extract_strided_slice %1084 {offsets = [0, 96], sizes = [2, 32], strides = [1, 1]} : vector<2x128xf32> to vector<2x32xf32>
    %1125 = arith.negf %1124 : vector<2x32xf32>
    %1126 = math.exp %1125 : vector<2x32xf32>
    %cst_244 = arith.constant 1.000000e+00 : f32
    %1127 = vector.broadcast %cst_244 : f32 to vector<2x32xf32>
    %1128 = arith.addf %1127, %1126 : vector<2x32xf32>
    %1129 = arith.divf %1127, %1128 : vector<2x32xf32>
    %1130 = arith.mulf %1121, %1076 : vector<2x32xf32>
    %1131 = arith.mulf %1115, %1123 : vector<2x32xf32>
    %1132 = arith.addf %1130, %1131 : vector<2x32xf32>
    %1133 = math.tanh %1132 : vector<2x32xf32>
    %1134 = arith.mulf %1129, %1133 : vector<2x32xf32>
    %1135 = vector.extract_strided_slice %960 {offsets = [6, 0], sizes = [2, 128], strides = [1, 1]} : vector<16x256xf32> to vector<2x128xf32>
    %cst_245 = arith.constant dense<0.000000e+00> : vector<2x128xf32>
    %1136 = tpu.matmul %1109, %961, %cst_245 {dimension_numbers = #tpu.dot_dimension_numbers<[1], [0], [0], [1], [0, 0, 1, 1], [], []>} : vector<2x32xf32>, vector<32x128xf32>, vector<2x128xf32> -> vector<2x128xf32>
    %1137 = arith.addf %1135, %1136 : vector<2x128xf32>
    %1138 = vector.extract_strided_slice %1137 {offsets = [0, 0], sizes = [2, 32], strides = [1, 1]} : vector<2x128xf32> to vector<2x32xf32>
    %1139 = arith.negf %1138 : vector<2x32xf32>
    %1140 = math.exp %1139 : vector<2x32xf32>
    %cst_246 = arith.constant 1.000000e+00 : f32
    %1141 = vector.broadcast %cst_246 : f32 to vector<2x32xf32>
    %1142 = arith.addf %1141, %1140 : vector<2x32xf32>
    %1143 = arith.divf %1141, %1142 : vector<2x32xf32>
    %1144 = vector.extract_strided_slice %1137 {offsets = [0, 32], sizes = [2, 32], strides = [1, 1]} : vector<2x128xf32> to vector<2x32xf32>
    %1145 = arith.negf %1144 : vector<2x32xf32>
    %1146 = math.exp %1145 : vector<2x32xf32>
    %cst_247 = arith.constant 1.000000e+00 : f32
    %1147 = vector.broadcast %cst_247 : f32 to vector<2x32xf32>
    %1148 = arith.addf %1147, %1146 : vector<2x32xf32>
    %1149 = arith.divf %1147, %1148 : vector<2x32xf32>
    %1150 = vector.extract_strided_slice %1137 {offsets = [0, 64], sizes = [2, 32], strides = [1, 1]} : vector<2x128xf32> to vector<2x32xf32>
    %1151 = math.tanh %1150 : vector<2x32xf32>
    %1152 = vector.extract_strided_slice %1137 {offsets = [0, 96], sizes = [2, 32], strides = [1, 1]} : vector<2x128xf32> to vector<2x32xf32>
    %1153 = arith.negf %1152 : vector<2x32xf32>
    %1154 = math.exp %1153 : vector<2x32xf32>
    %cst_248 = arith.constant 1.000000e+00 : f32
    %1155 = vector.broadcast %cst_248 : f32 to vector<2x32xf32>
    %1156 = arith.addf %1155, %1154 : vector<2x32xf32>
    %1157 = arith.divf %1155, %1156 : vector<2x32xf32>
    %1158 = arith.mulf %1149, %1107 : vector<2x32xf32>
    %1159 = arith.mulf %1143, %1151 : vector<2x32xf32>
    %1160 = arith.addf %1158, %1159 : vector<2x32xf32>
    %1161 = math.tanh %1160 : vector<2x32xf32>
    %1162 = arith.mulf %1157, %1161 : vector<2x32xf32>
    %1163 = vector.extract_strided_slice %960 {offsets = [8, 0], sizes = [2, 128], strides = [1, 1]} : vector<16x256xf32> to vector<2x128xf32>
    %cst_249 = arith.constant dense<0.000000e+00> : vector<2x128xf32>
    %1164 = tpu.matmul %1162, %961, %cst_249 {dimension_numbers = #tpu.dot_dimension_numbers<[1], [0], [0], [1], [0, 0, 1, 1], [], []>} : vector<2x32xf32>, vector<32x128xf32>, vector<2x128xf32> -> vector<2x128xf32>
    %1165 = arith.addf %1163, %1164 : vector<2x128xf32>
    %1166 = vector.extract_strided_slice %1165 {offsets = [0, 0], sizes = [2, 32], strides = [1, 1]} : vector<2x128xf32> to vector<2x32xf32>
    %1167 = arith.negf %1166 : vector<2x32xf32>
    %1168 = math.exp %1167 : vector<2x32xf32>
    %cst_250 = arith.constant 1.000000e+00 : f32
    %1169 = vector.broadcast %cst_250 : f32 to vector<2x32xf32>
    %1170 = arith.addf %1169, %1168 : vector<2x32xf32>
    %1171 = arith.divf %1169, %1170 : vector<2x32xf32>
    %1172 = vector.extract_strided_slice %1165 {offsets = [0, 32], sizes = [2, 32], strides = [1, 1]} : vector<2x128xf32> to vector<2x32xf32>
    %1173 = arith.negf %1172 : vector<2x32xf32>
    %1174 = math.exp %1173 : vector<2x32xf32>
    %cst_251 = arith.constant 1.000000e+00 : f32
    %1175 = vector.broadcast %cst_251 : f32 to vector<2x32xf32>
    %1176 = arith.addf %1175, %1174 : vector<2x32xf32>
    %1177 = arith.divf %1175, %1176 : vector<2x32xf32>
    %1178 = vector.extract_strided_slice %1165 {offsets = [0, 64], sizes = [2, 32], strides = [1, 1]} : vector<2x128xf32> to vector<2x32xf32>
    %1179 = math.tanh %1178 : vector<2x32xf32>
    %1180 = vector.extract_strided_slice %1165 {offsets = [0, 96], sizes = [2, 32], strides = [1, 1]} : vector<2x128xf32> to vector<2x32xf32>
    %1181 = arith.negf %1180 : vector<2x32xf32>
    %1182 = math.exp %1181 : vector<2x32xf32>
    %cst_252 = arith.constant 1.000000e+00 : f32
    %1183 = vector.broadcast %cst_252 : f32 to vector<2x32xf32>
    %1184 = arith.addf %1183, %1182 : vector<2x32xf32>
    %1185 = arith.divf %1183, %1184 : vector<2x32xf32>
    %1186 = arith.mulf %1177, %1160 : vector<2x32xf32>
    %1187 = arith.mulf %1171, %1179 : vector<2x32xf32>
    %1188 = arith.addf %1186, %1187 : vector<2x32xf32>
    %1189 = math.tanh %1188 : vector<2x32xf32>
    %1190 = arith.mulf %1185, %1189 : vector<2x32xf32>
    %1191 = vector.extract_strided_slice %960 {offsets = [10, 0], sizes = [2, 128], strides = [1, 1]} : vector<16x256xf32> to vector<2x128xf32>
    %cst_253 = arith.constant dense<0.000000e+00> : vector<2x128xf32>
    %1192 = tpu.matmul %1190, %961, %cst_253 {dimension_numbers = #tpu.dot_dimension_numbers<[1], [0], [0], [1], [0, 0, 1, 1], [], []>} : vector<2x32xf32>, vector<32x128xf32>, vector<2x128xf32> -> vector<2x128xf32>
    %1193 = arith.addf %1191, %1192 : vector<2x128xf32>
    %1194 = vector.extract_strided_slice %1193 {offsets = [0, 0], sizes = [2, 32], strides = [1, 1]} : vector<2x128xf32> to vector<2x32xf32>
    %1195 = arith.negf %1194 : vector<2x32xf32>
    %1196 = math.exp %1195 : vector<2x32xf32>
    %cst_254 = arith.constant 1.000000e+00 : f32
    %1197 = vector.broadcast %cst_254 : f32 to vector<2x32xf32>
    %1198 = arith.addf %1197, %1196 : vector<2x32xf32>
    %1199 = arith.divf %1197, %1198 : vector<2x32xf32>
    %1200 = vector.extract_strided_slice %1193 {offsets = [0, 32], sizes = [2, 32], strides = [1, 1]} : vector<2x128xf32> to vector<2x32xf32>
    %1201 = arith.negf %1200 : vector<2x32xf32>
    %1202 = math.exp %1201 : vector<2x32xf32>
    %cst_255 = arith.constant 1.000000e+00 : f32
    %1203 = vector.broadcast %cst_255 : f32 to vector<2x32xf32>
    %1204 = arith.addf %1203, %1202 : vector<2x32xf32>
    %1205 = arith.divf %1203, %1204 : vector<2x32xf32>
    %1206 = vector.extract_strided_slice %1193 {offsets = [0, 64], sizes = [2, 32], strides = [1, 1]} : vector<2x128xf32> to vector<2x32xf32>
    %1207 = math.tanh %1206 : vector<2x32xf32>
    %1208 = vector.extract_strided_slice %1193 {offsets = [0, 96], sizes = [2, 32], strides = [1, 1]} : vector<2x128xf32> to vector<2x32xf32>
    %1209 = arith.negf %1208 : vector<2x32xf32>
    %1210 = math.exp %1209 : vector<2x32xf32>
    %cst_256 = arith.constant 1.000000e+00 : f32
    %1211 = vector.broadcast %cst_256 : f32 to vector<2x32xf32>
    %1212 = arith.addf %1211, %1210 : vector<2x32xf32>
    %1213 = arith.divf %1211, %1212 : vector<2x32xf32>
    %1214 = arith.mulf %1205, %1188 : vector<2x32xf32>
    %1215 = arith.mulf %1199, %1207 : vector<2x32xf32>
    %1216 = arith.addf %1214, %1215 : vector<2x32xf32>
    %1217 = math.tanh %1216 : vector<2x32xf32>
    %1218 = arith.mulf %1213, %1217 : vector<2x32xf32>
    %c0_257 = arith.constant 0 : index
    %c0_258 = arith.constant 0 : index
    %1219 = vector.load %arg10[%c0_257, %c0_258] : memref<64x2xf32, #tpu.memory_space<vmem>>, vector<64x2xf32>
    %1220 = vector.extract_strided_slice %1219 {offsets = [0, 0], sizes = [32, 2], strides = [1, 1]} : vector<64x2xf32> to vector<32x2xf32>
    %cst_259 = arith.constant dense<0.000000e+00> : vector<2x2xf32>
    %1221 = tpu.matmul %1218, %1220, %cst_259 {dimension_numbers = #tpu.dot_dimension_numbers<[1], [0], [0], [1], [0, 0, 1, 1], [], []>} : vector<2x32xf32>, vector<32x2xf32>, vector<2x2xf32> -> vector<2x2xf32>
    %1222 = vector.extract_strided_slice %1219 {offsets = [32, 0], sizes = [32, 2], strides = [1, 1]} : vector<64x2xf32> to vector<32x2xf32>
    %cst_260 = arith.constant dense<0.000000e+00> : vector<2x2xf32>
    %1223 = tpu.matmul %1134, %1222, %cst_260 {dimension_numbers = #tpu.dot_dimension_numbers<[1], [0], [0], [1], [0, 0, 1, 1], [], []>} : vector<2x32xf32>, vector<32x2xf32>, vector<2x2xf32> -> vector<2x2xf32>
    %1224 = arith.addf %1221, %1223 : vector<2x2xf32>
    %c0_261 = arith.constant 0 : index
    %c0_262 = arith.constant 0 : index
    %1225 = vector.load %arg11[%c0_261, %c0_262] : memref<1x2xf32, #tpu.memory_space<vmem>>, vector<1x2xf32>
    %1226 = vector.broadcast %1225 : vector<1x2xf32> to vector<2x2xf32>
    %1227 = arith.addf %1224, %1226 : vector<2x2xf32>
    %c0_263 = arith.constant 0 : index
    %c0_264 = arith.constant 0 : index
    %1228 = vector.load %arg12[%c0_263, %c0_264] : memref<2x2xf32, #tpu.memory_space<vmem>>, vector<2x2xf32>
    tpu.vector_store %arg12[%c0_263, %c0_264], %1227 {strides = array<i32>} : memref<2x2xf32, #tpu.memory_space<vmem>>, vector<2x2xf32>,
    return
  }
}

</mosaic_0001>

<bundles_post_ra>
// kernel: tpu_custom_call.1
= control target key start
LH: loop header
LB: loop body
LE: loop exit
PB: predicated region body
PF: predicated region fallthrough
CT: control target
= control target key end

     0   :  { %17 = vsyncpa [#allocation5], 0  ;;  %s7702_s0 = inlined_call_operand.vmem [shape: f32[16,7], index: 0, kind: input, shape index: {}]   ;;  %s7703_s1 = inlined_call_operand.vmem [shape: f32[7,256], index: 1, kind: input, shape index: {}]   ;;  %s7704_s2 = inlined_call_operand.vmem [shape: f32[32,256], index: 2, kind: input, shape index: {}]   ;;  %s7705_s3 = inlined_call_operand.vmem [shape: f32[1,256], index: 3, kind: input, shape index: {}]   ;;  %s7706_s4 = inlined_call_operand.hbm [shape: f32[64,256], index: 4, kind: input, shape index: {}]   ;;  %s7707_s5 = inlined_call_operand.hbm [shape: f32[32,256], index: 5, kind: input, shape index: {}]   ;;  %s7708_s6 = inlined_call_operand.vmem [shape: f32[1,256], index: 6, kind: input, shape index: {}]   ;;  %s7709_s7 = inlined_call_operand.hbm [shape: f32[64,256], index: 7, kind: input, shape index: {}]   ;;  %s7710_s8 = inlined_call_operand.hbm [shape: f32[32,256], index: 8, kind: input, shape index: {}]   ;;  %s7711_s9 = inlined_call_operand.vmem [shape: f32[1,256], index: 9, kind: input, shape index: {}]   ;;  %s7712_s10 = inlined_call_operand.vmem [shape: f32[64,2], index: 10, kind: input, shape index: {}]   ;;  %s7713_s11 = inlined_call_operand.vmem [shape: f32[1,2], index: 11, kind: input, shape index: {}]   ;;  %s7714_s12 = inlined_call_operand.hbm [shape: f32[2,2], index: 12, kind: output, shape index: {}]  }
   0x1   :  { %18 = vsyncpa [#allocation8], 0 }
   0x2   :  { %19 = vsyncpa [#allocation11], 0 }
   0x3   :  { %20 = vsyncpa [#allocation6], 0  ;;  %s6595_s21 = smov [#allocation7]   ;;  %s6596_s23 = smov [#allocation4]  }
   0x4   :  { %s46_s22 = sshll.u32 %s6595_s21, 4  ;;  %s34_s24 = sshll.u32 %s6596_s23, 4  ;;  %s47_s22 = int_to_ptr.vmem [resolvable:$true] %s46_s22  ;;  %s6672_s24 = int_to_ptr.vmem [resolvable:$true] %s34_s24 }
   0x5   :  { %s6477_s27 = scalar_lea.hbm %s7707_s5, 1024 }
   0x6   :  { %p6478_p0 = scmp.ne.s32.totalorder %s7707_s5, %s6477_s27  ;;  %p6481_p1 = scmp.lt.u32.totalorder %s6477_s27, %s7707_s5 }
   0x8   :  { %p6483_p2 = pnand %p6481_p1, %p6478_p0 }
   0xa   :  { %6486 = shalt.err (!%p6483_p2)
}
   0xb   :  { %s6487_s14 = scalar_lea.vmem %s47_s22, 1024  ;;  %p6492_p4 = scmp.lt.s32.totalorder %s47_s22, %s47_s22 }
   0xc   :  { %p6488_p3 = scmp.ne.s32.totalorder %s47_s22, %s6487_s14  ;;  %p6493_p5 = scmp.lt.s32.totalorder %s6487_s14, %s6487_s14 }
   0xe   :  { %p6494_p6 = por %p6493_p5, %p6492_p4 }
  0x10   :  { %p6495_p7 = pnand %p6494_p6, %p6488_p3 }
  0x12   :  { %6498 = shalt.err (!%p6495_p7)
}
  0x13   :  { %s6597_s15 = smov 256   ;;  %s6598_s16 = smov 16  }
  0x14   :  { %52 = dma.hbm_to_vmem [thread:$0]  %s7707_s5, 1024, %s47_s22, [#allocation8], %s6597_s15, %s6597_s15, %s6598_s16  }
  0x15   :  { %s6499_s21 = scalar_lea.hbm %s7706_s4, 2048 }
  0x16   :  { %p6500_p8 = scmp.ne.s32.totalorder %s7706_s4, %s6499_s21  ;;  %p6503_p9 = scmp.lt.u32.totalorder %s6499_s21, %s7706_s4 }
  0x18   :  { %p6505_p10 = pnand %p6503_p9, %p6500_p8 }
  0x1a   :  { %6508 = shalt.err (!%p6505_p10)
}
  0x1b   :  { %s6509_s28 = scalar_lea.vmem %s6672_s24, 2048  ;;  %p6514_p12 = scmp.lt.s32.totalorder %s6672_s24, %s6672_s24 }
  0x1c   :  { %p6510_p11 = scmp.ne.s32.totalorder %s6672_s24, %s6509_s28  ;;  %p6515_p13 = scmp.lt.s32.totalorder %s6509_s28, %s6509_s28 }
  0x1e   :  { %p6516_p0 = por %p6515_p13, %p6514_p12 }
  0x20   :  { %p6517_p1 = pnand %p6516_p0, %p6510_p11 }
  0x22   :  { %6520 = shalt.err (!%p6517_p1)
}
  0x23   :  { %40 = dma.hbm_to_vmem [thread:$0]  %s7706_s4, 2048, %s6672_s24, [#allocation5], %s6597_s15, %s6597_s15, %s6598_s16  }
  0x24   :  { %s6599_s29 = smov [#allocation9]   ;;  %s6600_s13 = smov [#allocation10]  }
  0x25   :  { %s60_s30 = sshll.u32 %s6599_s29, 4  ;;  %s72_s14 = sshll.u32 %s6600_s13, 4  ;;  %s61_s30 = int_to_ptr.vmem [resolvable:$true] %s60_s30  ;;  %s6709_s14 = int_to_ptr.vmem [resolvable:$true] %s72_s14 }
  0x26   :  { %s6521_s19 = scalar_lea.hbm %s7709_s7, 2048 }
  0x27   :  { %p6522_p2 = scmp.ne.s32.totalorder %s7709_s7, %s6521_s19  ;;  %p6525_p3 = scmp.lt.u32.totalorder %s6521_s19, %s7709_s7 }
  0x29   :  { %p6527_p4 = pnand %p6525_p3, %p6522_p2 }
  0x2b   :  { %6530 = shalt.err (!%p6527_p4)
}
  0x2c   :  { %s6531_s4 = scalar_lea.vmem %s61_s30, 2048  ;;  %p6536_p6 = scmp.lt.s32.totalorder %s61_s30, %s61_s30 }
  0x2d   :  { %p6532_p5 = scmp.ne.s32.totalorder %s61_s30, %s6531_s4  ;;  %p6537_p7 = scmp.lt.s32.totalorder %s6531_s4, %s6531_s4 }
  0x2f   :  { %p6538_p8 = por %p6537_p7, %p6536_p6 }
  0x31   :  { %p6539_p9 = pnand %p6538_p8, %p6532_p5 }
  0x33   :  { %6542 = shalt.err (!%p6539_p9)
}
  0x34   :  { %66 = dma.hbm_to_vmem [thread:$0]  %s7709_s7, 2048, %s61_s30, [#allocation8], %s6597_s15, %s6597_s15, %s6598_s16  }
  0x35   :  { %s6543_s5 = scalar_lea.hbm %s7710_s8, 1024 }
  0x36   :  { %p6544_p10 = scmp.ne.s32.totalorder %s7710_s8, %s6543_s5  ;;  %p6547_p11 = scmp.lt.u32.totalorder %s6543_s5, %s7710_s8 }
  0x38   :  { %p6549_p12 = pnand %p6547_p11, %p6544_p10 }
  0x3a   :  { %6552 = shalt.err (!%p6549_p12)
}
  0x3b   :  { %s6553_s18 = scalar_lea.vmem %s6709_s14, 1024  ;;  %p6558_p0 = scmp.lt.s32.totalorder %s6709_s14, %s6709_s14 }
  0x3c   :  { %p6554_p13 = scmp.ne.s32.totalorder %s6709_s14, %s6553_s18  ;;  %p6559_p1 = scmp.lt.s32.totalorder %s6553_s18, %s6553_s18 }
  0x3e   :  { %p6560_p2 = por %p6559_p1, %p6558_p0 }
  0x40   :  { %p6561_p3 = pnand %p6560_p2, %p6554_p13 }
  0x42   :  { %6564 = shalt.err (!%p6561_p3)
}
  0x43   :  { %78 = dma.hbm_to_vmem [thread:$0]  %s7710_s8, 1024, %s6709_s14, [#allocation11], %s6597_s15, %s6597_s15, %s6598_s16  }
  0x44   :  { %6587 = dma.done.wait [#allocation5], 2048  }
  0x45   :  { %6588 = vsyncadd [#allocation5], 4294965248 }
  0x46   :  { %6589 = dma.done.wait [#allocation8], 3072  }
  0x47   :  { %6590 = vsyncadd [#allocation8], 4294964224 }
  0x48   :  { %6591 = dma.done.wait [#allocation11], 1024  }
  0x49   :  { %6592 = vsyncadd [#allocation11], 4294966272  ;;  %v6601_v0 = vmov 0.0   ;;  %v6602_v1 = vmov 0.0|0.0   ;;  %vm6603_vm0 = vmmov 0   ;;  %vm128_vm1 = vcmask 1046528  }
  0x4a   :  { %199 = vmatprep.mubr.f32.mxu0 %v6601_v0  ;;  %5847 = vmatprep.subr.bf16.mxu1 %v6602_v1  ;;  %v100_v2 = vld [vmem:[%s7703_s1 + $0x8] sm:$0x7f]  ;;  %v99_v3 = vld [vmem:[%s7703_s1] sm:$0x7f]  ;;  %vm121_vm2 = vcmask 56320   ;;  %v103_v6 = vld [vmem:[%s7704_s2 + $0x10] sm:$0xff]  ;;  %v111_v18 = vlaneseq }
  0x4b   :  { %5382 = vmatprep.mubr.msk.f32.mxu1 %vm6603_vm0, %v6601_v0  ;;  %v97_v4 = vld [vmem:[%s7702_s0] sm:$0xff]  ;;  %5072 = vmatprep.subr.msk.mxu0 %vm128_vm1, %v100_v2  ;;  %v102_v7 = vld [vmem:[%s7704_s2 + $0x8] sm:$0xff]  ;;  %v104_v9 = vld [vmem:[%s7704_s2 + $0x18] sm:$0xff]  ;;  %s6605_s20 = smov 32   ;;  %vm212_vm3 = vcmask 261120   ;;  %vm413_vm4 = vcmask 254976  }
  0x4c   :  { %v101_v5 = vld [vmem:[%s7704_s2] sm:$0xff]  ;;  %5073 = vmatpush1.msk.msra.mxu0 %vm128_vm1, %v99_v3  ;;  %v6778_v11 = vpack.c.bf16 %v104_v9, %v102_v7  ;;  %v107_v12 = vld [vmem:[%s7704_s2 + $0x30] sm:$0xff]  ;;  %v106_v13 = vld [vmem:[%s7704_s2 + $0x28] sm:$0xff]  ;;  %v112_v19 = vshrl.u32 %v111_v18, 7  ;;  %vm634_vm5 = vcmask 257026   ;;  %vm1079_vm6 = vcmask 261126  }
  0x4d   :  { %v6768_v8 = vpack.c.bf16 %v103_v6, %v101_v5  ;;  %v105_v10 = vld [vmem:[%s7704_s2 + $0x20] sm:$0xff]  ;;  %5074 = vmatmul.mubr.msk.f32.vlgmr.msra.gmra.mrb[0].mxu0 %vm121_vm2, %v97_v4  ;;  %5853 = vmatprep.subr.bf16.mxu0 %v6602_v1  ;;  %v108_v14 = vld [vmem:[%s7704_s2 + $0x38] sm:$0xff]  ;;  %v98_v15 = vld [vmem:[%s7702_s0 + $0x8] sm:$0xff]  ;;  %vm858_vm7 = vcmask 259076   ;;  %vm640_vm8 = vcmask 521476   ;;  %vm419_vm9 = vcmask 523526  }
  0x4e   :  { %205 = vmatprep.mubr.f32.mxu0 %v6601_v0  ;;  %v6794_v16 = vpack.c.bf16 %v107_v12, %v105_v10  ;;  %5855 = vmatpush3.bf16.msra.mxu0 %v6778_v11  ;;  %v6798_v17 = vpack.c.bf16 %v108_v14, %v106_v13  ;;  %v6822_v20 = vsub.s32 1, %v112_v19  ;;  %v109_v21 = vld [vmem:[%s7705_s3] sm:$0x3]  ;;  %v6828_v23 = vsub.s32 0, %v112_v19  ;;  %s6604_s3 = smov 64  }
  0x4f   :  { %5849 = vmatpush3.bf16.msra.mxu1 %v6768_v8  ;;  %5856 = vmatprep.subr.bf16.mxu0 %v6602_v1  ;;  %vm864_vm10 = vcmask 519426   ;;  %vm1085_vm11 = vcmask 517376   ;;  %vm2003_vm12 = vcmask 523264   ;;  %vm5053_vm13 = vcmask 9216  }
  0x50   :  { %5850 = vmatprep.subr.bf16.mxu1 %v6602_v1  ;;  %v118_v22 = vrot.slane %v109_v21, %v6822_v20  ;;  %v114_v27 = vrot.slane %v109_v21, %v6828_v23 }
  0x51   :  { %5075 = vmatmul.mubr.msk.f32.gmra.mrb[2].mxu0 %vm121_vm2, %v98_v15 }
  0x52   :  { %5393 = vmatprep.mubr.msk.f32.mxu0 %vm6603_vm0, %v6601_v0  ;;  %5858 = vmatpush3.bf16.msra.mxu0 %v6798_v17 }
  0x53   :  { %5852 = vmatpush3.bf16.msra.mxu1 %v6794_v16  ;;  %5865 = vmatprep.subr.bf16.mxu0 %v6602_v1 }
  0x54   :  { %5859 = vmatprep.subr.bf16.mxu1 %v6602_v1 }
  0x55   :  { %5394 = vmatmul.mubr.f32.vlgmr.msra.gmra.mrb[4].mxu0 %v6601_v0 }
  0x56   :  { %5383 = vmatmul.mubr.f32.vlgmr.msra.gmra.mrb[0].mxu1 %v6601_v0  ;;  %5867 = vmatpush3.bf16.msra.mxu0 %v6778_v11 }
  0x57   :  { %5861 = vmatpush3.bf16.msra.mxu1 %v6768_v8  ;;  %5868 = vmatprep.subr.bf16.mxu0 %v6602_v1 }
  0x58   :  { %5862 = vmatprep.subr.bf16.mxu1 %v6602_v1  ;;  %5415 = vmatprep.mubr.msk.f32.mxu0 %vm6603_vm0, %v6601_v0 }
  0x59   :  { %5404 = vmatprep.mubr.msk.f32.mxu1 %vm6603_vm0, %v6601_v0 }
  0x5a   :  { %5870 = vmatpush3.bf16.msra.mxu0 %v6798_v17 }
  0x5b   :  { %5864 = vmatpush3.bf16.msra.mxu1 %v6794_v16  ;;  %5877 = vmatprep.subr.bf16.mxu0 %v6602_v1 }
  0x5c   :  { %5871 = vmatprep.subr.bf16.mxu1 %v6602_v1 }
 0x120   :  { %v201_v24 = vpop.f32.mrb[0].mxu0 }
 0x121   :  { %v203_v25 = vpop.f32.mrb[1].mxu0  ;;  %v6837_v37 = vadd.f32 %v201_v24, %v114_v27 }
 0x122   :  { %v6830_v26 = vadd.f32 %v203_v25, %v118_v22 }
 0x124   :  { %v207_v28 = vpop.f32.mrb[2].mxu0 }
 0x125   :  { %v6833_v29 = vadd.f32 %v207_v28, %v114_v27  ;;  %v209_v30 = vpop.f32.mrb[3].mxu0 }
 0x126   :  { %v6835_v34 = vadd.f32 %v209_v30, %v118_v22 }
 0x128   :  { %v353_v32 = vpop.f32.mrb[4].mxu0 }
 0x129   :  { %v282_v31 = vpop.f32.mrb[0].mxu1  ;;  %v358_v35 = vrot.slane %v353_v32, 2  ;;  %v5395_v36 = vpop.f32.mrb[5].mxu0 }
 0x12a   :  { %v5384_v33 = vpop.f32.mrb[1].mxu1  ;;  %v286_v39 = vadd.f32 %v282_v31, %v6837_v37 }
 0x12b   :  { %v360_v38 = vadd.f32 %v358_v35, %v6835_v34 }
 0x12c   :  { %v5076_v43 = vmul.f32 -1.442695, %v286_v39 }
 0x12d   :  { %6149 = vtanh.f32 %v360_v38  ;;  %v5077_v42 = vmul.f32 -1.442695, %v360_v38 }
 0x12e   :  { %6151 = vtanh.f32 %v286_v39 }
 0x12f   :  { %6153 = vpow2.f32 %v5077_v42 }
 0x130   :  { %6155 = vpow2.f32 %v5076_v43 }
 0x137   :  { %v6150_v40 = vpop.eup %6149 }
 0x138   :  { %394 = vrot.lane.b32.xlu0 %v6150_v40, %s6604_s3  ;;  %v6152_v41 = vpop.eup %6151 }
 0x139   :  { %v6154_v44 = vpop.eup %6153 }
 0x13a   :  { %v388_v45 = vadd.f32 1.0, %v6154_v44  ;;  %v6156_v46 = vpop.eup %6155 }
 0x13b   :  { %v364_v47 = vadd.f32 1.0, %v6156_v46 }
 0x13c   :  { %370 = vrot.lane.b32.xlu0 %v6152_v41, %s6604_s3  ;;  %6157 = vrcp.f32 %v388_v45 }
 0x13d   :  { %6159 = vrcp.f32 %v364_v47 }
 0x146   :  { %v6158_v48 = vpop.eup %6157 }
 0x147   :  { %v6160_v51 = vpop.eup %6159  ;;  %v392_v54 = vmul.f32 0.0, %v6158_v48 }
 0x148   :  { %v368_v57 = vmul.f32 0.0, %v6160_v51 }
 0x1aa   :  { %v395_v49 = vpop.permute.xlu0 %394 }
 0x1ab   :  { %v397_v50 = vmul.f32 %v6158_v48, %v395_v49 }
 0x1ad   :  { %399 = vrot.lane.b32.xlu1 %v397_v50, %s6605_s20 }
 0x1ae   :  { %v371_v52 = vpop.permute.xlu0 %370 }
 0x1af   :  { %v373_v53 = vmul.f32 %v6160_v51, %v371_v52 }
 0x1b1   :  { %375 = vrot.lane.b32.xlu1 %v373_v53, %s6605_s20 }
 0x21f   :  { %v400_v55 = vpop.permute.xlu1 %399 }
 0x220   :  { %v6845_v56 = vadd.f32 %v400_v55, %v392_v54 }
 0x222   :  { %6161 = vtanh.f32 %v6845_v56  ;;  %v611_v39 = vrot.slane %v6845_v56, 2 }
 0x223   :  { %v376_v58 = vpop.permute.xlu1 %375 }
 0x224   :  { %v6848_v59 = vadd.f32 %v376_v58, %v368_v57 }
 0x226   :  { %6163 = vtanh.f32 %v6848_v59  ;;  %v584_v41 = vrot.slane %v6848_v59, 6 }
 0x22c   :  { %v6162_v60 = vpop.eup %6161 }
 0x22d   :  { %405 = vrot.lane.b32.xlu0 %v6162_v60, %s6604_s3 }
 0x230   :  { %v6164_v61 = vpop.eup %6163 }
 0x231   :  { %381 = vrot.lane.b32.xlu1 %v6164_v61, %s6604_s3 }
 0x29f   :  { %v406_v62 = vpop.permute.xlu0 %405 }
 0x2a0   :  { %v6853_v63 = vmul.f32 %v6158_v48, %v406_v62 }
 0x2a2   :  { %v497_v2 = vrot.slane %v6853_v63, 6 }
 0x2a3   :  { %v382_v3 = vpop.permute.xlu1 %381 }
 0x2a4   :  { %v384_v4 = vmul.f32 %v6160_v51, %v382_v3  ;;  %498 = vrot.lane.b32.xlu0 %v497_v2, %s6605_s20 }
 0x2a6   :  { %410 = vrot.lane.b32.xlu1 %v384_v4, %s6605_s20 }
 0x316   :  { %v499_v5 = vpop.permute.xlu0 %498 }
 0x317   :  { %5416 = vmatmul.mubr.msk.f32.vlgmr.msra.gmra.mrb[6].mxu0 %vm212_vm3, %v499_v5 }
 0x318   :  { %v411_v6 = vpop.permute.xlu1 %410  ;;  %5879 = vmatpush3.bf16.msra.mxu0 %v6778_v11  ;;  %5437 = vmatprep.mubr.msk.f32.mxu0 %vm6603_vm0, %v6601_v0 }
 0x319   :  { %414 = vst.msk [vmem:[#allocation2] sm:$0x3] %vm413_vm4, %v411_v6  ;;  %5405 = vmatmul.mubr.msk.f32.vlgmr.msra.gmra.mrb[2].mxu1 %vm212_vm3, %v411_v6  ;;  %5880 = vmatprep.subr.bf16.mxu0 %v6602_v1 }
 0x31a   :  { %5873 = vmatpush3.bf16.msra.mxu1 %v6768_v8  ;;  %5426 = vmatprep.mubr.msk.f32.mxu1 %vm6603_vm0, %v6601_v0 }
 0x31b   :  { %5874 = vmatprep.subr.bf16.mxu1 %v6602_v1 }
 0x31c   :  { %5882 = vmatpush3.bf16.msra.mxu0 %v6798_v17 }
 0x31d   :  { %5889 = vmatprep.subr.bf16.mxu0 %v6602_v1 }
 0x31e   :  { %5876 = vmatpush3.bf16.msra.mxu1 %v6794_v16 }
 0x31f   :  { %5883 = vmatprep.subr.bf16.mxu1 %v6602_v1 }
 0x3ea   :  { %v568_v7 = vpop.f32.mrb[6].mxu0 }
 0x3eb   :  { %v573_v9 = vrot.slane %v568_v7, 4  ;;  %v5417_v10 = vpop.f32.mrb[7].mxu0 }
 0x3ec   :  { %v489_v12 = vpop.f32.mrb[2].mxu1 }
 0x3ed   :  { %v575_v13 = vadd.f32 %v573_v9, %v6835_v34  ;;  %v494_v14 = vrot.slane %v489_v12, 6  ;;  %v5406_v15 = vpop.f32.mrb[3].mxu1 }
 0x3ef   :  { %6165 = vtanh.f32 %v575_v13  ;;  %v496_v18 = vadd.f32 %v494_v14, %v6837_v37  ;;  %v5081_v22 = vmul.f32 -1.442695, %v575_v13 }
 0x3f1   :  { %6167 = vtanh.f32 %v496_v18  ;;  %v5080_v24 = vmul.f32 -1.442695, %v496_v18 }
 0x3f2   :  { %6169 = vpow2.f32 %v5081_v22 }
 0x3f3   :  { %6171 = vpow2.f32 %v5080_v24 }
 0x3f9   :  { %v6166_v19 = vpop.eup %6165 }
 0x3fa   :  { %615 = vrot.lane.b32.xlu0 %v6166_v19, %s6604_s3 }
 0x3fb   :  { %v6168_v21 = vpop.eup %6167 }
 0x3fc   :  { %588 = vrot.lane.b32.xlu1 %v6168_v21, %s6604_s3  ;;  %v6170_v25 = vpop.eup %6169 }
 0x3fd   :  { %v6172_v27 = vpop.eup %6171  ;;  %v606_v28 = vadd.f32 1.0, %v6170_v25 }
 0x3fe   :  { %v579_v30 = vadd.f32 1.0, %v6172_v27 }
 0x3ff   :  { %6173 = vrcp.f32 %v606_v28 }
 0x400   :  { %6175 = vrcp.f32 %v579_v30 }
 0x409   :  { %v6174_v31 = vpop.eup %6173 }
 0x40a   :  { %v6176_v35 = vpop.eup %6175  ;;  %v613_v40 = vmul.f32 %v6174_v31, %v611_v39 }
 0x40b   :  { %v586_v44 = vmul.f32 %v6176_v35, %v584_v41 }
 0x46c   :  { %v616_v32 = vpop.permute.xlu0 %615 }
 0x46d   :  { %v618_v33 = vmul.f32 %v6174_v31, %v616_v32 }
 0x46e   :  { %v589_v36 = vpop.permute.xlu1 %588 }
 0x46f   :  { %620 = vrot.lane.b32.xlu0 %v618_v33, %s6605_s20  ;;  %v591_v38 = vmul.f32 %v6176_v35, %v589_v36 }
 0x471   :  { %593 = vrot.lane.b32.xlu1 %v591_v38, %s6605_s20 }
 0x4e1   :  { %v621_v42 = vpop.permute.xlu0 %620 }
 0x4e2   :  { %v6881_v43 = vadd.f32 %v621_v42, %v613_v40 }
 0x4e3   :  { %v594_v45 = vpop.permute.xlu1 %593 }
 0x4e4   :  { %6177 = vtanh.f32 %v6881_v43  ;;  %v6884_v46 = vadd.f32 %v594_v45, %v586_v44  ;;  %v835_v24 = vrot.slane %v6881_v43, 2 }
 0x4e6   :  { %6179 = vtanh.f32 %v6884_v46  ;;  %v808_v27 = vrot.slane %v6884_v46, 6 }
 0x4ee   :  { %v6178_v47 = vpop.eup %6177 }
 0x4ef   :  { %626 = vrot.lane.b32.xlu0 %v6178_v47, %s6604_s3 }
 0x4f0   :  { %v6180_v48 = vpop.eup %6179 }
 0x4f1   :  { %599 = vrot.lane.b32.xlu1 %v6180_v48, %s6604_s3 }
 0x561   :  { %v627_v49 = vpop.permute.xlu0 %626 }
 0x562   :  { %v6889_v50 = vmul.f32 %v6174_v31, %v627_v49 }
 0x563   :  { %v600_v52 = vpop.permute.xlu1 %599 }
 0x564   :  { %v721_v51 = vrot.slane %v6889_v50, 4  ;;  %v6892_v53 = vmul.f32 %v6176_v35, %v600_v52 }
 0x566   :  { %722 = vrot.lane.b32.xlu0 %v721_v51, %s6605_s20  ;;  %v642_v54 = vrot.slane %v6892_v53, 2 }
 0x568   :  { %643 = vrot.lane.b32.xlu1 %v642_v54, %s6605_s20 }
 0x5d8   :  { %v723_v55 = vpop.permute.xlu0 %722 }
 0x5d9   :  { %5438 = vmatmul.mubr.msk.f32.vlgmr.msra.gmra.mrb[8].mxu0 %vm212_vm3, %v723_v55 }
 0x5da   :  { %5891 = vmatpush3.bf16.msra.mxu0 %v6778_v11  ;;  %5459 = vmatprep.mubr.msk.f32.mxu0 %vm6603_vm0, %v6601_v0  ;;  %v644_v56 = vpop.permute.xlu1 %643 }
 0x5db   :  { %5892 = vmatprep.subr.bf16.mxu0 %v6602_v1  ;;  %5427 = vmatmul.mubr.msk.f32.vlgmr.msra.gmra.mrb[4].mxu1 %vm212_vm3, %v644_v56 }
 0x5dc   :  { %5885 = vmatpush3.bf16.msra.mxu1 %v6768_v8  ;;  %5448 = vmatprep.mubr.msk.f32.mxu1 %vm6603_vm0, %v6601_v0 }
 0x5dd   :  { %5886 = vmatprep.subr.bf16.mxu1 %v6602_v1 }
 0x5de   :  { %5894 = vmatpush3.bf16.msra.mxu0 %v6798_v17 }
 0x5df   :  { %5901 = vmatprep.subr.bf16.mxu0 %v6602_v1 }
 0x5e0   :  { %5888 = vmatpush3.bf16.msra.mxu1 %v6794_v16 }
 0x5e1   :  { %5895 = vmatprep.subr.bf16.mxu1 %v6602_v1 }
 0x6ac   :  { %v792_v57 = vpop.f32.mrb[8].mxu0 }
 0x6ad   :  { %v797_v58 = vrot.slane %v792_v57, 6  ;;  %v5439_v59 = vpop.f32.mrb[9].mxu0 }
 0x6ae   :  { %v713_v61 = vpop.f32.mrb[4].mxu1 }
 0x6af   :  { %v799_v60 = vadd.f32 %v797_v58, %v6835_v34  ;;  %v718_v62 = vrot.slane %v713_v61, 4  ;;  %v5428_v2 = vpop.f32.mrb[5].mxu1 }
 0x6b1   :  { %6181 = vtanh.f32 %v799_v60  ;;  %v720_v3 = vadd.f32 %v718_v62, %v6837_v37  ;;  %v5085_v6 = vmul.f32 -1.442695, %v799_v60 }
 0x6b3   :  { %6183 = vtanh.f32 %v720_v3  ;;  %v5084_v7 = vmul.f32 -1.442695, %v720_v3 }
 0x6b4   :  { %6185 = vpow2.f32 %v5085_v6 }
 0x6b5   :  { %6187 = vpow2.f32 %v5084_v7 }
 0x6bb   :  { %v6182_v4 = vpop.eup %6181 }
 0x6bc   :  { %839 = vrot.lane.b32.xlu0 %v6182_v4, %s6604_s3 }
 0x6bd   :  { %v6184_v5 = vpop.eup %6183 }
 0x6be   :  { %812 = vrot.lane.b32.xlu1 %v6184_v5, %s6604_s3  ;;  %v6186_v9 = vpop.eup %6185 }
 0x6bf   :  { %v6188_v10 = vpop.eup %6187  ;;  %v830_v12 = vadd.f32 1.0, %v6186_v9 }
 0x6c0   :  { %v803_v13 = vadd.f32 1.0, %v6188_v10 }
 0x6c1   :  { %6189 = vrcp.f32 %v830_v12 }
 0x6c2   :  { %6191 = vrcp.f32 %v803_v13 }
 0x6cb   :  { %v6190_v14 = vpop.eup %6189 }
 0x6cc   :  { %v6192_v19 = vpop.eup %6191  ;;  %v837_v25 = vmul.f32 %v6190_v14, %v835_v24 }
 0x6cd   :  { %v810_v31 = vmul.f32 %v6192_v19, %v808_v27 }
 0x72e   :  { %v840_v15 = vpop.permute.xlu0 %839 }
 0x72f   :  { %v842_v18 = vmul.f32 %v6190_v14, %v840_v15 }
 0x730   :  { %v813_v21 = vpop.permute.xlu1 %812 }
 0x731   :  { %844 = vrot.lane.b32.xlu0 %v842_v18, %s6605_s20  ;;  %v815_v22 = vmul.f32 %v6192_v19, %v813_v21 }
 0x733   :  { %817 = vrot.lane.b32.xlu1 %v815_v22, %s6605_s20 }
 0x7a3   :  { %v845_v28 = vpop.permute.xlu0 %844 }
 0x7a4   :  { %v6919_v30 = vadd.f32 %v845_v28, %v837_v25 }
 0x7a5   :  { %v818_v32 = vpop.permute.xlu1 %817 }
 0x7a6   :  { %6193 = vtanh.f32 %v6919_v30  ;;  %v6922_v33 = vadd.f32 %v818_v32, %v810_v31  ;;  %v1056_v6 = vrot.slane %v6919_v30, 2 }
 0x7a8   :  { %6195 = vtanh.f32 %v6922_v33  ;;  %v1029_v12 = vrot.slane %v6922_v33, 6 }
 0x7b0   :  { %v6194_v35 = vpop.eup %6193 }
 0x7b1   :  { %850 = vrot.lane.b32.xlu0 %v6194_v35, %s6604_s3 }
 0x7b2   :  { %v6196_v36 = vpop.eup %6195 }
 0x7b3   :  { %823 = vrot.lane.b32.xlu1 %v6196_v36, %s6604_s3 }
 0x823   :  { %v851_v38 = vpop.permute.xlu0 %850 }
 0x824   :  { %v6927_v39 = vmul.f32 %v6190_v14, %v851_v38 }
 0x825   :  { %v824_v41 = vpop.permute.xlu1 %823 }
 0x826   :  { %v945_v40 = vrot.slane %v6927_v39, 2  ;;  %v6930_v42 = vmul.f32 %v6192_v19, %v824_v41 }
 0x828   :  { %946 = vrot.lane.b32.xlu0 %v945_v40, %s6605_s20  ;;  %v866_v43 = vrot.slane %v6930_v42, 4 }
 0x82a   :  { %867 = vrot.lane.b32.xlu1 %v866_v43, %s6605_s20 }
 0x89a   :  { %v947_v44 = vpop.permute.xlu0 %946 }
 0x89b   :  { %5460 = vmatmul.mubr.msk.f32.vlgmr.msra.gmra.mrb[10].mxu0 %vm212_vm3, %v947_v44 }
 0x89c   :  { %5903 = vmatpush3.bf16.msra.mxu0 %v6778_v11  ;;  %5481 = vmatprep.mubr.msk.f32.mxu0 %vm6603_vm0, %v6601_v0  ;;  %v868_v45 = vpop.permute.xlu1 %867 }
 0x89d   :  { %5904 = vmatprep.subr.bf16.mxu0 %v6602_v1  ;;  %5449 = vmatmul.mubr.msk.f32.vlgmr.msra.gmra.mrb[6].mxu1 %vm212_vm3, %v868_v45 }
 0x89e   :  { %5897 = vmatpush3.bf16.msra.mxu1 %v6768_v8  ;;  %5470 = vmatprep.mubr.msk.f32.mxu1 %vm6603_vm0, %v6601_v0 }
 0x89f   :  { %5898 = vmatprep.subr.bf16.mxu1 %v6602_v1 }
 0x8a0   :  { %5906 = vmatpush3.bf16.msra.mxu0 %v6798_v17 }
 0x8a1   :  { %5913 = vmatprep.subr.bf16.mxu0 %v6602_v1 }
 0x8a2   :  { %5900 = vmatpush3.bf16.msra.mxu1 %v6794_v16 }
 0x8a3   :  { %5907 = vmatprep.subr.bf16.mxu1 %v6602_v1 }
 0x96e   :  { %v1016_v46 = vpop.f32.mrb[10].mxu0 }
 0x96f   :  { %v1020_v47 = vadd.f32 %v1016_v46, %v6835_v34  ;;  %v5461_v48 = vpop.f32.mrb[11].mxu0 }
 0x970   :  { %v937_v49 = vpop.f32.mrb[6].mxu1 }
 0x971   :  { %6197 = vtanh.f32 %v1020_v47  ;;  %v942_v51 = vrot.slane %v937_v49, 2  ;;  %v5450_v52 = vpop.f32.mrb[7].mxu1  ;;  %v5089_v57 = vmul.f32 -1.442695, %v1020_v47 }
 0x973   :  { %v944_v54 = vadd.f32 %v942_v51, %v6837_v37 }
 0x975   :  { %6199 = vtanh.f32 %v944_v54  ;;  %v5088_v58 = vmul.f32 -1.442695, %v944_v54 }
 0x976   :  { %6201 = vpow2.f32 %v5089_v57 }
 0x977   :  { %6203 = vpow2.f32 %v5088_v58 }
 0x97b   :  { %v6198_v55 = vpop.eup %6197 }
 0x97c   :  { %1060 = vrot.lane.b32.xlu0 %v6198_v55, %s6604_s3 }
 0x97f   :  { %v6200_v56 = vpop.eup %6199 }
 0x980   :  { %1033 = vrot.lane.b32.xlu1 %v6200_v56, %s6604_s3  ;;  %v6202_v59 = vpop.eup %6201 }
 0x981   :  { %v1051_v34 = vadd.f32 1.0, %v6202_v59  ;;  %v6204_v60 = vpop.eup %6203 }
 0x982   :  { %v1024_v61 = vadd.f32 1.0, %v6204_v60 }
 0x983   :  { %6205 = vrcp.f32 %v1051_v34 }
 0x984   :  { %6207 = vrcp.f32 %v1024_v61 }
 0x98d   :  { %v6206_v62 = vpop.eup %6205 }
 0x98e   :  { %v6208_v3 = vpop.eup %6207  ;;  %v1058_v7 = vmul.f32 %v6206_v62, %v1056_v6 }
 0x98f   :  { %v1031_v13 = vmul.f32 %v6208_v3, %v1029_v12 }
 0x9ee   :  { %v1061_v2 = vpop.permute.xlu0 %1060 }
 0x9ef   :  { %v1063_v37 = vmul.f32 %v6206_v62, %v1061_v2 }
 0x9f1   :  { %1065 = vrot.lane.b32.xlu0 %v1063_v37, %s6605_s20 }
 0x9f2   :  { %v1034_v4 = vpop.permute.xlu1 %1033 }
 0x9f3   :  { %v1036_v5 = vmul.f32 %v6208_v3, %v1034_v4 }
 0x9f5   :  { %1038 = vrot.lane.b32.xlu1 %v1036_v5, %s6605_s20 }
 0xa63   :  { %v1066_v9 = vpop.permute.xlu0 %1065 }
 0xa64   :  { %v6956_v10 = vadd.f32 %v1066_v9, %v1058_v7 }
 0xa66   :  { %6209 = vtanh.f32 %v6956_v10  ;;  %v1276_v58 = vrot.slane %v6956_v10, 2 }
 0xa67   :  { %v1039_v14 = vpop.permute.xlu1 %1038 }
 0xa68   :  { %v6960_v15 = vadd.f32 %v1039_v14, %v1031_v13 }
 0xa6a   :  { %6211 = vtanh.f32 %v6960_v15  ;;  %v1249_v61 = vrot.slane %v6960_v15, 6 }
 0xa70   :  { %v6210_v18 = vpop.eup %6209 }
 0xa71   :  { %1071 = vrot.lane.b32.xlu0 %v6210_v18, %s6604_s3 }
 0xa74   :  { %v6212_v19 = vpop.eup %6211 }
 0xa75   :  { %1044 = vrot.lane.b32.xlu1 %v6212_v19, %s6604_s3 }
 0xae3   :  { %v1072_v21 = vpop.permute.xlu0 %1071 }
 0xae4   :  { %v6965_v22 = vmul.f32 %v6206_v62, %v1072_v21 }
 0xae6   :  { %1163 = vrot.lane.b32.xlu0 %v6965_v22, %s6605_s20 }
 0xae7   :  { %v1045_v24 = vpop.permute.xlu1 %1044 }
 0xae8   :  { %v6969_v25 = vmul.f32 %v6208_v3, %v1045_v24 }
 0xaea   :  { %v1087_v27 = vrot.slane %v6969_v25, 6 }
 0xaec   :  { %1088 = vrot.lane.b32.xlu1 %v1087_v27, %s6605_s20 }
 0xb58   :  { %v1164_v28 = vpop.permute.xlu0 %1163 }
 0xb59   :  { %5482 = vmatmul.mubr.msk.f32.vlgmr.msra.gmra.mrb[12].mxu0 %vm212_vm3, %v1164_v28 }
 0xb5a   :  { %5915 = vmatpush3.bf16.msra.mxu0 %v6778_v11  ;;  %5503 = vmatprep.mubr.msk.f32.mxu0 %vm6603_vm0, %v6601_v0 }
 0xb5b   :  { %5916 = vmatprep.subr.bf16.mxu0 %v6602_v1 }
 0xb5e   :  { %5918 = vmatpush3.bf16.msra.mxu0 %v6798_v17  ;;  %v1089_v30 = vpop.permute.xlu1 %1088 }
 0xb5f   :  { %5925 = vmatprep.subr.bf16.mxu0 %v6602_v1  ;;  %5471 = vmatmul.mubr.msk.f32.vlgmr.msra.gmra.mrb[8].mxu1 %vm212_vm3, %v1089_v30 }
 0xb60   :  { %5909 = vmatpush3.bf16.msra.mxu1 %v6768_v8  ;;  %5492 = vmatprep.mubr.msk.f32.mxu1 %vm6603_vm0, %v6601_v0 }
 0xb61   :  { %5910 = vmatprep.subr.bf16.mxu1 %v6602_v1 }
 0xb64   :  { %5912 = vmatpush3.bf16.msra.mxu1 %v6794_v16 }
 0xb65   :  { %5919 = vmatprep.subr.bf16.mxu1 %v6602_v1 }
 0xc2c   :  { %v1233_v31 = vpop.f32.mrb[12].mxu0 }
 0xc2d   :  { %v1238_v32 = vrot.slane %v1233_v31, 2  ;;  %v5483_v33 = vpop.f32.mrb[13].mxu0 }
 0xc2f   :  { %v1240_v35 = vadd.f32 %v1238_v32, %v6830_v26 }
 0xc31   :  { %6213 = vtanh.f32 %v1240_v35  ;;  %v5093_v44 = vmul.f32 -1.442695, %v1240_v35 }
 0xc32   :  { %v1158_v36 = vpop.f32.mrb[8].mxu1 }
 0xc33   :  { %v1162_v38 = vadd.f32 %v1158_v36, %v6833_v29  ;;  %v5472_v40 = vpop.f32.mrb[9].mxu1 }
 0xc35   :  { %6215 = vtanh.f32 %v1162_v38  ;;  %v5092_v45 = vmul.f32 -1.442695, %v1162_v38 }
 0xc36   :  { %6217 = vpow2.f32 %v5093_v44 }
 0xc37   :  { %6219 = vpow2.f32 %v5092_v45 }
 0xc3b   :  { %v6214_v41 = vpop.eup %6213 }
 0xc3c   :  { %1280 = vrot.lane.b32.xlu0 %v6214_v41, %s6604_s3 }
 0xc3f   :  { %v6216_v43 = vpop.eup %6215 }
 0xc40   :  { %1253 = vrot.lane.b32.xlu1 %v6216_v43, %s6604_s3  ;;  %v6218_v46 = vpop.eup %6217 }
 0xc41   :  { %v1271_v47 = vadd.f32 1.0, %v6218_v46  ;;  %v6220_v48 = vpop.eup %6219 }
 0xc42   :  { %v1244_v49 = vadd.f32 1.0, %v6220_v48 }
 0xc43   :  { %6221 = vrcp.f32 %v1271_v47 }
 0xc44   :  { %6223 = vrcp.f32 %v1244_v49 }
 0xc4d   :  { %v6222_v51 = vpop.eup %6221 }
 0xc4e   :  { %v6224_v55 = vpop.eup %6223  ;;  %v1278_v59 = vmul.f32 %v6222_v51, %v1276_v58 }
 0xc4f   :  { %v1251_v62 = vmul.f32 %v6224_v55, %v1249_v61 }
 0xcae   :  { %v1281_v52 = vpop.permute.xlu0 %1280 }
 0xcaf   :  { %v1283_v54 = vmul.f32 %v6222_v51, %v1281_v52 }
 0xcb1   :  { %1285 = vrot.lane.b32.xlu0 %v1283_v54, %s6605_s20 }
 0xcb2   :  { %v1254_v56 = vpop.permute.xlu1 %1253 }
 0xcb3   :  { %v1256_v57 = vmul.f32 %v6224_v55, %v1254_v56 }
 0xcb5   :  { %1258 = vrot.lane.b32.xlu1 %v1256_v57, %s6605_s20 }
 0xd23   :  { %v1286_v34 = vpop.permute.xlu0 %1285 }
 0xd24   :  { %v6994_v60 = vadd.f32 %v1286_v34, %v1278_v59 }
 0xd26   :  { %6225 = vtanh.f32 %v6994_v60  ;;  %v1495_v48 = vrot.slane %v6994_v60, 2 }
 0xd27   :  { %v1259_v2 = vpop.permute.xlu1 %1258 }
 0xd28   :  { %v6998_v37 = vadd.f32 %v1259_v2, %v1251_v62 }
 0xd2a   :  { %6227 = vtanh.f32 %v6998_v37 }
 0xd30   :  { %v6226_v3 = vpop.eup %6225 }
 0xd31   :  { %1291 = vrot.lane.b32.xlu0 %v6226_v3, %s6604_s3 }
 0xd34   :  { %v6228_v4 = vpop.eup %6227 }
 0xd35   :  { %1264 = vrot.lane.b32.xlu1 %v6228_v4, %s6604_s3 }
 0xda3   :  { %v1292_v5 = vpop.permute.xlu0 %1291 }
 0xda4   :  { %v7003_v6 = vmul.f32 %v6222_v51, %v1292_v5  ;;  %v1468_v51 = vrot.slane %v6998_v37, 6 }
 0xda6   :  { %v1381_v7 = vrot.slane %v7003_v6, 6 }
 0xda7   :  { %v1265_v9 = vpop.permute.xlu1 %1264 }
 0xda8   :  { %1382 = vrot.lane.b32.xlu0 %v1381_v7, %s6605_s20  ;;  %v1267_v10 = vmul.f32 %v6224_v55, %v1265_v9 }
 0xdaa   :  { %1296 = vrot.lane.b32.xlu1 %v1267_v10, %s6605_s20 }
 0xe1a   :  { %v1383_v12 = vpop.permute.xlu0 %1382 }
 0xe1b   :  { %5504 = vmatmul.mubr.msk.f32.vlgmr.msra.gmra.mrb[14].mxu0 %vm212_vm3, %v1383_v12 }
 0xe1c   :  { %5927 = vmatpush3.bf16.msra.mxu0 %v6778_v11  ;;  %5525 = vmatprep.mubr.msk.f32.mxu0 %vm6603_vm0, %v6601_v0  ;;  %v7012_v13 = vpop.permute.xlu1 %1296 }
 0xe1d   :  { %5928 = vmatprep.subr.bf16.mxu0 %v6602_v1  ;;  %5493 = vmatmul.mubr.msk.f32.vlgmr.msra.gmra.mrb[10].mxu1 %vm212_vm3, %v7012_v13 }
 0xe1e   :  { %5921 = vmatpush3.bf16.msra.mxu1 %v6768_v8  ;;  %5514 = vmatprep.mubr.msk.f32.mxu1 %vm6603_vm0, %v6601_v0 }
 0xe1f   :  { %5922 = vmatprep.subr.bf16.mxu1 %v6602_v1 }
 0xe20   :  { %5930 = vmatpush3.bf16.msra.mxu0 %v6798_v17 }
 0xe21   :  { %5937 = vmatprep.subr.bf16.mxu0 %v6602_v1 }
 0xe22   :  { %5924 = vmatpush3.bf16.msra.mxu1 %v6794_v16 }
 0xe23   :  { %5931 = vmatprep.subr.bf16.mxu1 %v6602_v1 }
 0xeee   :  { %v1452_v14 = vpop.f32.mrb[14].mxu0 }
 0xeef   :  { %v1457_v15 = vrot.slane %v1452_v14, 4  ;;  %v5505_v18 = vpop.f32.mrb[15].mxu0 }
 0xef0   :  { %v1373_v21 = vpop.f32.mrb[10].mxu1 }
 0xef1   :  { %v1459_v19 = vadd.f32 %v1457_v15, %v6830_v26  ;;  %v1378_v24 = vrot.slane %v1373_v21, 6  ;;  %v5494_v27 = vpop.f32.mrb[11].mxu1 }
 0xef3   :  { %6229 = vtanh.f32 %v1459_v19  ;;  %v1380_v28 = vadd.f32 %v1378_v24, %v6833_v29  ;;  %v5097_v32 = vmul.f32 -1.442695, %v1459_v19 }
 0xef5   :  { %6231 = vtanh.f32 %v1380_v28  ;;  %v5096_v33 = vmul.f32 -1.442695, %v1380_v28 }
 0xef6   :  { %6233 = vpow2.f32 %v5097_v32 }
 0xef7   :  { %6235 = vpow2.f32 %v5096_v33 }
 0xefd   :  { %v6230_v30 = vpop.eup %6229 }
 0xefe   :  { %1499 = vrot.lane.b32.xlu0 %v6230_v30, %s6604_s3 }
 0xeff   :  { %v6232_v31 = vpop.eup %6231 }
 0xf00   :  { %1472 = vrot.lane.b32.xlu1 %v6232_v31, %s6604_s3  ;;  %v6234_v35 = vpop.eup %6233 }
 0xf01   :  { %v6236_v36 = vpop.eup %6235  ;;  %v1490_v38 = vadd.f32 1.0, %v6234_v35 }
 0xf02   :  { %v1463_v40 = vadd.f32 1.0, %v6236_v36 }
 0xf03   :  { %6237 = vrcp.f32 %v1490_v38 }
 0xf04   :  { %6239 = vrcp.f32 %v1463_v40 }
 0xf0d   :  { %v6238_v41 = vpop.eup %6237 }
 0xf0e   :  { %v6240_v45 = vpop.eup %6239  ;;  %v1497_v49 = vmul.f32 %v6238_v41, %v1495_v48 }
 0xf0f   :  { %v1470_v55 = vmul.f32 %v6240_v45, %v1468_v51 }
 0xf70   :  { %v1500_v43 = vpop.permute.xlu0 %1499 }
 0xf71   :  { %v1502_v44 = vmul.f32 %v6238_v41, %v1500_v43 }
 0xf72   :  { %v1473_v46 = vpop.permute.xlu1 %1472 }
 0xf73   :  { %1504 = vrot.lane.b32.xlu0 %v1502_v44, %s6605_s20  ;;  %v1475_v47 = vmul.f32 %v6240_v45, %v1473_v46 }
 0xf75   :  { %1477 = vrot.lane.b32.xlu1 %v1475_v47, %s6605_s20 }
 0xfe5   :  { %v1505_v52 = vpop.permute.xlu0 %1504 }
 0xfe6   :  { %v7033_v54 = vadd.f32 %v1505_v52, %v1497_v49 }
 0xfe7   :  { %v1478_v56 = vpop.permute.xlu1 %1477 }
 0xfe8   :  { %6241 = vtanh.f32 %v7033_v54  ;;  %v7036_v57 = vadd.f32 %v1478_v56, %v1470_v55  ;;  %v1717_v36 = vrot.slane %v7033_v54, 2 }
 0xfea   :  { %6243 = vtanh.f32 %v7036_v57  ;;  %v1690_v40 = vrot.slane %v7036_v57, 6 }
 0xff2   :  { %v6242_v58 = vpop.eup %6241 }
 0xff3   :  { %1510 = vrot.lane.b32.xlu0 %v6242_v58, %s6604_s3 }
 0xff4   :  { %v6244_v59 = vpop.eup %6243 }
 0xff5   :  { %1483 = vrot.lane.b32.xlu1 %v6244_v59, %s6604_s3 }
0x1065   :  { %v1511_v34 = vpop.permute.xlu0 %1510 }
0x1066   :  { %v7041_v60 = vmul.f32 %v6238_v41, %v1511_v34 }
0x1067   :  { %v1484_v62 = vpop.permute.xlu1 %1483 }
0x1068   :  { %v1603_v61 = vrot.slane %v7041_v60, 4  ;;  %v7044_v2 = vmul.f32 %v6240_v45, %v1484_v62 }
0x106a   :  { %1604 = vrot.lane.b32.xlu0 %v1603_v61, %s6605_s20  ;;  %v1524_v37 = vrot.slane %v7044_v2, 2 }
0x106c   :  { %1525 = vrot.lane.b32.xlu1 %v1524_v37, %s6605_s20 }
0x10dc   :  { %v1605_v3 = vpop.permute.xlu0 %1604 }
0x10dd   :  { %5526 = vmatmul.mubr.msk.f32.vlgmr.msra.gmra.mrb[16].mxu0 %vm212_vm3, %v1605_v3 }
0x10de   :  { %5939 = vmatpush3.bf16.msra.mxu0 %v6778_v11  ;;  %5547 = vmatprep.mubr.msk.f32.mxu0 %vm6603_vm0, %v6601_v0  ;;  %v1526_v4 = vpop.permute.xlu1 %1525 }
0x10df   :  { %5940 = vmatprep.subr.bf16.mxu0 %v6602_v1  ;;  %5515 = vmatmul.mubr.msk.f32.vlgmr.msra.gmra.mrb[12].mxu1 %vm212_vm3, %v1526_v4 }
0x10e0   :  { %5933 = vmatpush3.bf16.msra.mxu1 %v6768_v8  ;;  %5536 = vmatprep.mubr.msk.f32.mxu1 %vm6603_vm0, %v6601_v0 }
0x10e1   :  { %5934 = vmatprep.subr.bf16.mxu1 %v6602_v1 }
0x10e2   :  { %5942 = vmatpush3.bf16.msra.mxu0 %v6798_v17 }
0x10e3   :  { %5959 = vmatprep.subr.bf16.mxu0 %v6602_v1 }
0x10e4   :  { %5936 = vmatpush3.bf16.msra.mxu1 %v6794_v16 }
0x11b0   :  { %v1674_v11 = vpop.f32.mrb[16].mxu0 }
0x11b1   :  { %v1679_v5 = vrot.slane %v1674_v11, 6  ;;  %v5527_v7 = vpop.f32.mrb[17].mxu0 }
0x11b2   :  { %v1595_v10 = vpop.f32.mrb[12].mxu1 }
0x11b3   :  { %v1681_v9 = vadd.f32 %v1679_v5, %v6830_v26  ;;  %v1600_v12 = vrot.slane %v1595_v10, 4  ;;  %v5516_v14 = vpop.f32.mrb[13].mxu1 }
0x11b5   :  { %6245 = vtanh.f32 %v1681_v9  ;;  %v1602_v8 = vadd.f32 %v1600_v12, %v6833_v29  ;;  %v5101_v18 = vmul.f32 -1.442695, %v1681_v9 }
0x11b7   :  { %6247 = vtanh.f32 %v1602_v8  ;;  %v5100_v16 = vmul.f32 -1.442695, %v1602_v8 }
0x11b8   :  { %6249 = vpow2.f32 %v5101_v18 }
0x11b9   :  { %6251 = vpow2.f32 %v5100_v16 }
0x11bf   :  { %v6246_v15 = vpop.eup %6245 }
0x11c0   :  { %1721 = vrot.lane.b32.xlu0 %v6246_v15, %s6604_s3 }
0x11c1   :  { %v6248_v17 = vpop.eup %6247 }
0x11c2   :  { %1694 = vrot.lane.b32.xlu1 %v6248_v17, %s6604_s3  ;;  %v6250_v19 = vpop.eup %6249 }
0x11c3   :  { %v6252_v21 = vpop.eup %6251  ;;  %v1712_v24 = vadd.f32 1.0, %v6250_v19 }
0x11c4   :  { %v1685_v27 = vadd.f32 1.0, %v6252_v21 }
0x11c5   :  { %6253 = vrcp.f32 %v1712_v24 }
0x11c6   :  { %6255 = vrcp.f32 %v1685_v27 }
0x11cf   :  { %v6254_v28 = vpop.eup %6253 }
0x11d0   :  { %v6256_v32 = vpop.eup %6255  ;;  %v1719_v38 = vmul.f32 %v6254_v28, %v1717_v36  ;;  %v1968_v36 = vld [vmem:[#allocation4 + $0x8] sm:$0xff] }
0x11d1   :  { %v1692_v44 = vmul.f32 %v6256_v32, %v1690_v40 }
0x1232   :  { %v1722_v30 = vpop.permute.xlu0 %1721 }
0x1233   :  { %v1724_v31 = vmul.f32 %v6254_v28, %v1722_v30 }
0x1234   :  { %v1695_v33 = vpop.permute.xlu1 %1694 }
0x1235   :  { %1726 = vrot.lane.b32.xlu0 %v1724_v31, %s6605_s20  ;;  %v1697_v35 = vmul.f32 %v6256_v32, %v1695_v33 }
0x1237   :  { %1699 = vrot.lane.b32.xlu1 %v1697_v35, %s6605_s20 }
0x12a7   :  { %v1727_v41 = vpop.permute.xlu0 %1726 }
0x12a8   :  { %v1729_v43 = vadd.f32 %v1727_v41, %v1719_v38  ;;  %v1970_v38 = vld [vmem:[#allocation4 + $0x18] sm:$0xff]  ;;  %v1972_v41 = vld [vmem:[#allocation4 + $0x28] sm:$0xff] }
0x12a9   :  { %v1700_v45 = vpop.permute.xlu1 %1699  ;;  %v5943_v40 = vpack.c.bf16 %v1970_v38, %v1968_v36  ;;  %v1991_v36 = vld [vmem:[%s7708_s6] sm:$0x3] }
0x12aa   :  { %6257 = vtanh.f32 %v1729_v43  ;;  %v1702_v46 = vadd.f32 %v1700_v45, %v1692_v44  ;;  %v1936_v19 = vrot.slane %v1729_v43, 2  ;;  %v1974_v43 = vld [vmem:[#allocation4 + $0x38] sm:$0xff]  ;;  %v1971_v45 = vld [vmem:[#allocation4 + $0x20] sm:$0xff]  ;;  %v2000_v38 = vrot.slane %v1991_v36, %v6822_v20 }
0x12ab   :  { %v5947_v44 = vpack.c.bf16 %v1974_v43, %v1972_v41  ;;  %5944 = vmatprep.subr.bf16.mxu1 %v5943_v40  ;;  %v1996_v41 = vrot.slane %v1991_v36, %v6828_v23 }
0x12ac   :  { %6259 = vtanh.f32 %v1702_v46 }
0x12b4   :  { %v6258_v47 = vpop.eup %6257 }
0x12b5   :  { %1732 = vrot.lane.b32.xlu0 %v6258_v47, %s6604_s3 }
0x12b6   :  { %v6260_v48 = vpop.eup %6259 }
0x12b7   :  { %1705 = vrot.lane.b32.xlu1 %v6260_v48, %s6604_s3  ;;  %v1978_v48 = vld [vmem:[#allocation4 + $0x58] sm:$0xff] }
0x1327   :  { %v1733_v49 = vpop.permute.xlu0 %1732 }
0x1328   :  { %v7072_v51 = vmul.f32 %v6254_v28, %v1733_v49  ;;  %v1909_v28 = vrot.slane %v1702_v46, 6  ;;  %v1983_v46 = vld [vmem:[#allocation7] sm:$0xff] }
0x1329   :  { %v1706_v54 = vpop.permute.xlu1 %1705 }
0x132a   :  { %v1825_v52 = vrot.slane %v7072_v51, 2  ;;  %v7075_v55 = vmul.f32 %v6256_v32, %v1706_v54  ;;  %v1987_v54 = vld [vmem:[#allocation7 + $0x20] sm:$0xff] }
0x132c   :  { %1826 = vrot.lane.b32.xlu0 %v1825_v52, %s6605_s20  ;;  %v1746_v56 = vrot.slane %v7075_v55, 4  ;;  %v1977_v52 = vld [vmem:[#allocation4 + $0x50] sm:$0xff] }
0x132e   :  { %1747 = vrot.lane.b32.xlu1 %v1746_v56, %s6605_s20 }
0x139e   :  { %v1827_v57 = vpop.permute.xlu0 %1826 }
0x139f   :  { %5548 = vmatmul.mubr.msk.f32.vlgmr.msra.gmra.mrb[18].mxu0 %vm212_vm3, %v1827_v57 }
0x13a0   :  { %5558 = vmatprep.mubr.msk.f32.mxu0 %vm6603_vm0, %v6601_v0  ;;  %v1748_v58 = vpop.permute.xlu1 %1747 }
0x13a1   :  { %5537 = vmatmul.mubr.msk.f32.vlgmr.msra.gmra.mrb[14].mxu1 %vm212_vm3, %v1748_v58  ;;  %v1980_v58 = vld [vmem:[#allocation4 + $0x68] sm:$0xff] }
0x13a2   :  { %2074 = vmatprep.mubr.f32.mxu1 %v6601_v0 }
0x1472   :  { %v1896_v59 = vpop.f32.mrb[18].mxu0 }
0x1473   :  { %v1900_v34 = vadd.f32 %v1896_v59, %v6830_v26  ;;  %v5549_v61 = vpop.f32.mrb[19].mxu0  ;;  %v1982_v59 = vld [vmem:[#allocation4 + $0x78] sm:$0xff] }
0x1474   :  { %v1817_v62 = vpop.f32.mrb[14].mxu1  ;;  %v1981_v61 = vld [vmem:[#allocation4 + $0x70] sm:$0xff] }
0x1475   :  { %6261 = vtanh.f32 %v1900_v34  ;;  %v1822_v37 = vrot.slane %v1817_v62, 2  ;;  %v5538_v3 = vpop.f32.mrb[15].mxu1  ;;  %v5105_v7 = vmul.f32 -1.442695, %v1900_v34  ;;  %v1979_v34 = vld [vmem:[#allocation4 + $0x60] sm:$0xff] }
0x1476   :  { %v5957_v62 = vpack.c.bf16 %v1981_v61, %v1979_v34 }
0x1477   :  { %v1824_v4 = vadd.f32 %v1822_v37, %v6833_v29  ;;  %v1986_v37 = vld [vmem:[#allocation7 + $0x18] sm:$0xff] }
0x1479   :  { %6263 = vtanh.f32 %v1824_v4  ;;  %v5104_v9 = vmul.f32 -1.442695, %v1824_v4  ;;  %v1988_v4 = vld [vmem:[#allocation7 + $0x28] sm:$0xff] }
0x147a   :  { %6265 = vpow2.f32 %v5105_v7 }
0x147b   :  { %6267 = vpow2.f32 %v5104_v9 }
0x147f   :  { %v6262_v11 = vpop.eup %6261 }
0x1480   :  { %1940 = vrot.lane.b32.xlu0 %v6262_v11, %s6604_s3  ;;  %v1990_v11 = vld [vmem:[#allocation7 + $0x38] sm:$0xff] }
0x1483   :  { %v6264_v5 = vpop.eup %6263 }
0x1484   :  { %1913 = vrot.lane.b32.xlu1 %v6264_v5, %s6604_s3  ;;  %v6266_v10 = vpop.eup %6265  ;;  %v7138_v5 = vpack.c.bf16 %v1990_v11, %v1988_v4 }
0x1485   :  { %v1931_v26 = vadd.f32 1.0, %v6266_v10  ;;  %v6268_v12 = vpop.eup %6267 }
0x1486   :  { %v1904_v14 = vadd.f32 1.0, %v6268_v12 }
0x1487   :  { %6269 = vrcp.f32 %v1931_v26 }
0x1488   :  { %6271 = vrcp.f32 %v1904_v14 }
0x1491   :  { %v7089_v8 = vpop.eup %6269 }
0x1492   :  { %v7093_v17 = vpop.eup %6271  ;;  %v1938_v21 = vmul.f32 %v7089_v8, %v1936_v19 }
0x1493   :  { %v1911_v30 = vmul.f32 %v7093_v17, %v1909_v28 }
0x14f2   :  { %v1941_v29 = vpop.permute.xlu0 %1940 }
0x14f3   :  { %v1943_v15 = vmul.f32 %v7089_v8, %v1941_v29 }
0x14f5   :  { %1945 = vrot.lane.b32.xlu0 %v1943_v15, %s6605_s20 }
0x14f6   :  { %v1914_v18 = vpop.permute.xlu1 %1913 }
0x14f7   :  { %v1916_v16 = vmul.f32 %v7093_v17, %v1914_v18 }
0x14f9   :  { %1918 = vrot.lane.b32.xlu1 %v1916_v16, %s6605_s20 }
0x1567   :  { %v1946_v24 = vpop.permute.xlu0 %1945 }
0x1568   :  { %v1948_v27 = vadd.f32 %v1946_v24, %v1938_v21 }
0x156a   :  { %6273 = vtanh.f32 %v1948_v27 }
0x156b   :  { %v1919_v31 = vpop.permute.xlu1 %1918 }
0x156c   :  { %v1921_v32 = vadd.f32 %v1919_v31, %v1911_v30 }
0x156e   :  { %6275 = vtanh.f32 %v1921_v32 }
0x1574   :  { %v6274_v33 = vpop.eup %6273 }
0x1575   :  { %1951 = vrot.lane.b32.xlu0 %v6274_v33, %s6604_s3 }
0x1578   :  { %v6276_v35 = vpop.eup %6275 }
0x1579   :  { %631 = vrot.lane.b32.xlu0 %v6892_v53, %s6605_s20  ;;  %1924 = vrot.lane.b32.xlu1 %v6276_v35, %s6604_s3  ;;  %v1967_v53 = vld [vmem:[#allocation4] sm:$0xff] }
0x157d   :  { %1076 = vrot.lane.b32.xlu0 %v6969_v25, %s6605_s20  ;;  %855 = vrot.lane.b32.xlu1 %v6930_v42, %s6605_s20  ;;  %v1969_v25 = vld [vmem:[#allocation4 + $0x10] sm:$0xff] }
0x157e   :  { %v5945_v42 = vpack.c.bf16 %v1969_v25, %v1967_v53 }
0x1580   :  { %5946 = vmatpush1.bf16.msra.mxu1 %v5945_v42 }
0x1581   :  { %1520 = vrot.lane.b32.xlu0 %v7041_v60, %s6604_s3  ;;  %1301 = vrot.lane.b32.xlu1 %v7003_v6, %s6604_s3  ;;  %v1973_v60 = vld [vmem:[#allocation4 + $0x30] sm:$0xff] }
0x1582   :  { %v1985_v6 = vld [vmem:[#allocation7 + $0x10] sm:$0xff]  ;;  %5948 = vmatprep.subr.bf16.mxu1 %v5947_v44 }
0x1583   :  { %v7117_v47 = vpack.c.bf16 %v1985_v6, %v1983_v46 }
0x1585   :  { %637 = vrot.lane.b32.xlu0 %v6889_v50, %s6604_s3  ;;  %1742 = vrot.lane.b32.xlu1 %v7072_v51, %s6604_s3  ;;  %v5949_v50 = vpack.c.bf16 %v1973_v60, %v1971_v45  ;;  %v1975_v51 = vld [vmem:[#allocation4 + $0x40] sm:$0xff] }
0x1586   :  { %5961 = vmatpush3.bf16.msra.mxu0 %v7117_v47  ;;  %v5953_v56 = vpack.c.bf16 %v1977_v52, %v1975_v51 }
0x1587   :  { %5962 = vmatprep.subr.bf16.mxu0 %v6602_v1  ;;  %5950 = vmatpush1.bf16.msra.mxu1 %v5949_v50 }
0x1589   :  { %1082 = vrot.lane.b32.xlu0 %v6965_v22, %s6604_s3  ;;  %416 = vrot.lane.b32.xlu1 %v6853_v63, %s6604_s3  ;;  %v1976_v22 = vld [vmem:[#allocation4 + $0x48] sm:$0xff]  ;;  %v1989_v63 = vld [vmem:[#allocation7 + $0x30] sm:$0xff] }
0x158a   :  { %v5951_v49 = vpack.c.bf16 %v1978_v48, %v1976_v22  ;;  %v7127_v57 = vpack.c.bf16 %v1989_v63, %v1987_v54 }
0x158c   :  { %5952 = vmatprep.subr.bf16.mxu1 %v5951_v49  ;;  %5964 = vmatpush3.bf16.msra.mxu0 %v7127_v57 }
0x158d   :  { %861 = vrot.lane.b32.xlu1 %v6927_v39, %s6604_s3  ;;  %5954 = vmatpush1.bf16.msra.mxu1 %v5953_v56  ;;  %v5955_v39 = vpack.c.bf16 %v1982_v59, %v1980_v58 }
0x158e   :  { %5965 = vmatprep.subr.bf16.mxu0 %v6602_v1 }
0x158f   :  { %5956 = vmatprep.subr.bf16.mxu1 %v5955_v39  ;;  %5559 = vmatmul.mubr.f32.vlgmr.msra.gmra.mrb[20].mxu0 %v6601_v0 }
0x1590   :  { %5569 = vmatprep.mubr.msk.f32.mxu0 %vm6603_vm0, %v6601_v0 }
0x1591   :  { %1515 = vrot.lane.b32.xlu1 %v7044_v2, %s6605_s20  ;;  %v1984_v2 = vld [vmem:[#allocation7 + $0x8] sm:$0xff]  ;;  %5958 = vmatpush1.bf16.msra.mxu1 %v5957_v62 }
0x1592   :  { %v7131_v3 = vpack.c.bf16 %v1986_v37, %v1984_v2  ;;  %5971 = vmatprep.subr.bf16.mxu1 %v6602_v1 }
0x1594   :  { %5967 = vmatpush3.bf16.msra.mxu0 %v7131_v3 }
0x1595   :  { %5968 = vmatprep.subr.bf16.mxu0 %v6602_v1 }
0x1598   :  { %5970 = vmatpush3.bf16.msra.mxu0 %v7138_v5 }
0x1599   :  { %5977 = vmatprep.subr.bf16.mxu0 %v6602_v1 }
0x159b   :  { %5570 = vmatmul.mubr.f32.vlgmr.msra.gmra.mrb[22].mxu0 %v6601_v0 }
0x159c   :  { %5979 = vmatpush3.bf16.msra.mxu0 %v7131_v3  ;;  %5591 = vmatprep.mubr.msk.f32.mxu0 %vm6603_vm0, %v6601_v0 }
0x159d   :  { %5980 = vmatprep.subr.bf16.mxu0 %v6602_v1 }
0x15a0   :  { %5982 = vmatpush3.bf16.msra.mxu0 %v7138_v5 }
0x15a1   :  { %5989 = vmatprep.subr.bf16.mxu0 %v6602_v1 }
0x15e7   :  { %v1952_v7 = vpop.permute.xlu0 %1951 }
0x15e8   :  { %v1954_v9 = vmul.f32 %v7089_v8, %v1952_v7 }
0x15ea   :  { %1961 = vrot.lane.b32.xlu0 %v1954_v9, %s6604_s3 }
0x15eb   :  { %v632_v10 = vpop.permute.xlu0 %631  ;;  %v1925_v26 = vpop.permute.xlu1 %1924 }
0x15ec   :  { %635 = vst.msk [vmem:[#allocation2] sm:$0xc] %vm634_vm5, %v632_v10  ;;  %v1927_v12 = vmul.f32 %v7093_v17, %v1925_v26 }
0x15ee   :  { %1737 = vrot.lane.b32.xlu0 %v7075_v55, %s6605_s20  ;;  %1956 = vrot.lane.b32.xlu1 %v1927_v12, %s6605_s20 }
0x15ef   :  { %v1077_v14 = vpop.permute.xlu0 %1076  ;;  %v856_v8 = vpop.permute.xlu1 %855 }
0x15f0   :  { %1080 = vst.msk [vmem:[#allocation2] sm:$0xc0] %vm1079_vm6, %v1077_v14 }
0x15f1   :  { %859 = vst.msk [vmem:[#allocation2] sm:$0x30] %vm858_vm7, %v856_v8 }
0x15f3   :  { %v1521_v29 = vpop.permute.xlu0 %1520  ;;  %v1302_v15 = vpop.permute.xlu1 %1301 }
0x15f4   :  { %1523 = vst.msk [vmem:[#allocation2] sm:$0x30] %vm640_vm8, %v1521_v29 }
0x15f5   :  { %1304 = vst.msk [vmem:[#allocation2] sm:$0xc0] %vm419_vm9, %v1302_v15 }
0x15f7   :  { %v638_v55 = vpop.permute.xlu0 %637  ;;  %v1743_v17 = vpop.permute.xlu1 %1742 }
0x15f8   :  { %641 = vst.msk [vmem:[#allocation2 + $0x8] sm:$0x30] %vm640_vm8, %v638_v55 }
0x15f9   :  { %1745 = vst.msk [vmem:[#allocation2] sm:$0xc] %vm864_vm10, %v1743_v17 }
0x15fb   :  { %v1083_v18 = vpop.permute.xlu0 %1082  ;;  %v417_v16 = vpop.permute.xlu1 %416 }
0x15fc   :  { %1086 = vst.msk [vmem:[#allocation2 + $0x8] sm:$0x3] %vm1085_vm11, %v1083_v18 }
0x15fd   :  { %1299 = vst.msk [vmem:[#allocation2 + $0x8] sm:$0x3] %vm413_vm4, %v7012_v13 }
0x15fe   :  { %420 = vst.msk [vmem:[#allocation2 + $0x8] sm:$0xc0] %vm419_vm9, %v417_v16 }
0x15ff   :  { %v862_v19 = vpop.permute.xlu1 %861 }
0x1600   :  { %865 = vst.msk [vmem:[#allocation2 + $0x8] sm:$0xc] %vm864_vm10, %v862_v19 }
0x1603   :  { %v1516_v21 = vpop.permute.xlu1 %1515 }
0x1604   :  { %1518 = vst.msk [vmem:[#allocation2 + $0x8] sm:$0xc] %vm634_vm5, %v1516_v21 }
0x165c   :  { %v1962_v24 = vpop.permute.xlu0 %1961 }
0x165d   :  { %1964 = vst.msk [vmem:[#allocation2] sm:$0x3] %vm1085_vm11, %v1962_v24 }
0x1660   :  { %v1738_v27 = vpop.permute.xlu0 %1737  ;;  %v1957_v28 = vpop.permute.xlu1 %1956 }
0x1661   :  { %1740 = vst.msk [vmem:[#allocation2 + $0x8] sm:$0x30] %vm858_vm7, %v1738_v27 }
0x1662   :  { %1959 = vst.msk [vmem:[#allocation2 + $0x8] sm:$0xc0] %vm1079_vm6, %v1957_v28  ;;  %v2153_v31 = vpop.f32.mrb[20].mxu0 }
0x1663   :  { %v5560_v32 = vpop.f32.mrb[21].mxu0 }
0x1664   :  { %v1965_v30 = vld [vmem:[#allocation2] sm:$0xff] }
0x1665   :  { %5106 = vmatmul.mubr.msk.f32.vlgmr.msra.gmra.mrb[16].mxu1 %vm2003_vm12, %v1965_v30 }
0x1666   :  { %2080 = vmatprep.mubr.f32.mxu1 %v6601_v0  ;;  %5973 = vmatpush3.bf16.msra.mxu1 %v7117_v47 }
0x1667   :  { %5974 = vmatprep.subr.bf16.mxu1 %v6602_v1 }
0x1669   :  { %v1966_v13 = vld [vmem:[#allocation2 + $0x8] sm:$0xff] }
0x166a   :  { %5107 = vmatmul.mubr.msk.f32.gmra.mrb[18].mxu1 %vm2003_vm12, %v1966_v13 }
0x166b   :  { %5976 = vmatpush3.bf16.msra.mxu1 %v7127_v57  ;;  %5580 = vmatprep.mubr.msk.f32.mxu1 %vm6603_vm0, %v6601_v0 }
0x166c   :  { %5983 = vmatprep.subr.bf16.mxu1 %v6602_v1 }
0x166e   :  { %v2224_v33 = vpop.f32.mrb[22].mxu0 }
0x166f   :  { %v5571_v35 = vpop.f32.mrb[23].mxu0  ;;  %v2229_v42 = vrot.slane %v2224_v33, 2 }
0x1738   :  { %v2076_v53 = vpop.f32.mrb[16].mxu1 }
0x1739   :  { %v2078_v40 = vpop.f32.mrb[17].mxu1  ;;  %v7195_v54 = vadd.f32 %v2076_v53, %v1996_v41 }
0x173a   :  { %v7185_v25 = vadd.f32 %v2078_v40, %v2000_v38 }
0x173b   :  { %v2157_v59 = vadd.f32 %v2153_v31, %v7195_v54 }
0x173d   :  { %v2082_v43 = vpop.f32.mrb[18].mxu1  ;;  %v5108_v61 = vmul.f32 -1.442695, %v2157_v59 }
0x173e   :  { %v7188_v44 = vadd.f32 %v2082_v43, %v1996_v41  ;;  %v2084_v45 = vpop.f32.mrb[19].mxu1 }
0x173f   :  { %v7190_v60 = vadd.f32 %v2084_v45, %v2000_v38 }
0x1741   :  { %v2231_v46 = vadd.f32 %v2229_v42, %v7190_v60 }
0x1743   :  { %6277 = vtanh.f32 %v2231_v46  ;;  %v5109_v50 = vmul.f32 -1.442695, %v2231_v46 }
0x1745   :  { %6279 = vpow2.f32 %v5109_v50 }
0x174d   :  { %v6278_v6 = vpop.eup %6277 }
0x174e   :  { %2265 = vrot.lane.b32.xlu0 %v6278_v6, %s6604_s3 }
0x174f   :  { %v6280_v22 = vpop.eup %6279 }
0x1750   :  { %v2259_v48 = vadd.f32 1.0, %v6280_v22 }
0x1752   :  { %6281 = vrcp.f32 %v2259_v48 }
0x175c   :  { %v6282_v49 = vpop.eup %6281 }
0x175d   :  { %v2263_v56 = vmul.f32 0.0, %v6282_v49 }
0x17c0   :  { %v2266_v51 = vpop.permute.xlu0 %2265 }
0x17c1   :  { %v2268_v52 = vmul.f32 %v6282_v49, %v2266_v51 }
0x17c3   :  { %2270 = vrot.lane.b32.xlu1 %v2268_v52, %s6605_s20 }
0x1835   :  { %v2271_v63 = vpop.permute.xlu1 %2270 }
0x1836   :  { %v7197_v58 = vadd.f32 %v2271_v63, %v2263_v56 }
0x1838   :  { %6283 = vtanh.f32 %v7197_v58  ;;  %v2480_v33 = vrot.slane %v7197_v58, 2 }
0x1839   :  { %6285 = vtanh.f32 %v2157_v59 }
0x183a   :  { %6287 = vpow2.f32 %v5108_v61 }
0x1842   :  { %v6284_v39 = vpop.eup %6283 }
0x1843   :  { %2276 = vrot.lane.b32.xlu0 %v6284_v39, %s6604_s3  ;;  %v6286_v34 = vpop.eup %6285 }
0x1844   :  { %v6288_v2 = vpop.eup %6287 }
0x1845   :  { %v2235_v62 = vadd.f32 1.0, %v6288_v2 }
0x1847   :  { %2241 = vrot.lane.b32.xlu0 %v6286_v34, %s6604_s3  ;;  %6289 = vrcp.f32 %v2235_v62 }
0x1851   :  { %v6290_v7 = vpop.eup %6289 }
0x1852   :  { %v2239_v12 = vmul.f32 0.0, %v6290_v7 }
0x18b5   :  { %v2277_v37 = vpop.permute.xlu0 %2276 }
0x18b6   :  { %v7203_v4 = vmul.f32 %v6282_v49, %v2277_v37 }
0x18b8   :  { %v2366_v11 = vrot.slane %v7203_v4, 6 }
0x18b9   :  { %v2242_v9 = vpop.permute.xlu0 %2241 }
0x18ba   :  { %v2244_v10 = vmul.f32 %v6290_v7, %v2242_v9  ;;  %2367 = vrot.lane.b32.xlu1 %v2366_v11, %s6605_s20 }
0x18bc   :  { %2246 = vrot.lane.b32.xlu0 %v2244_v10, %s6605_s20 }
0x192c   :  { %v2368_v26 = vpop.permute.xlu1 %2367 }
0x192d   :  { %5592 = vmatmul.mubr.msk.f32.vlgmr.msra.gmra.mrb[24].mxu0 %vm212_vm3, %v2368_v26 }
0x192e   :  { %v2247_v14 = vpop.permute.xlu0 %2246  ;;  %5991 = vmatpush3.bf16.msra.mxu0 %v7131_v3  ;;  %5613 = vmatprep.mubr.msk.f32.mxu0 %vm6603_vm0, %v6601_v0 }
0x192f   :  { %v7212_v8 = vadd.f32 %v2247_v14, %v2239_v12  ;;  %5992 = vmatprep.subr.bf16.mxu0 %v6602_v1 }
0x1931   :  { %6291 = vtanh.f32 %v7212_v8  ;;  %v2453_v63 = vrot.slane %v7212_v8, 6 }
0x1932   :  { %5994 = vmatpush3.bf16.msra.mxu0 %v7138_v5 }
0x1933   :  { %6001 = vmatprep.subr.bf16.mxu0 %v6602_v1 }
0x193b   :  { %v6292_v29 = vpop.eup %6291 }
0x193c   :  { %2252 = vrot.lane.b32.xlu0 %v6292_v29, %s6604_s3 }
0x19ae   :  { %v2253_v15 = vpop.permute.xlu0 %2252 }
0x19af   :  { %v2255_v55 = vmul.f32 %v6290_v7, %v2253_v15 }
0x19b1   :  { %2281 = vrot.lane.b32.xlu0 %v2255_v55, %s6605_s20 }
0x1a00   :  { %v2437_v17 = vpop.f32.mrb[24].mxu0 }
0x1a01   :  { %v2442_v18 = vrot.slane %v2437_v17, 4  ;;  %v5593_v16 = vpop.f32.mrb[25].mxu0 }
0x1a03   :  { %v2444_v19 = vadd.f32 %v2442_v18, %v7190_v60 }
0x1a05   :  { %6293 = vtanh.f32 %v2444_v19  ;;  %v5113_v27 = vmul.f32 -1.442695, %v2444_v19 }
0x1a07   :  { %6295 = vpow2.f32 %v5113_v27 }
0x1a0f   :  { %v6294_v21 = vpop.eup %6293 }
0x1a10   :  { %2484 = vrot.lane.b32.xlu1 %v6294_v21, %s6604_s3 }
0x1a11   :  { %v6296_v28 = vpop.eup %6295 }
0x1a12   :  { %v2475_v30 = vadd.f32 1.0, %v6296_v28 }
0x1a14   :  { %6297 = vrcp.f32 %v2475_v30 }
0x1a1e   :  { %v6298_v13 = vpop.eup %6297 }
0x1a1f   :  { %v2482_v35 = vmul.f32 %v6298_v13, %v2480_v33 }
0x1a23   :  { %v2282_v24 = vpop.permute.xlu0 %2281 }
0x1a24   :  { %2284 = vst.msk [vmem:[#allocation3] sm:$0x3] %vm413_vm4, %v2282_v24  ;;  %5581 = vmatmul.mubr.msk.f32.vlgmr.msra.gmra.mrb[20].mxu1 %vm212_vm3, %v2282_v24 }
0x1a25   :  { %5985 = vmatpush3.bf16.msra.mxu1 %v7117_v47  ;;  %5602 = vmatprep.mubr.msk.f32.mxu1 %vm6603_vm0, %v6601_v0 }
0x1a26   :  { %5986 = vmatprep.subr.bf16.mxu1 %v6602_v1 }
0x1a29   :  { %5988 = vmatpush3.bf16.msra.mxu1 %v7127_v57 }
0x1a2a   :  { %5995 = vmatprep.subr.bf16.mxu1 %v6602_v1 }
0x1a82   :  { %v2485_v31 = vpop.permute.xlu1 %2484 }
0x1a83   :  { %v2487_v32 = vmul.f32 %v6298_v13, %v2485_v31 }
0x1a85   :  { %2489 = vrot.lane.b32.xlu1 %v2487_v32, %s6605_s20 }
0x1af7   :  { %v2490_v36 = vpop.permute.xlu1 %2489  ;;  %v2358_v38 = vpop.f32.mrb[20].mxu1 }
0x1af8   :  { %v7232_v53 = vadd.f32 %v2490_v36, %v2482_v35  ;;  %v2363_v40 = vrot.slane %v2358_v38, 6  ;;  %v5582_v41 = vpop.f32.mrb[21].mxu1 }
0x1afa   :  { %6299 = vtanh.f32 %v7232_v53  ;;  %v2365_v43 = vadd.f32 %v2363_v40, %v7195_v54  ;;  %v2702_v18 = vrot.slane %v7232_v53, 2 }
0x1afc   :  { %6301 = vtanh.f32 %v2365_v43  ;;  %v5112_v46 = vmul.f32 -1.442695, %v2365_v43 }
0x1afe   :  { %6303 = vpow2.f32 %v5112_v46 }
0x1b04   :  { %v6300_v42 = vpop.eup %6299 }
0x1b05   :  { %2495 = vrot.lane.b32.xlu1 %v6300_v42, %s6604_s3 }
0x1b06   :  { %v6302_v45 = vpop.eup %6301 }
0x1b07   :  { %2457 = vrot.lane.b32.xlu0 %v6302_v45, %s6604_s3 }
0x1b08   :  { %v6304_v6 = vpop.eup %6303 }
0x1b09   :  { %v2448_v50 = vadd.f32 1.0, %v6304_v6 }
0x1b0b   :  { %6305 = vrcp.f32 %v2448_v50 }
0x1b15   :  { %v6306_v49 = vpop.eup %6305 }
0x1b16   :  { %v2455_v58 = vmul.f32 %v6306_v49, %v2453_v63 }
0x1b77   :  { %v2496_v22 = vpop.permute.xlu1 %2495 }
0x1b78   :  { %v7238_v48 = vmul.f32 %v6298_v13, %v2496_v22 }
0x1b79   :  { %v2458_v51 = vpop.permute.xlu0 %2457 }
0x1b7a   :  { %v2588_v52 = vrot.slane %v7238_v48, 4  ;;  %v2460_v56 = vmul.f32 %v6306_v49, %v2458_v51 }
0x1b7c   :  { %2589 = vrot.lane.b32.xlu1 %v2588_v52, %s6605_s20  ;;  %2462 = vrot.lane.b32.xlu0 %v2460_v56, %s6605_s20 }
0x1bee   :  { %v2590_v59 = vpop.permute.xlu1 %2589  ;;  %v2463_v39 = vpop.permute.xlu0 %2462 }
0x1bef   :  { %v7244_v34 = vadd.f32 %v2463_v39, %v2455_v58  ;;  %5614 = vmatmul.mubr.msk.f32.vlgmr.msra.gmra.mrb[26].mxu0 %vm212_vm3, %v2590_v59 }
0x1bf0   :  { %6003 = vmatpush3.bf16.msra.mxu0 %v7131_v3  ;;  %5635 = vmatprep.mubr.msk.f32.mxu0 %vm6603_vm0, %v6601_v0 }
0x1bf1   :  { %6307 = vtanh.f32 %v7244_v34  ;;  %6004 = vmatprep.subr.bf16.mxu0 %v6602_v1  ;;  %v2675_v42 = vrot.slane %v7244_v34, 6 }
0x1bf4   :  { %6006 = vmatpush3.bf16.msra.mxu0 %v7138_v5 }
0x1bf5   :  { %6013 = vmatprep.subr.bf16.mxu0 %v6602_v1 }
0x1bfb   :  { %v6308_v61 = vpop.eup %6307 }
0x1bfc   :  { %2468 = vrot.lane.b32.xlu0 %v6308_v61, %s6604_s3 }
0x1c6e   :  { %v2469_v2 = vpop.permute.xlu0 %2468 }
0x1c6f   :  { %v7255_v62 = vmul.f32 %v6306_v49, %v2469_v2 }
0x1c71   :  { %v2509_v37 = vrot.slane %v7255_v62, 2 }
0x1c73   :  { %2510 = vrot.lane.b32.xlu0 %v2509_v37, %s6605_s20 }
0x1cc2   :  { %v2659_v11 = vpop.f32.mrb[26].mxu0 }
0x1cc3   :  { %v2664_v7 = vrot.slane %v2659_v11, 6  ;;  %v5615_v9 = vpop.f32.mrb[27].mxu0 }
0x1cc5   :  { %v2666_v10 = vadd.f32 %v2664_v7, %v7190_v60 }
0x1cc7   :  { %6309 = vtanh.f32 %v2666_v10  ;;  %v5117_v14 = vmul.f32 -1.442695, %v2666_v10 }
0x1cc9   :  { %6311 = vpow2.f32 %v5117_v14 }
0x1cd1   :  { %v6310_v26 = vpop.eup %6309 }
0x1cd2   :  { %2706 = vrot.lane.b32.xlu1 %v6310_v26, %s6604_s3 }
0x1cd3   :  { %v6312_v8 = vpop.eup %6311 }
0x1cd4   :  { %v2697_v29 = vadd.f32 1.0, %v6312_v8 }
0x1cd6   :  { %6313 = vrcp.f32 %v2697_v29 }
0x1ce0   :  { %v6314_v15 = vpop.eup %6313 }
0x1ce1   :  { %v2704_v16 = vmul.f32 %v6314_v15, %v2702_v18 }
0x1ce5   :  { %v2511_v12 = vpop.permute.xlu0 %2510 }
0x1ce6   :  { %5603 = vmatmul.mubr.msk.f32.vlgmr.msra.gmra.mrb[22].mxu1 %vm212_vm3, %v2511_v12 }
0x1ce7   :  { %5997 = vmatpush3.bf16.msra.mxu1 %v7117_v47  ;;  %5624 = vmatprep.mubr.msk.f32.mxu1 %vm6603_vm0, %v6601_v0 }
0x1ce8   :  { %5998 = vmatprep.subr.bf16.mxu1 %v6602_v1 }
0x1ceb   :  { %6000 = vmatpush3.bf16.msra.mxu1 %v7127_v57 }
0x1cec   :  { %6007 = vmatprep.subr.bf16.mxu1 %v6602_v1 }
0x1d44   :  { %v2707_v55 = vpop.permute.xlu1 %2706 }
0x1d45   :  { %v2709_v17 = vmul.f32 %v6314_v15, %v2707_v55 }
0x1d47   :  { %2711 = vrot.lane.b32.xlu1 %v2709_v17, %s6605_s20 }
0x1db9   :  { %v2712_v19 = vpop.permute.xlu1 %2711  ;;  %v2580_v21 = vpop.f32.mrb[22].mxu1 }
0x1dba   :  { %v7270_v24 = vadd.f32 %v2712_v19, %v2704_v16  ;;  %v2585_v27 = vrot.slane %v2580_v21, 4  ;;  %v5604_v28 = vpop.f32.mrb[23].mxu1 }
0x1dbc   :  { %6315 = vtanh.f32 %v7270_v24  ;;  %v2587_v30 = vadd.f32 %v2585_v27, %v7195_v54  ;;  %v2921_v7 = vrot.slane %v7270_v24, 2 }
0x1dbe   :  { %6317 = vtanh.f32 %v2587_v30  ;;  %v5116_v32 = vmul.f32 -1.442695, %v2587_v30 }
0x1dc0   :  { %6319 = vpow2.f32 %v5116_v32 }
0x1dc6   :  { %v6316_v13 = vpop.eup %6315 }
0x1dc7   :  { %2717 = vrot.lane.b32.xlu1 %v6316_v13, %s6604_s3 }
0x1dc8   :  { %v6318_v31 = vpop.eup %6317 }
0x1dc9   :  { %2679 = vrot.lane.b32.xlu0 %v6318_v31, %s6604_s3 }
0x1dca   :  { %v6320_v33 = vpop.eup %6319 }
0x1dcb   :  { %v2670_v35 = vadd.f32 1.0, %v6320_v33 }
0x1dcd   :  { %6321 = vrcp.f32 %v2670_v35 }
0x1dd7   :  { %v6322_v53 = vpop.eup %6321 }
0x1dd8   :  { %v2677_v45 = vmul.f32 %v6322_v53, %v2675_v42 }
0x1e39   :  { %v2718_v36 = vpop.permute.xlu1 %2717 }
0x1e3a   :  { %v7276_v38 = vmul.f32 %v6314_v15, %v2718_v36 }
0x1e3b   :  { %v2680_v40 = vpop.permute.xlu0 %2679 }
0x1e3c   :  { %v2810_v41 = vrot.slane %v7276_v38, 2  ;;  %v2682_v43 = vmul.f32 %v6322_v53, %v2680_v40 }
0x1e3e   :  { %2811 = vrot.lane.b32.xlu1 %v2810_v41, %s6605_s20  ;;  %2684 = vrot.lane.b32.xlu0 %v2682_v43, %s6605_s20 }
0x1eb0   :  { %v2812_v46 = vpop.permute.xlu1 %2811  ;;  %v2685_v6 = vpop.permute.xlu0 %2684 }
0x1eb1   :  { %v7282_v50 = vadd.f32 %v2685_v6, %v2677_v45  ;;  %5636 = vmatmul.mubr.msk.f32.vlgmr.msra.gmra.mrb[28].mxu0 %vm212_vm3, %v2812_v46 }
0x1eb2   :  { %6015 = vmatpush3.bf16.msra.mxu0 %v7131_v3  ;;  %5657 = vmatprep.mubr.msk.f32.mxu0 %vm6603_vm0, %v6601_v0 }
0x1eb3   :  { %6323 = vtanh.f32 %v7282_v50  ;;  %6016 = vmatprep.subr.bf16.mxu0 %v6602_v1  ;;  %v2894_v30 = vrot.slane %v7282_v50, 6 }
0x1eb6   :  { %6018 = vmatpush3.bf16.msra.mxu0 %v7138_v5 }
0x1eb7   :  { %6025 = vmatprep.subr.bf16.mxu0 %v6602_v1 }
0x1ebd   :  { %v6324_v22 = vpop.eup %6323 }
0x1ebe   :  { %2690 = vrot.lane.b32.xlu0 %v6324_v22, %s6604_s3 }
0x1f30   :  { %v2691_v49 = vpop.permute.xlu0 %2690 }
0x1f31   :  { %v7293_v51 = vmul.f32 %v6322_v53, %v2691_v49 }
0x1f33   :  { %v2731_v52 = vrot.slane %v7293_v51, 4 }
0x1f35   :  { %2732 = vrot.lane.b32.xlu0 %v2731_v52, %s6605_s20 }
0x1f84   :  { %v2881_v56 = vpop.f32.mrb[28].mxu0 }
0x1f85   :  { %v2885_v63 = vadd.f32 %v2881_v56, %v7190_v60  ;;  %v5637_v58 = vpop.f32.mrb[29].mxu0 }
0x1f87   :  { %6325 = vtanh.f32 %v2885_v63  ;;  %v5121_v60 = vmul.f32 -1.442695, %v2885_v63 }
0x1f89   :  { %6327 = vpow2.f32 %v5121_v60 }
0x1f91   :  { %v6326_v59 = vpop.eup %6325 }
0x1f92   :  { %2925 = vrot.lane.b32.xlu1 %v6326_v59, %s6604_s3 }
0x1f93   :  { %v6328_v34 = vpop.eup %6327 }
0x1f94   :  { %v2916_v61 = vadd.f32 1.0, %v6328_v34 }
0x1f96   :  { %6329 = vrcp.f32 %v2916_v61 }
0x1fa0   :  { %v6330_v2 = vpop.eup %6329 }
0x1fa1   :  { %v2923_v9 = vmul.f32 %v6330_v2, %v2921_v7 }
0x1fa7   :  { %v2733_v39 = vpop.permute.xlu0 %2732 }
0x1fa8   :  { %5625 = vmatmul.mubr.msk.f32.vlgmr.msra.gmra.mrb[24].mxu1 %vm212_vm3, %v2733_v39 }
0x1fa9   :  { %6009 = vmatpush3.bf16.msra.mxu1 %v7117_v47  ;;  %5646 = vmatprep.mubr.msk.f32.mxu1 %vm6603_vm0, %v6601_v0 }
0x1faa   :  { %6010 = vmatprep.subr.bf16.mxu1 %v6602_v1 }
0x1fad   :  { %6012 = vmatpush3.bf16.msra.mxu1 %v7127_v57 }
0x1fae   :  { %6019 = vmatprep.subr.bf16.mxu1 %v6602_v1 }
0x2004   :  { %v2926_v37 = vpop.permute.xlu1 %2925 }
0x2005   :  { %v2928_v11 = vmul.f32 %v6330_v2, %v2926_v37 }
0x2007   :  { %2930 = vrot.lane.b32.xlu1 %v2928_v11, %s6605_s20 }
0x2079   :  { %v2931_v10 = vpop.permute.xlu1 %2930 }
0x207a   :  { %v7308_v26 = vadd.f32 %v2931_v10, %v2923_v9 }
0x207b   :  { %v2802_v12 = vpop.f32.mrb[24].mxu1 }
0x207c   :  { %6331 = vtanh.f32 %v7308_v26  ;;  %v2807_v14 = vrot.slane %v2802_v12, 2  ;;  %v5626_v8 = vpop.f32.mrb[25].mxu1  ;;  %v3139_v63 = vrot.slane %v7308_v26, 2 }
0x207e   :  { %v2809_v29 = vadd.f32 %v2807_v14, %v7195_v54 }
0x2080   :  { %6333 = vtanh.f32 %v2809_v29  ;;  %v5120_v17 = vmul.f32 -1.442695, %v2809_v29 }
0x2082   :  { %6335 = vpow2.f32 %v5120_v17 }
0x2086   :  { %v6332_v15 = vpop.eup %6331 }
0x2087   :  { %2936 = vrot.lane.b32.xlu1 %v6332_v15, %s6604_s3 }
0x208a   :  { %v6334_v55 = vpop.eup %6333 }
0x208b   :  { %2898 = vrot.lane.b32.xlu0 %v6334_v55, %s6604_s3 }
0x208c   :  { %v6336_v18 = vpop.eup %6335 }
0x208d   :  { %v2889_v16 = vadd.f32 1.0, %v6336_v18 }
0x208f   :  { %6337 = vrcp.f32 %v2889_v16 }
0x2099   :  { %v6338_v24 = vpop.eup %6337 }
0x209a   :  { %v2896_v13 = vmul.f32 %v6338_v24, %v2894_v30 }
0x20f9   :  { %v2937_v19 = vpop.permute.xlu1 %2936 }
0x20fa   :  { %v7314_v21 = vmul.f32 %v6330_v2, %v2937_v19 }
0x20fc   :  { %3026 = vrot.lane.b32.xlu1 %v7314_v21, %s6605_s20 }
0x20fd   :  { %v2899_v54 = vpop.permute.xlu0 %2898 }
0x20fe   :  { %v2901_v27 = vmul.f32 %v6338_v24, %v2899_v54 }
0x2100   :  { %2903 = vrot.lane.b32.xlu0 %v2901_v27, %s6605_s20 }
0x216e   :  { %v3027_v28 = vpop.permute.xlu1 %3026 }
0x216f   :  { %5658 = vmatmul.mubr.msk.f32.vlgmr.msra.gmra.mrb[30].mxu0 %vm212_vm3, %v3027_v28 }
0x2170   :  { %6027 = vmatpush3.bf16.msra.mxu0 %v7131_v3  ;;  %5679 = vmatprep.mubr.msk.f32.mxu0 %vm6603_vm0, %v6601_v0 }
0x2171   :  { %6028 = vmatprep.subr.bf16.mxu0 %v6602_v1 }
0x2172   :  { %v2904_v31 = vpop.permute.xlu0 %2903 }
0x2173   :  { %v7325_v32 = vadd.f32 %v2904_v31, %v2896_v13 }
0x2174   :  { %6030 = vmatpush3.bf16.msra.mxu0 %v7138_v5 }
0x2175   :  { %6339 = vtanh.f32 %v7325_v32  ;;  %6037 = vmatprep.subr.bf16.mxu0 %v6602_v1  ;;  %v3112_v15 = vrot.slane %v7325_v32, 6 }
0x217f   :  { %v6340_v33 = vpop.eup %6339 }
0x2180   :  { %2909 = vrot.lane.b32.xlu0 %v6340_v33, %s6604_s3 }
0x21f2   :  { %v2910_v35 = vpop.permute.xlu0 %2909 }
0x21f3   :  { %v7331_v36 = vmul.f32 %v6338_v24, %v2910_v35 }
0x21f5   :  { %v2950_v53 = vrot.slane %v7331_v36, 6 }
0x21f7   :  { %2951 = vrot.lane.b32.xlu0 %v2950_v53, %s6605_s20 }
0x2242   :  { %v3096_v40 = vpop.f32.mrb[30].mxu0 }
0x2243   :  { %v3101_v41 = vrot.slane %v3096_v40, 2  ;;  %v5659_v43 = vpop.f32.mrb[31].mxu0 }
0x2245   :  { %v3103_v42 = vadd.f32 %v3101_v41, %v7185_v25 }
0x2247   :  { %6341 = vtanh.f32 %v3103_v42  ;;  %v5125_v6 = vmul.f32 -1.442695, %v3103_v42 }
0x2249   :  { %6343 = vpow2.f32 %v5125_v6 }
0x2251   :  { %v6342_v45 = vpop.eup %6341 }
0x2252   :  { %3143 = vrot.lane.b32.xlu1 %v6342_v45, %s6604_s3 }
0x2253   :  { %v6344_v50 = vpop.eup %6343 }
0x2254   :  { %v3134_v22 = vadd.f32 1.0, %v6344_v50 }
0x2256   :  { %6345 = vrcp.f32 %v3134_v22 }
0x2260   :  { %v6346_v49 = vpop.eup %6345 }
0x2261   :  { %v3141_v58 = vmul.f32 %v6346_v49, %v3139_v63 }
0x2269   :  { %v2952_v46 = vpop.permute.xlu0 %2951 }
0x226a   :  { %5647 = vmatmul.mubr.msk.f32.vlgmr.msra.gmra.mrb[26].mxu1 %vm212_vm3, %v2952_v46 }
0x226b   :  { %6021 = vmatpush3.bf16.msra.mxu1 %v7117_v47  ;;  %5668 = vmatprep.mubr.msk.f32.mxu1 %vm6603_vm0, %v6601_v0 }
0x226c   :  { %6022 = vmatprep.subr.bf16.mxu1 %v6602_v1 }
0x226f   :  { %6024 = vmatpush3.bf16.msra.mxu1 %v7127_v57 }
0x2270   :  { %6031 = vmatprep.subr.bf16.mxu1 %v6602_v1 }
0x22c4   :  { %v3144_v52 = vpop.permute.xlu1 %3143 }
0x22c5   :  { %v3146_v56 = vmul.f32 %v6346_v49, %v3144_v52 }
0x22c7   :  { %3148 = vrot.lane.b32.xlu1 %v3146_v56, %s6605_s20 }
0x2339   :  { %v3149_v59 = vpop.permute.xlu1 %3148 }
0x233a   :  { %v7346_v39 = vadd.f32 %v3149_v59, %v3141_v58 }
0x233c   :  { %6347 = vtanh.f32 %v7346_v39  ;;  %v3358_v42 = vrot.slane %v7346_v39, 2 }
0x233d   :  { %v3021_v60 = vpop.f32.mrb[26].mxu1 }
0x233e   :  { %v3025_v34 = vadd.f32 %v3021_v60, %v7188_v44  ;;  %v5648_v61 = vpop.f32.mrb[27].mxu1 }
0x2340   :  { %6349 = vtanh.f32 %v3025_v34  ;;  %v5124_v11 = vmul.f32 -1.442695, %v3025_v34 }
0x2342   :  { %6351 = vpow2.f32 %v5124_v11 }
0x2346   :  { %v6348_v2 = vpop.eup %6347 }
0x2347   :  { %3154 = vrot.lane.b32.xlu1 %v6348_v2, %s6604_s3 }
0x234a   :  { %v6350_v37 = vpop.eup %6349 }
0x234b   :  { %3116 = vrot.lane.b32.xlu0 %v6350_v37, %s6604_s3 }
0x234c   :  { %v6352_v7 = vpop.eup %6351 }
0x234d   :  { %v3107_v9 = vadd.f32 1.0, %v6352_v7 }
0x234f   :  { %6353 = vrcp.f32 %v3107_v9 }
0x2359   :  { %v6354_v14 = vpop.eup %6353 }
0x235a   :  { %v3114_v17 = vmul.f32 %v6354_v14, %v3112_v15 }
0x23b9   :  { %v3155_v10 = vpop.permute.xlu1 %3154 }
0x23ba   :  { %v7352_v26 = vmul.f32 %v6346_v49, %v3155_v10 }
0x23bc   :  { %v3244_v12 = vrot.slane %v7352_v26, 6 }
0x23bd   :  { %v3117_v8 = vpop.permute.xlu0 %3116 }
0x23be   :  { %v3119_v29 = vmul.f32 %v6354_v14, %v3117_v8  ;;  %3245 = vrot.lane.b32.xlu1 %v3244_v12, %s6605_s20 }
0x23c0   :  { %3121 = vrot.lane.b32.xlu0 %v3119_v29, %s6605_s20 }
0x2430   :  { %v3246_v55 = vpop.permute.xlu1 %3245 }
0x2431   :  { %5680 = vmatmul.mubr.msk.f32.vlgmr.msra.gmra.mrb[32].mxu0 %vm212_vm3, %v3246_v55 }
0x2432   :  { %v3122_v18 = vpop.permute.xlu0 %3121  ;;  %6039 = vmatpush3.bf16.msra.mxu0 %v7131_v3  ;;  %5701 = vmatprep.mubr.msk.f32.mxu0 %vm6603_vm0, %v6601_v0 }
0x2433   :  { %v3124_v16 = vadd.f32 %v3122_v18, %v3114_v17  ;;  %6040 = vmatprep.subr.bf16.mxu0 %v6602_v1 }
0x2435   :  { %6355 = vtanh.f32 %v3124_v16  ;;  %v3331_v7 = vrot.slane %v3124_v16, 6 }
0x2436   :  { %6042 = vmatpush3.bf16.msra.mxu0 %v7138_v5 }
0x2437   :  { %6049 = vmatprep.subr.bf16.mxu0 %v6602_v1 }
0x243f   :  { %v6356_v19 = vpop.eup %6355 }
0x2440   :  { %3127 = vrot.lane.b32.xlu0 %v6356_v19, %s6604_s3 }
0x24b2   :  { %v3128_v24 = vpop.permute.xlu0 %3127 }
0x24b3   :  { %v3130_v54 = vmul.f32 %v6354_v14, %v3128_v24 }
0x24b5   :  { %3159 = vrot.lane.b32.xlu0 %v3130_v54, %s6605_s20 }
0x2504   :  { %v3315_v27 = vpop.f32.mrb[32].mxu0 }
0x2505   :  { %v3320_v28 = vrot.slane %v3315_v27, 4  ;;  %v5681_v30 = vpop.f32.mrb[33].mxu0 }
0x2507   :  { %v3322_v13 = vadd.f32 %v3320_v28, %v7185_v25 }
0x2509   :  { %6357 = vtanh.f32 %v3322_v13  ;;  %v5129_v33 = vmul.f32 -1.442695, %v3322_v13 }
0x250b   :  { %6359 = vpow2.f32 %v5129_v33 }
0x2513   :  { %v6358_v31 = vpop.eup %6357 }
0x2514   :  { %3362 = vrot.lane.b32.xlu1 %v6358_v31, %s6604_s3 }
0x2515   :  { %v6360_v35 = vpop.eup %6359 }
0x2516   :  { %v3353_v53 = vadd.f32 1.0, %v6360_v35 }
0x2518   :  { %6361 = vrcp.f32 %v3353_v53 }
0x2522   :  { %v6362_v40 = vpop.eup %6361 }
0x2523   :  { %v3360_v45 = vmul.f32 %v6362_v40, %v3358_v42 }
0x2527   :  { %v7369_v32 = vpop.permute.xlu0 %3159 }
0x2528   :  { %5669 = vmatmul.mubr.msk.f32.vlgmr.msra.gmra.mrb[28].mxu1 %vm212_vm3, %v7369_v32 }
0x2529   :  { %6033 = vmatpush3.bf16.msra.mxu1 %v7117_v47  ;;  %5690 = vmatprep.mubr.msk.f32.mxu1 %vm6603_vm0, %v6601_v0 }
0x252a   :  { %6034 = vmatprep.subr.bf16.mxu1 %v6602_v1 }
0x252d   :  { %6036 = vmatpush3.bf16.msra.mxu1 %v7127_v57 }
0x252e   :  { %6043 = vmatprep.subr.bf16.mxu1 %v6602_v1 }
0x2586   :  { %v3363_v41 = vpop.permute.xlu1 %3362 }
0x2587   :  { %v3365_v43 = vmul.f32 %v6362_v40, %v3363_v41 }
0x2589   :  { %3367 = vrot.lane.b32.xlu1 %v3365_v43, %s6605_s20 }
0x25fb   :  { %v3368_v46 = vpop.permute.xlu1 %3367  ;;  %v3236_v6 = vpop.f32.mrb[28].mxu1 }
0x25fc   :  { %v7381_v50 = vadd.f32 %v3368_v46, %v3360_v45  ;;  %v3241_v22 = vrot.slane %v3236_v6, 6  ;;  %v5670_v49 = vpop.f32.mrb[29].mxu1 }
0x25fe   :  { %6363 = vtanh.f32 %v7381_v50  ;;  %v3243_v52 = vadd.f32 %v3241_v22, %v7188_v44  ;;  %v3580_v31 = vrot.slane %v7381_v50, 2 }
0x2600   :  { %6365 = vtanh.f32 %v3243_v52  ;;  %v5128_v58 = vmul.f32 -1.442695, %v3243_v52 }
0x2602   :  { %6367 = vpow2.f32 %v5128_v58 }
0x2608   :  { %v6364_v56 = vpop.eup %6363 }
0x2609   :  { %3373 = vrot.lane.b32.xlu1 %v6364_v56, %s6604_s3 }
0x260a   :  { %v6366_v63 = vpop.eup %6365 }
0x260b   :  { %3335 = vrot.lane.b32.xlu0 %v6366_v63, %s6604_s3 }
0x260c   :  { %v6368_v59 = vpop.eup %6367 }
0x260d   :  { %v3326_v39 = vadd.f32 1.0, %v6368_v59 }
0x260f   :  { %6369 = vrcp.f32 %v3326_v39 }
0x2619   :  { %v6370_v61 = vpop.eup %6369 }
0x261a   :  { %v3333_v9 = vmul.f32 %v6370_v61, %v3331_v7 }
0x267b   :  { %v3374_v60 = vpop.permute.xlu1 %3373 }
0x267c   :  { %v7387_v34 = vmul.f32 %v6362_v40, %v3374_v60 }
0x267d   :  { %v3336_v2 = vpop.permute.xlu0 %3335 }
0x267e   :  { %v3466_v37 = vrot.slane %v7387_v34, 4  ;;  %v3338_v11 = vmul.f32 %v6370_v61, %v3336_v2 }
0x2680   :  { %3467 = vrot.lane.b32.xlu1 %v3466_v37, %s6605_s20  ;;  %3340 = vrot.lane.b32.xlu0 %v3338_v11, %s6605_s20 }
0x26f2   :  { %v3468_v10 = vpop.permute.xlu1 %3467  ;;  %v3341_v12 = vpop.permute.xlu0 %3340 }
0x26f3   :  { %v7392_v14 = vadd.f32 %v3341_v12, %v3333_v9  ;;  %5702 = vmatmul.mubr.msk.f32.vlgmr.msra.gmra.mrb[34].mxu0 %vm212_vm3, %v3468_v10 }
0x26f4   :  { %6051 = vmatpush3.bf16.msra.mxu0 %v7131_v3  ;;  %5723 = vmatprep.mubr.msk.f32.mxu0 %vm6603_vm0, %v6601_v0 }
0x26f5   :  { %6371 = vtanh.f32 %v7392_v14  ;;  %6052 = vmatprep.subr.bf16.mxu0 %v6602_v1  ;;  %v3553_v58 = vrot.slane %v7392_v14, 6 }
0x26f8   :  { %6054 = vmatpush3.bf16.msra.mxu0 %v7138_v5 }
0x26f9   :  { %6071 = vmatprep.subr.bf16.mxu0 %v6602_v1 }
0x26ff   :  { %v6372_v8 = vpop.eup %6371 }
0x2700   :  { %3346 = vrot.lane.b32.xlu0 %v6372_v8, %s6604_s3 }
0x2772   :  { %v3347_v29 = vpop.permute.xlu0 %3346 }
0x2773   :  { %v7403_v15 = vmul.f32 %v6370_v61, %v3347_v29 }
0x2775   :  { %v3387_v55 = vrot.slane %v7403_v15, 2 }
0x2777   :  { %3388 = vrot.lane.b32.xlu0 %v3387_v55, %s6605_s20 }
0x27c6   :  { %v3537_v3 = vpop.f32.mrb[34].mxu0 }
0x27c7   :  { %v3542_v17 = vrot.slane %v3537_v3, 6  ;;  %v5703_v18 = vpop.f32.mrb[35].mxu0 }
0x27c9   :  { %v3544_v16 = vadd.f32 %v3542_v17, %v7185_v25 }
0x27cb   :  { %6373 = vtanh.f32 %v3544_v16  ;;  %v5133_v24 = vmul.f32 -1.442695, %v3544_v16 }
0x27cd   :  { %6375 = vpow2.f32 %v5133_v24 }
0x27d5   :  { %v6374_v19 = vpop.eup %6373 }
0x27d6   :  { %3584 = vrot.lane.b32.xlu1 %v6374_v19, %s6604_s3 }
0x27d7   :  { %v6376_v54 = vpop.eup %6375 }
0x27d8   :  { %v3575_v27 = vadd.f32 1.0, %v6376_v54 }
0x27da   :  { %6377 = vrcp.f32 %v3575_v27 }
0x27e4   :  { %v6378_v28 = vpop.eup %6377 }
0x27e9   :  { %v3389_v5 = vpop.permute.xlu0 %3388 }
0x27ea   :  { %5691 = vmatmul.mubr.msk.f32.vlgmr.msra.gmra.mrb[30].mxu1 %vm212_vm3, %v3389_v5 }
0x27eb   :  { %6045 = vmatpush3.bf16.msra.mxu1 %v7117_v47  ;;  %5712 = vmatprep.mubr.msk.f32.mxu1 %vm6603_vm0, %v6601_v0  ;;  %v3582_v47 = vmul.f32 %v6378_v28, %v3580_v31  ;;  %v3833_v31 = vld [vmem:[#allocation9 + $0x18] sm:$0xff] }
0x27ec   :  { %6046 = vmatprep.subr.bf16.mxu1 %v6602_v1 }
0x27ef   :  { %6048 = vmatpush3.bf16.msra.mxu1 %v7127_v57 }
0x2848   :  { %v3585_v30 = vpop.permute.xlu1 %3584 }
0x2849   :  { %v3587_v13 = vmul.f32 %v6378_v28, %v3585_v30 }
0x284b   :  { %3589 = vrot.lane.b32.xlu1 %v3587_v13, %s6605_s20  ;;  %v3831_v13 = vld [vmem:[#allocation9 + $0x8] sm:$0xff] }
0x28bd   :  { %v3590_v33 = vpop.permute.xlu1 %3589  ;;  %v3458_v35 = vpop.f32.mrb[30].mxu1 }
0x28be   :  { %v3592_v53 = vadd.f32 %v3590_v33, %v3582_v47  ;;  %v3463_v40 = vrot.slane %v3458_v35, 4  ;;  %v5692_v41 = vpop.f32.mrb[31].mxu1  ;;  %v3830_v47 = vld [vmem:[#allocation9] sm:$0xff]  ;;  %v6055_v33 = vpack.c.bf16 %v3833_v31, %v3831_v13  ;;  %v3832_v35 = vld [vmem:[#allocation9 + $0x10] sm:$0xff] }
0x28bf   :  { %v6057_v41 = vpack.c.bf16 %v3832_v35, %v3830_v47 }
0x28c0   :  { %6379 = vtanh.f32 %v3592_v53  ;;  %v3465_v57 = vadd.f32 %v3463_v40, %v7188_v44  ;;  %v3799_v18 = vrot.slane %v3592_v53, 2  ;;  %v3835_v53 = vld [vmem:[#allocation9 + $0x28] sm:$0xff]  ;;  %v3837_v40 = vld [vmem:[#allocation9 + $0x38] sm:$0xff]  ;;  %6056 = vmatprep.subr.bf16.mxu1 %v6055_v33 }
0x28c2   :  { %6381 = vtanh.f32 %v3465_v57  ;;  %v5132_v45 = vmul.f32 -1.442695, %v3465_v57  ;;  %v6059_v57 = vpack.c.bf16 %v3837_v40, %v3835_v53 }
0x28c4   :  { %6383 = vpow2.f32 %v5132_v45 }
0x28ca   :  { %v6380_v43 = vpop.eup %6379 }
0x28cb   :  { %3595 = vrot.lane.b32.xlu1 %v6380_v43, %s6604_s3  ;;  %v3834_v43 = vld [vmem:[#allocation9 + $0x20] sm:$0xff] }
0x28cc   :  { %v6382_v42 = vpop.eup %6381 }
0x28cd   :  { %3557 = vrot.lane.b32.xlu0 %v6382_v42, %s6604_s3  ;;  %v3836_v42 = vld [vmem:[#allocation9 + $0x30] sm:$0xff] }
0x28ce   :  { %v6384_v46 = vpop.eup %6383 }
0x28cf   :  { %v3548_v6 = vadd.f32 1.0, %v6384_v46  ;;  %v6061_v46 = vpack.c.bf16 %v3836_v42, %v3834_v43 }
0x28d1   :  { %6385 = vrcp.f32 %v3548_v6 }
0x28db   :  { %v6386_v49 = vpop.eup %6385 }
0x28dc   :  { %v3555_v59 = vmul.f32 %v6386_v49, %v3553_v58  ;;  %v3848_v58 = vld [vmem:[#allocation10 + $0x10] sm:$0xff] }
0x293d   :  { %v3596_v50 = vpop.permute.xlu1 %3595 }
0x293e   :  { %v3598_v22 = vmul.f32 %v6378_v28, %v3596_v50  ;;  %v3839_v50 = vld [vmem:[#allocation9 + $0x48] sm:$0xff] }
0x293f   :  { %v3558_v52 = vpop.permute.xlu0 %3557 }
0x2940   :  { %v3688_v56 = vrot.slane %v3598_v22, 2  ;;  %v3560_v63 = vmul.f32 %v6386_v49, %v3558_v52  ;;  %v3838_v52 = vld [vmem:[#allocation9 + $0x40] sm:$0xff] }
0x2942   :  { %3689 = vrot.lane.b32.xlu1 %v3688_v56, %s6605_s20  ;;  %3562 = vrot.lane.b32.xlu0 %v3560_v63, %s6605_s20  ;;  %v3840_v56 = vld [vmem:[#allocation9 + $0x50] sm:$0xff] }
0x2943   :  { %v6065_v63 = vpack.c.bf16 %v3840_v56, %v3838_v52  ;;  %v3847_v52 = vld [vmem:[#allocation10 + $0x8] sm:$0xff]  ;;  %v3849_v56 = vld [vmem:[#allocation10 + $0x18] sm:$0xff] }
0x29b4   :  { %v3690_v39 = vpop.permute.xlu1 %3689  ;;  %v3563_v60 = vpop.permute.xlu0 %3562 }
0x29b5   :  { %v7423_v61 = vadd.f32 %v3563_v60, %v3555_v59  ;;  %5724 = vmatmul.mubr.msk.f32.vlgmr.msra.gmra.mrb[36].mxu0 %vm212_vm3, %v3690_v39  ;;  %v3845_v60 = vld [vmem:[#allocation9 + $0x78] sm:$0xff] }
0x29b6   :  { %5734 = vmatprep.mubr.msk.f32.mxu0 %vm6603_vm0, %v6601_v0 }
0x29b7   :  { %6387 = vtanh.f32 %v7423_v61 }
0x29c1   :  { %v6388_v2 = vpop.eup %6387 }
0x29c2   :  { %3568 = vrot.lane.b32.xlu0 %v6388_v2, %s6604_s3  ;;  %v3842_v2 = vld [vmem:[#allocation9 + $0x60] sm:$0xff] }
0x2a34   :  { %v3569_v37 = vpop.permute.xlu0 %3568 }
0x2a35   :  { %v7430_v11 = vmul.f32 %v6386_v49, %v3569_v37  ;;  %v3844_v37 = vld [vmem:[#allocation9 + $0x70] sm:$0xff] }
0x2a37   :  { %v3609_v7 = vrot.slane %v7430_v11, 4 }
0x2a39   :  { %3610 = vrot.lane.b32.xlu0 %v3609_v7, %s6605_s20  ;;  %v6069_v7 = vpack.c.bf16 %v3844_v37, %v3842_v2 }
0x2a3d   :  { %2722 = vrot.lane.b32.xlu0 %v7293_v51, %s6605_s20 }
0x2a41   :  { %3164 = vrot.lane.b32.xlu0 %v7352_v26, %s6604_s3 }
0x2a45   :  { %3605 = vrot.lane.b32.xlu0 %v3598_v22, %s6604_s3  ;;  %v3841_v22 = vld [vmem:[#allocation9 + $0x58] sm:$0xff] }
0x2a46   :  { %v6063_v49 = vpack.c.bf16 %v3841_v22, %v3839_v50 }
0x2a88   :  { %v3759_v9 = vpop.f32.mrb[36].mxu0 }
0x2a89   :  { %v3763_v10 = vadd.f32 %v3759_v9, %v7185_v25  ;;  %v5725_v12 = vpop.f32.mrb[37].mxu0  ;;  %v3850_v9 = vld [vmem:[#allocation10 + $0x20] sm:$0xff] }
0x2a8b   :  { %6389 = vtanh.f32 %v3763_v10  ;;  %v5137_v51 = vmul.f32 -1.442695, %v3763_v10  ;;  %v3852_v10 = vld [vmem:[#allocation10 + $0x30] sm:$0xff] }
0x2a8d   :  { %6391 = vpow2.f32 %v5137_v51 }
0x2a95   :  { %v6390_v14 = vpop.eup %6389 }
0x2a96   :  { %3803 = vrot.lane.b32.xlu1 %v6390_v14, %s6604_s3  ;;  %v7462_v14 = vpack.c.bf16 %v3852_v10, %v3850_v9 }
0x2a97   :  { %v6392_v26 = vpop.eup %6391 }
0x2a98   :  { %v3794_v55 = vadd.f32 1.0, %v6392_v26 }
0x2a9a   :  { %6393 = vrcp.f32 %v3794_v55 }
0x2aa4   :  { %v7444_v3 = vpop.eup %6393 }
0x2aa5   :  { %v3801_v16 = vmul.f32 %v7444_v3, %v3799_v18 }
0x2aab   :  { %v3611_v8 = vpop.permute.xlu0 %3610 }
0x2aac   :  { %5713 = vmatmul.mubr.msk.f32.vlgmr.msra.gmra.mrb[32].mxu1 %vm212_vm3, %v3611_v8 }
0x2aad   :  { %3936 = vmatprep.mubr.f32.mxu1 %v6601_v0  ;;  %6058 = vmatpush1.bf16.msra.mxu1 %v6057_v41 }
0x2aae   :  { %6060 = vmatprep.subr.bf16.mxu1 %v6059_v57 }
0x2aaf   :  { %v2723_v29 = vpop.permute.xlu0 %2722 }
0x2ab0   :  { %2725 = vst.msk [vmem:[#allocation3] sm:$0x30] %vm858_vm7, %v2723_v29 }
0x2ab1   :  { %6062 = vmatpush1.bf16.msra.mxu1 %v6061_v46 }
0x2ab2   :  { %6064 = vmatprep.subr.bf16.mxu1 %v6063_v49 }
0x2ab3   :  { %v3165_v12 = vpop.permute.xlu0 %3164 }
0x2ab5   :  { %6066 = vmatpush1.bf16.msra.mxu1 %v6065_v63 }
0x2ab7   :  { %v3606_v8 = vpop.permute.xlu0 %3605 }
0x2b08   :  { %v3804_v25 = vpop.permute.xlu1 %3803 }
0x2b09   :  { %v3806_v17 = vmul.f32 %v7444_v3, %v3804_v25 }
0x2b0b   :  { %3808 = vrot.lane.b32.xlu1 %v3806_v17, %s6605_s20 }
0x2b7d   :  { %v3809_v19 = vpop.permute.xlu1 %3808 }
0x2b7e   :  { %v3811_v5 = vadd.f32 %v3809_v19, %v3801_v16  ;;  %v3772_v19 = vrot.slane %v7423_v61, 6 }
0x2b7f   :  { %v3680_v24 = vpop.f32.mrb[32].mxu1 }
0x2b80   :  { %6395 = vtanh.f32 %v3811_v5  ;;  %v3685_v54 = vrot.slane %v3680_v24, 2  ;;  %v5714_v27 = vpop.f32.mrb[33].mxu1 }
0x2b82   :  { %v3687_v28 = vadd.f32 %v3685_v54, %v7188_v44 }
0x2b84   :  { %6397 = vtanh.f32 %v3687_v28  ;;  %v5136_v44 = vmul.f32 -1.442695, %v3687_v28 }
0x2b86   :  { %6399 = vpow2.f32 %v5136_v44 }
0x2b8a   :  { %v6396_v30 = vpop.eup %6395 }
0x2b8b   :  { %3814 = vrot.lane.b32.xlu1 %v6396_v30, %s6604_s3 }
0x2b8e   :  { %v6398_v45 = vpop.eup %6397 }
0x2b8f   :  { %2500 = vrot.lane.b32.xlu1 %v7255_v62, %s6605_s20  ;;  %3776 = vrot.lane.b32.xlu0 %v6398_v45, %s6604_s3  ;;  %v3846_v62 = vld [vmem:[#allocation10] sm:$0xff] }
0x2b90   :  { %v6400_v6 = vpop.eup %6399  ;;  %v7458_v39 = vpack.c.bf16 %v3848_v58, %v3846_v62  ;;  %v7516_v62 = vpack.c.bf16 %v3849_v56, %v3847_v52  ;;  %v3851_v58 = vld [vmem:[#allocation10 + $0x28] sm:$0xff] }
0x2b91   :  { %v3767_v59 = vadd.f32 1.0, %v6400_v6 }
0x2b92   :  { %6073 = vmatpush3.bf16.msra.mxu0 %v7458_v39 }
0x2b93   :  { %2941 = vrot.lane.b32.xlu1 %v7331_v36, %s6605_s20  ;;  %v3843_v36 = vld [vmem:[#allocation9 + $0x68] sm:$0xff]  ;;  %6074 = vmatprep.subr.bf16.mxu0 %v6602_v1  ;;  %6401 = vrcp.f32 %v3767_v59  ;;  %v3853_v59 = vld [vmem:[#allocation10 + $0x38] sm:$0xff] }
0x2b96   :  { %6076 = vmatpush3.bf16.msra.mxu0 %v7462_v14 }
0x2b97   :  { %3383 = vrot.lane.b32.xlu1 %v7387_v34, %s6604_s3  ;;  %v6067_v34 = vpack.c.bf16 %v3845_v60, %v3843_v36  ;;  %6077 = vmatprep.subr.bf16.mxu0 %v6602_v1  ;;  %v7520_v36 = vpack.c.bf16 %v3853_v59, %v3851_v58 }
0x2b99   :  { %6068 = vmatprep.subr.bf16.mxu1 %v6067_v34  ;;  %5735 = vmatmul.mubr.f32.vlgmr.msra.gmra.mrb[38].mxu0 %v6601_v0 }
0x2b9a   :  { %6070 = vmatpush1.bf16.msra.mxu1 %v6069_v7  ;;  %5745 = vmatprep.mubr.msk.f32.mxu0 %vm6603_vm0, %v6601_v0 }
0x2b9b   :  { %6083 = vmatprep.subr.bf16.mxu1 %v6602_v1  ;;  %6079 = vmatpush3.bf16.msra.mxu0 %v7516_v62 }
0x2b9c   :  { %6080 = vmatprep.subr.bf16.mxu0 %v6602_v1 }
0x2b9d   :  { %v6402_v26 = vpop.eup %6401 }
0x2b9e   :  { %v3774_v5 = vmul.f32 %v6402_v26, %v3772_v19 }
0x2b9f   :  { %6082 = vmatpush3.bf16.msra.mxu0 %v7520_v36 }
0x2ba0   :  { %6089 = vmatprep.subr.bf16.mxu0 %v6602_v1 }
0x2ba2   :  { %5746 = vmatmul.mubr.f32.vlgmr.msra.gmra.mrb[40].mxu0 %v6601_v0 }
0x2ba3   :  { %6091 = vmatpush3.bf16.msra.mxu0 %v7516_v62  ;;  %5767 = vmatprep.mubr.msk.f32.mxu0 %vm6603_vm0, %v6601_v0 }
0x2ba4   :  { %6092 = vmatprep.subr.bf16.mxu0 %v6602_v1 }
0x2ba7   :  { %6094 = vmatpush3.bf16.msra.mxu0 %v7520_v36 }
0x2ba8   :  { %6101 = vmatprep.subr.bf16.mxu0 %v6602_v1 }
0x2bfd   :  { %v3815_v29 = vpop.permute.xlu1 %3814 }
0x2bfe   :  { %v3817_v51 = vmul.f32 %v7444_v3, %v3815_v29 }
0x2c00   :  { %3824 = vrot.lane.b32.xlu1 %v3817_v51, %s6604_s3 }
0x2c01   :  { %v2501_v55 = vpop.permute.xlu1 %2500  ;;  %v3777_v25 = vpop.permute.xlu0 %3776 }
0x2c02   :  { %2503 = vst.msk [vmem:[#allocation3] sm:$0xc] %vm634_vm5, %v2501_v55  ;;  %v3779_v17 = vmul.f32 %v6402_v26, %v3777_v25 }
0x2c03   :  { %3608 = vst.msk [vmem:[#allocation3] sm:$0xc] %vm864_vm10, %v3606_v8 }
0x2c04   :  { %3781 = vrot.lane.b32.xlu0 %v3779_v17, %s6605_s20 }
0x2c05   :  { %v2942_v18 = vpop.permute.xlu1 %2941 }
0x2c06   :  { %2944 = vst.msk [vmem:[#allocation3] sm:$0xc0] %vm1079_vm6, %v2942_v18 }
0x2c07   :  { %3167 = vst.msk [vmem:[#allocation3] sm:$0xc0] %vm419_vm9, %v3165_v12 }
0x2c09   :  { %v3384_v16 = vpop.permute.xlu1 %3383 }
0x2c0a   :  { %3386 = vst.msk [vmem:[#allocation3] sm:$0x30] %vm640_vm8, %v3384_v16 }
0x2c6c   :  { %v4014_v28 = vpop.f32.mrb[38].mxu0 }
0x2c6d   :  { %v5736_v30 = vpop.f32.mrb[39].mxu0 }
0x2c72   :  { %v3825_v3 = vpop.permute.xlu1 %3824 }
0x2c73   :  { %3827 = vst.msk [vmem:[#allocation3] sm:$0x3] %vm1085_vm11, %v3825_v3 }
0x2c75   :  { %v4085_v37 = vpop.f32.mrb[40].mxu0 }
0x2c76   :  { %v3782_v24 = vpop.permute.xlu0 %3781  ;;  %v5747_v7 = vpop.f32.mrb[41].mxu0 }
0x2c77   :  { %v3784_v54 = vadd.f32 %v3782_v24, %v3774_v5 }
0x2c79   :  { %6403 = vtanh.f32 %v3784_v54  ;;  %v4090_v54 = vrot.slane %v4085_v37, 2 }
0x2c7a   :  { %v3828_v27 = vld [vmem:[#allocation3] sm:$0xff] }
0x2c7b   :  { %5138 = vmatmul.mubr.msk.f32.vlgmr.msra.gmra.mrb[34].mxu1 %vm2003_vm12, %v3828_v27 }
0x2c7c   :  { %3941 = vmatprep.mubr.f32.mxu1 %v6601_v0  ;;  %6085 = vmatpush3.bf16.msra.mxu1 %v7458_v39 }
0x2c7d   :  { %6086 = vmatprep.subr.bf16.mxu1 %v6602_v1 }
0x2c80   :  { %6088 = vmatpush3.bf16.msra.mxu1 %v7462_v14 }
0x2c81   :  { %6095 = vmatprep.subr.bf16.mxu1 %v6602_v1 }
0x2c83   :  { %v6404_v61 = vpop.eup %6403 }
0x2c84   :  { %3787 = vrot.lane.b32.xlu0 %v6404_v61, %s6604_s3 }
0x2c88   :  { %2286 = vrot.lane.b32.xlu0 %v7203_v4, %s6604_s3  ;;  %v7500_v4 = vld [vmem:[%s7711_s9] sm:$0x3] }
0x2c89   :  { %v3863_v19 = vrot.slane %v7500_v4, %v6822_v20 }
0x2c8c   :  { %2727 = vrot.lane.b32.xlu0 %v7276_v38, %s6604_s3  ;;  %v7504_v38 = vrot.slane %v7500_v4, %v6828_v23 }
0x2c90   :  { %3378 = vrot.lane.b32.xlu0 %v7403_v15, %s6605_s20 }
0x2cf6   :  { %v3788_v13 = vpop.permute.xlu0 %3787 }
0x2cf7   :  { %v3790_v31 = vmul.f32 %v6402_v26, %v3788_v13 }
0x2cf9   :  { %3819 = vrot.lane.b32.xlu0 %v3790_v31, %s6605_s20 }
0x2cfa   :  { %v2287_v47 = vpop.permute.xlu0 %2286 }
0x2cfb   :  { %2289 = vst.msk [vmem:[#allocation3 + $0x8] sm:$0xc0] %vm419_vm9, %v2287_v47 }
0x2cfe   :  { %v2728_v33 = vpop.permute.xlu0 %2727 }
0x2cff   :  { %2730 = vst.msk [vmem:[#allocation3 + $0x8] sm:$0xc] %vm864_vm10, %v2728_v33 }
0x2d02   :  { %v3379_v35 = vpop.permute.xlu0 %3378 }
0x2d03   :  { %3381 = vst.msk [vmem:[#allocation3 + $0x8] sm:$0xc] %vm634_vm5, %v3379_v35 }
0x2d4e   :  { %v3938_v15 = vpop.f32.mrb[34].mxu1 }
0x2d4f   :  { %v7507_v53 = vadd.f32 %v3938_v15, %v7504_v38  ;;  %v3940_v40 = vpop.f32.mrb[35].mxu1 }
0x2d51   :  { %v4018_v41 = vadd.f32 %v4014_v28, %v7507_v53 }
0x2d53   :  { %6405 = vtanh.f32 %v4018_v41  ;;  %v5140_v42 = vmul.f32 -1.442695, %v4018_v41 }
0x2d55   :  { %6407 = vpow2.f32 %v5140_v42 }
0x2d5d   :  { %v6406_v57 = vpop.eup %6405 }
0x2d5e   :  { %4102 = vrot.lane.b32.xlu1 %v6406_v57, %s6604_s3 }
0x2d5f   :  { %v6408_v45 = vpop.eup %6407 }
0x2d60   :  { %v4096_v46 = vadd.f32 1.0, %v6408_v45 }
0x2d62   :  { %6409 = vrcp.f32 %v4096_v46 }
0x2d6b   :  { %v3820_v43 = vpop.permute.xlu0 %3819 }
0x2d6c   :  { %3822 = vst.msk [vmem:[#allocation3 + $0x8] sm:$0xc0] %vm1079_vm6, %v3820_v43  ;;  %v6410_v23 = vpop.eup %6409 }
0x2d6d   :  { %v4100_v50 = vmul.f32 0.0, %v6410_v23 }
0x2dd0   :  { %v4103_v44 = vpop.permute.xlu1 %4102 }
0x2dd1   :  { %v4105_v6 = vmul.f32 %v6410_v23, %v4103_v44 }
0x2dd3   :  { %4107 = vrot.lane.b32.xlu1 %v4105_v6, %s6605_s20 }
0x2e45   :  { %v4108_v22 = vpop.permute.xlu1 %4107 }
0x2e46   :  { %v7513_v49 = vadd.f32 %v4108_v22, %v4100_v50 }
0x2e48   :  { %6411 = vtanh.f32 %v7513_v49  ;;  %v4308_v5 = vrot.slane %v7513_v49, 6 }
0x2e52   :  { %v6412_v63 = vpop.eup %6411 }
0x2e53   :  { %4113 = vrot.lane.b32.xlu1 %v6412_v63, %s6604_s3 }
0x2e57   :  { %2505 = vrot.lane.b32.xlu1 %v7238_v48, %s6604_s3 }
0x2e5b   :  { %2946 = vrot.lane.b32.xlu1 %v7314_v21, %s6604_s3 }
0x2e5f   :  { %3600 = vrot.lane.b32.xlu1 %v7430_v11, %s6605_s20 }
0x2ec5   :  { %v4114_v48 = vpop.permute.xlu1 %4113 }
0x2ec6   :  { %v4116_v60 = vmul.f32 %v6410_v23, %v4114_v48 }
0x2ec8   :  { %4142 = vrot.lane.b32.xlu1 %v4116_v60, %s6605_s20 }
0x2ec9   :  { %v2506_v21 = vpop.permute.xlu1 %2505 }
0x2eca   :  { %2508 = vst.msk [vmem:[#allocation3 + $0x8] sm:$0x30] %vm640_vm8, %v2506_v21 }
0x2ecd   :  { %v2947_v34 = vpop.permute.xlu1 %2946 }
0x2ece   :  { %2949 = vst.msk [vmem:[#allocation3 + $0x8] sm:$0x3] %vm1085_vm11, %v2947_v34 }
0x2ecf   :  { %3162 = vst.msk [vmem:[#allocation3 + $0x8] sm:$0x3] %vm413_vm4, %v7369_v32 }
0x2ed1   :  { %v3601_v2 = vpop.permute.xlu1 %3600 }
0x2ed2   :  { %3603 = vst.msk [vmem:[#allocation3 + $0x8] sm:$0x30] %vm858_vm7, %v3601_v2 }
0x2ed9   :  { %v3829_v11 = vld [vmem:[#allocation3 + $0x8] sm:$0xff] }
0x2eda   :  { %5139 = vmatmul.mubr.msk.f32.gmra.mrb[36].mxu1 %vm2003_vm12, %v3829_v11 }
0x2edb   :  { %5756 = vmatprep.mubr.msk.f32.mxu1 %vm6603_vm0, %v6601_v0 }
0x2f3a   :  { %v4143_v9 = vpop.permute.xlu1 %4142 }
0x2f3b   :  { %5757 = vmatmul.mubr.msk.f32.vlgmr.msra.gmra.mrb[38].mxu1 %vm212_vm3, %v4143_v9 }
0x2f3c   :  { %6097 = vmatpush3.bf16.msra.mxu1 %v7458_v39  ;;  %5778 = vmatprep.mubr.msk.f32.mxu1 %vm6603_vm0, %v6601_v0 }
0x2f3d   :  { %6098 = vmatprep.subr.bf16.mxu1 %v6602_v1 }
0x2f40   :  { %6100 = vmatpush3.bf16.msra.mxu1 %v7462_v14 }
0x2f41   :  { %6107 = vmatprep.subr.bf16.mxu1 %v6602_v1 }
0x2fad   :  { %v7554_v32 = vpop.f32.mrb[36].mxu1 }
0x2fae   :  { %v3945_v10 = vpop.f32.mrb[37].mxu1 }
0x2faf   :  { %v7562_v24 = vadd.f32 %v3945_v10, %v3863_v19 }
0x2fb1   :  { %v4092_v30 = vadd.f32 %v4090_v54, %v7562_v24 }
0x2fb3   :  { %v5141_v20 = vmul.f32 -1.442695, %v4092_v30 }
0x300e   :  { %v4212_v12 = vpop.f32.mrb[38].mxu1 }
0x300f   :  { %v4217_v8 = vrot.slane %v4212_v12, 6  ;;  %v5758_v29 = vpop.f32.mrb[39].mxu1 }
0x3011   :  { %v4219_v51 = vadd.f32 %v4217_v8, %v7507_v53 }
0x3013   :  { %6413 = vtanh.f32 %v4219_v51  ;;  %v5144_v55 = vmul.f32 -1.442695, %v4219_v51 }
0x3015   :  { %6415 = vpow2.f32 %v5144_v55 }
0x301d   :  { %v6414_v26 = vpop.eup %6413 }
0x301e   :  { %4312 = vrot.lane.b32.xlu0 %v6414_v26, %s6604_s3 }
0x301f   :  { %v6416_v25 = vpop.eup %6415 }
0x3020   :  { %v4303_v17 = vadd.f32 1.0, %v6416_v25 }
0x3022   :  { %6417 = vrcp.f32 %v4303_v17 }
0x302c   :  { %v6418_v18 = vpop.eup %6417 }
0x302d   :  { %v4310_v27 = vmul.f32 %v6418_v18, %v4308_v5 }
0x3090   :  { %v4313_v16 = vpop.permute.xlu0 %4312 }
0x3091   :  { %v4315_v3 = vmul.f32 %v6418_v18, %v4313_v16 }
0x3093   :  { %4317 = vrot.lane.b32.xlu1 %v4315_v3, %s6605_s20 }
0x3105   :  { %v4318_v61 = vpop.permute.xlu1 %4317 }
0x3106   :  { %v7564_v28 = vadd.f32 %v4318_v61, %v4310_v27 }
0x3108   :  { %6419 = vtanh.f32 %v7564_v28 }
0x3109   :  { %6421 = vtanh.f32 %v4092_v30 }
0x310a   :  { %6423 = vpow2.f32 %v5141_v20 }
0x3112   :  { %v6420_v13 = vpop.eup %6419 }
0x3113   :  { %4323 = vrot.lane.b32.xlu0 %v6420_v13, %s6604_s3  ;;  %v6422_v31 = vpop.eup %6421 }
0x3114   :  { %v6424_v47 = vpop.eup %6423 }
0x3115   :  { %v4120_v33 = vadd.f32 1.0, %v6424_v47 }
0x3117   :  { %4126 = vrot.lane.b32.xlu0 %v6422_v31, %s6604_s3  ;;  %6425 = vrcp.f32 %v4120_v33 }
0x3121   :  { %v6426_v40 = vpop.eup %6425 }
0x3122   :  { %v4124_v42 = vmul.f32 0.0, %v6426_v40 }
0x3185   :  { %v4324_v35 = vpop.permute.xlu0 %4323 }
0x3186   :  { %v4326_v4 = vmul.f32 %v6418_v18, %v4324_v35 }
0x3188   :  { %v4355_v15 = vrot.slane %v4326_v4, 2 }
0x3189   :  { %v4127_v41 = vpop.permute.xlu0 %4126 }
0x318a   :  { %v4129_v57 = vmul.f32 %v6426_v40, %v4127_v41  ;;  %4356 = vrot.lane.b32.xlu1 %v4355_v15, %s6605_s20 }
0x318c   :  { %4131 = vrot.lane.b32.xlu0 %v4129_v57, %s6605_s20 }
0x31fc   :  { %v4357_v43 = vpop.permute.xlu1 %4356 }
0x31fd   :  { %5779 = vmatmul.mubr.msk.f32.vlgmr.msra.gmra.mrb[40].mxu1 %vm212_vm3, %v4357_v43 }
0x31fe   :  { %v4132_v45 = vpop.permute.xlu0 %4131  ;;  %6109 = vmatpush3.bf16.msra.mxu1 %v7458_v39  ;;  %5800 = vmatprep.mubr.msk.f32.mxu1 %vm6603_vm0, %v6601_v0 }
0x31ff   :  { %v7576_v46 = vadd.f32 %v4132_v45, %v4124_v42  ;;  %6110 = vmatprep.subr.bf16.mxu1 %v6602_v1 }
0x3201   :  { %6427 = vtanh.f32 %v7576_v46  ;;  %v4335_v5 = vrot.slane %v7576_v46, 2 }
0x3202   :  { %6112 = vmatpush3.bf16.msra.mxu1 %v7462_v14 }
0x3203   :  { %6119 = vmatprep.subr.bf16.mxu1 %v6602_v1 }
0x320b   :  { %v6428_v23 = vpop.eup %6427 }
0x320c   :  { %4137 = vrot.lane.b32.xlu0 %v6428_v23, %s6604_s3 }
0x327e   :  { %v4138_v44 = vpop.permute.xlu0 %4137 }
0x327f   :  { %v4140_v6 = vmul.f32 %v6426_v40, %v4138_v44 }
0x3281   :  { %v4221_v50 = vrot.slane %v4140_v6, 6 }
0x3283   :  { %4222 = vrot.lane.b32.xlu0 %v4221_v50, %s6605_s20 }
0x32d0   :  { %v4426_v22 = vpop.f32.mrb[40].mxu1 }
0x32d1   :  { %v4431_v49 = vrot.slane %v4426_v22, 4  ;;  %v5780_v52 = vpop.f32.mrb[41].mxu1 }
0x32d3   :  { %v4433_v56 = vadd.f32 %v4431_v49, %v7507_v53 }
0x32d5   :  { %6429 = vtanh.f32 %v4433_v56  ;;  %v5148_v59 = vmul.f32 -1.442695, %v4433_v56 }
0x32d7   :  { %6431 = vpow2.f32 %v5148_v59 }
0x32df   :  { %v6430_v63 = vpop.eup %6429 }
0x32e0   :  { %4526 = vrot.lane.b32.xlu1 %v6430_v63, %s6604_s3  ;;  %v7634_v63 = vadd.f32 %v7554_v32, %v7504_v38 }
0x32e1   :  { %v6432_v48 = vpop.eup %6431 }
0x32e2   :  { %v4517_v60 = vadd.f32 1.0, %v6432_v48 }
0x32e4   :  { %6433 = vrcp.f32 %v4517_v60 }
0x32ee   :  { %v6434_v21 = vpop.eup %6433 }
0x32f5   :  { %v4223_v58 = vpop.permute.xlu0 %4222 }
0x32f6   :  { %5768 = vmatmul.mubr.msk.f32.vlgmr.msra.gmra.mrb[42].mxu0 %vm212_vm3, %v4223_v58 }
0x32f7   :  { %6103 = vmatpush3.bf16.msra.mxu0 %v7516_v62  ;;  %5789 = vmatprep.mubr.msk.f32.mxu0 %vm6603_vm0, %v6601_v0  ;;  %v4522_v62 = vrot.slane %v7564_v28, 6 }
0x32f8   :  { %6104 = vmatprep.subr.bf16.mxu0 %v6602_v1 }
0x32f9   :  { %v4524_v11 = vmul.f32 %v6434_v21, %v4522_v62 }
0x32fb   :  { %6106 = vmatpush3.bf16.msra.mxu0 %v7520_v36 }
0x32fc   :  { %6113 = vmatprep.subr.bf16.mxu0 %v6602_v1 }
0x3352   :  { %v4527_v34 = vpop.permute.xlu1 %4526 }
0x3353   :  { %v4529_v2 = vmul.f32 %v6434_v21, %v4527_v34 }
0x3355   :  { %4531 = vrot.lane.b32.xlu1 %v4529_v2, %s6605_s20 }
0x33c7   :  { %v4532_v37 = vpop.permute.xlu1 %4531 }
0x33c8   :  { %v7595_v7 = vadd.f32 %v4532_v37, %v4524_v11 }
0x33c9   :  { %v4292_v9 = vpop.f32.mrb[42].mxu0 }
0x33ca   :  { %6435 = vtanh.f32 %v7595_v7  ;;  %v4297_v36 = vrot.slane %v4292_v9, 4  ;;  %v5769_v10 = vpop.f32.mrb[43].mxu0 }
0x33cc   :  { %v4299_v12 = vadd.f32 %v4297_v36, %v7562_v24 }
0x33ce   :  { %6437 = vtanh.f32 %v4299_v12  ;;  %v5145_v51 = vmul.f32 -1.442695, %v4299_v12 }
0x33d0   :  { %6439 = vpow2.f32 %v5145_v51 }
0x33d4   :  { %v6436_v8 = vpop.eup %6435 }
0x33d5   :  { %4537 = vrot.lane.b32.xlu1 %v6436_v8, %s6604_s3 }
0x33d8   :  { %v6438_v29 = vpop.eup %6437 }
0x33d9   :  { %4339 = vrot.lane.b32.xlu0 %v6438_v29, %s6604_s3 }
0x33da   :  { %v6440_v26 = vpop.eup %6439 }
0x33db   :  { %v4330_v55 = vadd.f32 1.0, %v6440_v26 }
0x33dd   :  { %6441 = vrcp.f32 %v4330_v55 }
0x33e7   :  { %v6442_v16 = vpop.eup %6441 }
0x33e8   :  { %v4337_v27 = vmul.f32 %v6442_v16, %v4335_v5 }
0x3447   :  { %v4538_v25 = vpop.permute.xlu1 %4537 }
0x3448   :  { %v4540_v17 = vmul.f32 %v6434_v21, %v4538_v25 }
0x344a   :  { %v4569_v18 = vrot.slane %v4540_v17, 4 }
0x344b   :  { %v4340_v3 = vpop.permute.xlu0 %4339 }
0x344c   :  { %v4342_v19 = vmul.f32 %v6442_v16, %v4340_v3  ;;  %4570 = vrot.lane.b32.xlu1 %v4569_v18, %s6605_s20 }
0x344e   :  { %4344 = vrot.lane.b32.xlu0 %v4342_v19, %s6605_s20 }
0x34be   :  { %v4571_v54 = vpop.permute.xlu1 %4570 }
0x34bf   :  { %5801 = vmatmul.mubr.msk.f32.vlgmr.msra.gmra.mrb[42].mxu1 %vm212_vm3, %v4571_v54 }
0x34c0   :  { %v4345_v61 = vpop.permute.xlu0 %4344  ;;  %6121 = vmatpush3.bf16.msra.mxu1 %v7458_v39  ;;  %5822 = vmatprep.mubr.msk.f32.mxu1 %vm6603_vm0, %v6601_v0 }
0x34c1   :  { %v7608_v28 = vadd.f32 %v4345_v61, %v4337_v27  ;;  %6122 = vmatprep.subr.bf16.mxu1 %v6602_v1  ;;  %v4889_v61 = vld [vmem:[%s7712_s10 + $0x20] sm:$0xff] }
0x34c3   :  { %6443 = vtanh.f32 %v7608_v28  ;;  %v4549_v3 = vrot.slane %v7608_v28, 2  ;;  %v4890_v28 = vld [vmem:[%s7712_s10 + $0x28] sm:$0xff] }
0x34c4   :  { %6124 = vmatpush3.bf16.msra.mxu1 %v7462_v14 }
0x34c5   :  { %6131 = vmatprep.subr.bf16.mxu1 %v6602_v1 }
0x34cd   :  { %v6444_v30 = vpop.eup %6443 }
0x34ce   :  { %4350 = vrot.lane.b32.xlu0 %v6444_v30, %s6604_s3  ;;  %v4891_v30 = vld [vmem:[%s7712_s10 + $0x30] sm:$0xff] }
0x3540   :  { %v4351_v13 = vpop.permute.xlu0 %4350 }
0x3541   :  { %v4353_v31 = vmul.f32 %v6442_v16, %v4351_v13  ;;  %v4892_v13 = vld [vmem:[%s7712_s10 + $0x38] sm:$0xff] }
0x3543   :  { %v4435_v20 = vrot.slane %v4353_v31, 4  ;;  %v6129_v31 = vpack.c.bf16 %v4892_v13, %v4891_v30 }
0x3545   :  { %4436 = vrot.lane.b32.xlu0 %v4435_v20, %s6605_s20 }
0x3592   :  { %v4640_v47 = vpop.f32.mrb[42].mxu1 }
0x3593   :  { %v4645_v33 = vrot.slane %v4640_v47, 2  ;;  %v5802_v35 = vpop.f32.mrb[43].mxu1 }
0x3595   :  { %v4647_v4 = vadd.f32 %v4645_v33, %v7507_v53 }
0x3597   :  { %6445 = vtanh.f32 %v4647_v4  ;;  %v5151_v41 = vmul.f32 -1.442695, %v4647_v4 }
0x3599   :  { %6447 = vpow2.f32 %v5151_v41 }
0x35a1   :  { %v6446_v15 = vpop.eup %6445 }
0x35a2   :  { %4660 = vrot.lane.b32.xlu1 %v6446_v15, %s6604_s3 }
0x35a3   :  { %v6448_v53 = vpop.eup %6447 }
0x35a4   :  { %v4651_v57 = vadd.f32 1.0, %v6448_v53 }
0x35a6   :  { %6449 = vrcp.f32 %v4651_v57 }
0x35b0   :  { %v6450_v43 = vpop.eup %6449 }
0x35b7   :  { %v4437_v40 = vpop.permute.xlu0 %4436 }
0x35b8   :  { %5790 = vmatmul.mubr.msk.f32.vlgmr.msra.gmra.mrb[44].mxu0 %vm212_vm3, %v4437_v40 }
0x35b9   :  { %6115 = vmatpush3.bf16.msra.mxu0 %v7458_v39  ;;  %5811 = vmatprep.mubr.msk.f32.mxu0 %vm6603_vm0, %v6601_v0  ;;  %v4656_v39 = vrot.slane %v7595_v7, 6 }
0x35ba   :  { %6116 = vmatprep.subr.bf16.mxu0 %v6602_v1 }
0x35bb   :  { %v4658_v46 = vmul.f32 %v6450_v43, %v4656_v39 }
0x35bd   :  { %6118 = vmatpush3.bf16.msra.mxu0 %v7462_v14 }
0x35be   :  { %6125 = vmatprep.subr.bf16.mxu0 %v6602_v1 }
0x3614   :  { %v4661_v42 = vpop.permute.xlu1 %4660 }
0x3615   :  { %v4663_v45 = vmul.f32 %v6450_v43, %v4661_v42 }
0x3617   :  { %4665 = vrot.lane.b32.xlu1 %v4663_v45, %s6605_s20 }
0x3689   :  { %v4666_v23 = vpop.permute.xlu1 %4665 }
0x368a   :  { %v4668_v44 = vadd.f32 %v4666_v23, %v4658_v46 }
0x368b   :  { %v4506_v6 = vpop.f32.mrb[44].mxu0 }
0x368c   :  { %6451 = vtanh.f32 %v4668_v44  ;;  %v5791_v14 = vpop.f32.mrb[45].mxu0  ;;  %v4760_v38 = vrot.slane %v4668_v44, 6  ;;  %v4511_v32 = vrot.slane %v4506_v6, 6 }
0x368e   :  { %v4513_v10 = vadd.f32 %v4511_v32, %v7562_v24 }
0x3690   :  { %v5149_v29 = vmul.f32 -1.442695, %v4513_v10 }
0x3696   :  { %v6452_v50 = vpop.eup %6451 }
0x3697   :  { %4671 = vrot.lane.b32.xlu1 %v6452_v50, %s6604_s3 }
0x3709   :  { %v4672_v22 = vpop.permute.xlu1 %4671 }
0x370a   :  { %v4674_v49 = vmul.f32 %v6450_v43, %v4672_v22 }
0x370c   :  { %v4676_v52 = vrot.slane %v4674_v49, 6  ;;  %v4885_v49 = vld [vmem:[%s7712_s10] sm:$0xff] }
0x370e   :  { %4677 = vrot.lane.b32.xlu1 %v4676_v52, %s6605_s20  ;;  %v4886_v52 = vld [vmem:[%s7712_s10 + $0x8] sm:$0xff] }
0x3780   :  { %v4678_v56 = vpop.permute.xlu1 %4677 }
0x3781   :  { %5812 = vmatmul.mubr.msk.f32.vlgmr.msra.gmra.mrb[46].mxu0 %vm212_vm3, %v4678_v56  ;;  %v4887_v56 = vld [vmem:[%s7712_s10 + $0x10] sm:$0xff] }
0x3782   :  { %5833 = vmatprep.mubr.msk.f32.mxu0 %vm6603_vm0, %v6601_v0 }
0x3854   :  { %v4747_v58 = vpop.f32.mrb[46].mxu0 }
0x3855   :  { %v4751_v59 = vadd.f32 %v4747_v58, %v7634_v63  ;;  %v5813_v48 = vpop.f32.mrb[47].mxu0  ;;  %v4888_v58 = vld [vmem:[%s7712_s10 + $0x18] sm:$0xff]  ;;  %s6606_s10 = smov [#allocation12]  }
0x3856   :  { %s5061_s30 = sshll.u32 %s6606_s10, 4  ;;  %s5062_s30 = int_to_ptr.vmem [resolvable:$true] %s5061_s30 }
0x3857   :  { %6453 = vtanh.f32 %v4751_v59  ;;  %v5153_v21 = vmul.f32 -1.442695, %v4751_v59  ;;  %v6135_v59 = vpack.c.bf16 %v4888_v58, %v4887_v56  ;;  %s6565_s19 = scalar_lea.vmem %s5062_s30, 32  ;;  %p6570_p5 = scmp.lt.s32.totalorder %s5062_s30, %s5062_s30 }
0x3858   :  { %p6566_p4 = scmp.ne.s32.totalorder %s5062_s30, %s6565_s19  ;;  %p6571_p6 = scmp.lt.s32.totalorder %s6565_s19, %s6565_s19 }
0x3859   :  { %6455 = vpow2.f32 %v5153_v21 }
0x385a   :  { %p6572_p7 = por %p6571_p6, %p6570_p5 }
0x385c   :  { %p6573_p8 = pnand %p6572_p7, %p6566_p4 }
0x3861   :  { %v6454_v60 = vpop.eup %6453 }
0x3862   :  { %4764 = vrot.lane.b32.xlu0 %v6454_v60, %s6604_s3 }
0x3863   :  { %v6456_v34 = vpop.eup %6455 }
0x3864   :  { %v4755_v2 = vadd.f32 1.0, %v6456_v34 }
0x3866   :  { %6457 = vrcp.f32 %v4755_v2 }
0x3870   :  { %v6458_v62 = vpop.eup %6457 }
0x3871   :  { %v4762_v7 = vmul.f32 %v6458_v62, %v4760_v38 }
0x38d4   :  { %v4765_v11 = vpop.permute.xlu0 %4764 }
0x38d5   :  { %v4767_v37 = vmul.f32 %v6458_v62, %v4765_v11  ;;  %v5158_v11 = vld [vmem:[%s7713_s11] ss:$0 sm:$0xff] }
0x38d7   :  { %4769 = vrot.lane.b32.xlu1 %v4767_v37, %s6605_s20 }
0x3949   :  { %v4770_v9 = vpop.permute.xlu1 %4769 }
0x394a   :  { %v7639_v36 = vadd.f32 %v4770_v9, %v4762_v7 }
0x394c   :  { %6459 = vtanh.f32 %v7639_v36  ;;  %v4866_v23 = vrot.slane %v7639_v36, 6 }
0x394d   :  { %6461 = vtanh.f32 %v4513_v10 }
0x394e   :  { %6463 = vpow2.f32 %v5149_v29 }
0x3956   :  { %v6460_v12 = vpop.eup %6459 }
0x3957   :  { %4775 = vrot.lane.b32.xlu0 %v6460_v12, %s6604_s3  ;;  %v6462_v8 = vpop.eup %6461 }
0x3958   :  { %v6464_v51 = vpop.eup %6463 }
0x3959   :  { %v4544_v26 = vadd.f32 1.0, %v6464_v51 }
0x395b   :  { %4553 = vrot.lane.b32.xlu0 %v6462_v8, %s6604_s3  ;;  %6465 = vrcp.f32 %v4544_v26 }
0x3965   :  { %v6466_v17 = vpop.eup %6465 }
0x3966   :  { %v4551_v19 = vmul.f32 %v6466_v17, %v4549_v3 }
0x39c9   :  { %v4776_v55 = vpop.permute.xlu0 %4775 }
0x39ca   :  { %v4778_v25 = vmul.f32 %v6458_v62, %v4776_v55 }
0x39cc   :  { %4780 = vrot.lane.b32.xlu1 %v4778_v25, %s6605_s20 }
0x39cd   :  { %v4554_v24 = vpop.permute.xlu0 %4553 }
0x39ce   :  { %v4556_v18 = vmul.f32 %v6466_v17, %v4554_v24 }
0x39d0   :  { %4558 = vrot.lane.b32.xlu0 %v4556_v18, %s6605_s20 }
0x3a3e   :  { %v4781_v16 = vpop.permute.xlu1 %4780 }
0x3a3f   :  { %5823 = vmatmul.mubr.msk.f32.vlgmr.msra.gmra.mrb[44].mxu1 %vm212_vm3, %v4781_v16 }
0x3a40   :  { %5844 = vmatprep.mubr.msk.f32.mxu1 %vm6603_vm0, %v6601_v0  ;;  %v6126_v0 = vpack.c.bf16 %v4890_v28, %v4889_v61 }
0x3a42   :  { %v4559_v5 = vpop.permute.xlu0 %4558  ;;  %6127 = vmatpush3.bf16.msra.mxu0 %v6126_v0 }
0x3a43   :  { %v4561_v54 = vadd.f32 %v4559_v5, %v4551_v19  ;;  %6128 = vmatprep.subr.bf16.mxu0 %v6602_v1 }
0x3a45   :  { %6467 = vtanh.f32 %v4561_v54 }
0x3a46   :  { %6130 = vmatpush3.bf16.msra.mxu0 %v6129_v31 }
0x3a4f   :  { %v6468_v27 = vpop.eup %6467 }
0x3a50   :  { %4564 = vrot.lane.b32.xlu0 %v6468_v27, %s6604_s3 }
0x3ac2   :  { %v4565_v20 = vpop.permute.xlu0 %4564 }
0x3ac3   :  { %v4567_v47 = vmul.f32 %v6466_v17, %v4565_v20 }
0x3ac5   :  { %v4894_v33 = vrot.slane %v4567_v47, 2 }
0x3ac7   :  { %4895 = vrot.lane.b32.xlu0 %v4894_v33, %s6605_s20 }
0x3b12   :  { %v4850_v35 = vpop.f32.mrb[44].mxu1 }
0x3b13   :  { %v4855_v4 = vrot.slane %v4850_v35, 6  ;;  %v5824_v15 = vpop.f32.mrb[45].mxu1 }
0x3b15   :  { %v4857_v40 = vadd.f32 %v4855_v4, %v7634_v63  ;;  %v6132_v63 = vpack.c.bf16 %v4886_v52, %v4885_v49 }
0x3b17   :  { %6469 = vtanh.f32 %v4857_v40  ;;  %v5155_v57 = vmul.f32 -1.442695, %v4857_v40  ;;  %6133 = vmatpush3.bf16.msra.mxu1 %v6132_v63 }
0x3b18   :  { %6134 = vmatprep.subr.bf16.mxu1 %v6602_v1 }
0x3b19   :  { %6471 = vpow2.f32 %v5155_v57 }
0x3b1b   :  { %6136 = vmatpush3.bf16.msra.mxu1 %v6135_v59 }
0x3b21   :  { %v6470_v41 = vpop.eup %6469 }
0x3b22   :  { %4870 = vrot.lane.b32.xlu1 %v6470_v41, %s6604_s3 }
0x3b23   :  { %v6472_v43 = vpop.eup %6471 }
0x3b24   :  { %v4861_v42 = vadd.f32 1.0, %v6472_v43 }
0x3b26   :  { %6473 = vrcp.f32 %v4861_v42 }
0x3b30   :  { %v6474_v45 = vpop.eup %6473 }
0x3b31   :  { %v4868_v44 = vmul.f32 %v6474_v45, %v4866_v23 }
0x3b39   :  { %v4896_v53 = vpop.permute.xlu0 %4895 }
0x3b3a   :  { %5834 = vmatmul.mubr.msk.f32.vlgmr.msra.gmra.mrb[48].mxu0 %vm212_vm3, %v4896_v53 }
0x3b94   :  { %v4871_v39 = vpop.permute.xlu1 %4870 }
0x3b95   :  { %v4873_v46 = vmul.f32 %v6474_v45, %v4871_v39 }
0x3b97   :  { %4875 = vrot.lane.b32.xlu1 %v4873_v46, %s6605_s20 }
0x3c09   :  { %v4876_v6 = vpop.permute.xlu1 %4875 }
0x3c0a   :  { %v4878_v14 = vadd.f32 %v4876_v6, %v4868_v44 }
0x3c0c   :  { %6475 = vtanh.f32 %v4878_v14 }
0x3c0d   :  { %v4965_v50 = vpop.f32.mrb[48].mxu0 }
0x3c0e   :  { %v5835_v22 = vpop.f32.mrb[49].mxu0 }
0x3c16   :  { %v6476_v48 = vpop.eup %6475 }
0x3c17   :  { %4881 = vrot.lane.b32.xlu1 %v6476_v48, %s6604_s3 }
0x3c89   :  { %v4882_v60 = vpop.permute.xlu1 %4881 }
0x3c8a   :  { %v4884_v21 = vmul.f32 %v6474_v45, %v4882_v60 }
0x3c8c   :  { %v4970_v34 = vrot.slane %v4884_v21, 2 }
0x3c8e   :  { %4971 = vrot.lane.b32.xlu1 %v4970_v34, %s6605_s20 }
0x3d00   :  { %v4972_v2 = vpop.permute.xlu1 %4971 }
0x3d01   :  { %5845 = vmatmul.mubr.msk.f32.vlgmr.msra.gmra.mrb[46].mxu1 %vm212_vm3, %v4972_v2 }
0x3dd4   :  { %v5041_v62 = vpop.f32.mrb[46].mxu1 }
0x3dd5   :  { %v5042_v1 = vadd.f32 %v5041_v62, %v4965_v50  ;;  %v5846_v37 = vpop.f32.mrb[47].mxu1 }
0x3dd7   :  { %v5052_v38 = vadd.f32 %v5158_v11, %v5042_v1 }
0x3dd9   :  { %5054 = vst.msk [vmem:[#allocation12] sm:$0x3] %vm5053_vm13, %v5052_v38 }
0x3dda   :  { %6576 = shalt.err (!%p6573_p8)
}
0x3ddb   :  { %s6577_s3 = scalar_lea.hbm %s7714_s12, 32 }
0x3ddc   :  { %p6578_p9 = scmp.ne.s32.totalorder %s7714_s12, %s6577_s3  ;;  %p6581_p10 = scmp.lt.u32.totalorder %s6577_s3, %s7714_s12 }
0x3dde   :  { %p6583_p11 = pnand %p6581_p10, %p6578_p9 }
0x3de0   :  { %6586 = shalt.err (!%p6583_p11)
}
0x3de1   :  { %5064 = dma.vmem_to_hbm [thread:$0]  %s5062_s30, 32, %s7714_s12, [#allocation6]  }
0x3de2   :  { %6593 = dma.done.wait [#allocation6], 32  }
0x3de3   :  { %6594 = vsyncadd [#allocation6], 4294967264 }
0x3de4   :  { %5068 = vsyncpa [#allocation5], 1 }
0x3de5   :  { %5069 = vsyncpa [#allocation8], 1 }
0x3de6   :  { %5070 = vsyncpa [#allocation11], 1 }
0x3de7   :  { %5071 = vsyncpa [#allocation6], 1 }

</bundles_post_ra>
